<compile_context>
chip_gen: v7x
topology: tpu7x:2x2x1
jax: 0.10.0
libtpu: 0.0.40
codegen_flags: <defaults>
</compile_context>

<pallas_src>
import functools

import jax
import jax.numpy as jnp
from jax.experimental import pallas as pl
from jax.experimental.pallas import tpu as pltpu

PAD_SIZE = 15                                   # chars per token -> Conv1d in_channels
CHAR_DIM = 8                                    # char embedding dim -> Conv1d length L
KERNEL_SIZES = (3, 4, 5)
N_POS = sum(CHAR_DIM - n + 1 for n in KERNEL_SIZES)   # 6 + 5 + 4 = 15 conv outputs
K_FLAT = PAD_SIZE * CHAR_DIM                    # 120 flattened features per token
K_PAD = 128                                     # 120 + bias column, padded to lane width


def charcnn_kernel(x_ref, w_ref, out_ref, *, n_pos, f_pad):
    """One fused im2col matmul + bias(folded) + ReLU + global max-pool.

    x_ref  : (TB, 128)            bf16  -- flattened embedded chars (+ ones col)
    w_ref  : (128, n_pos * f_pad) bf16  -- packed conv weights (bias in row 120)
    out_ref: (TB, f_pad)          f32   -- max-pooled features (lane-dense)
    """
    y = jnp.dot(x_ref[...], w_ref[...], preferred_element_type=jnp.float32)
    y = jnp.maximum(y, 0.0)                     # ReLU (>=0, valid max identity)
    pooled = y[:, :f_pad]
    for p in range(1, n_pos):                   # lane-aligned 128-wide slices: cheap
        pooled = jnp.maximum(pooled, y[:, p * f_pad:(p + 1) * f_pad])
    out_ref[...] = pooled


def pack_weights(w_torch, biases, f_pad):
    """Pack PyTorch Conv1d weights (F, 15, n) + biases into one (128, 15*f_pad) matrix.

    Column (p_base + l) * f_pad + f holds the weights producing conv output
    position l of that kernel size for filter f; row 120 carries the bias
    (matched by the ones column appended to the flattened embeddings).
    """
    wp = jnp.zeros((K_PAD, N_POS * f_pad), jnp.float32)
    p_base = 0
    for w, b in zip(w_torch, biases):           # w: (F, 15, n), b: (1, F)
        f, c_in, n = w.shape
        l_out = CHAR_DIM - n + 1
        for l in range(l_out):
            col0 = (p_base + l) * f_pad
            blk = jnp.zeros((K_PAD, f), jnp.float32)
            for k in range(n):
                rows = jnp.arange(c_in) * CHAR_DIM + (l + k)
                blk = blk.at[rows, :].set(w[:, :, k].T)       # (C, F)
            blk = blk.at[K_FLAT, :].set(b.reshape(-1))        # fold bias
            wp = wp.at[:, col0:col0 + f].set(blk)
        p_base += l_out
    return wp


def charcnn_forward(char_ids, emb_table, w_torch, biases, *, token_block=256):
    """char_ids: (N, 15) int32; emb_table: (V, 8); w_torch[i]: (F, 15, n_i); biases[i]: (1, F)."""
    n_tok = char_ids.shape[0]
    filters = w_torch[0].shape[0]
    f_pad = ((filters + 127) // 128) * 128

    # Glue: embedding gather + im2col flatten (lane-dense), done XLA-side.
    # TODO(synk): fuse the data-dependent embedding gather into the kernel
    # (scalar-prefetch / one-hot matmul) to drop the (N,120) HBM round-trip.
    embedded = jnp.take(emb_table, char_ids, axis=0).astype(jnp.float32)  # (N, 15, 8)
    x = embedded.reshape(n_tok, K_FLAT)
    x = jnp.concatenate(
        [x,
         jnp.ones((n_tok, 1), x.dtype),                       # ones column -> bias
         jnp.zeros((n_tok, K_PAD - K_FLAT - 1), x.dtype)], axis=1)

    # Pad token dim to a multiple of the block (zero rows are harmless).
    n_pad = pl.cdiv(n_tok, token_block) * token_block
    if n_pad != n_tok:
        x = jnp.pad(x, ((0, n_pad - n_tok), (0, 0)))
    x = x.astype(jnp.bfloat16)                                # bf16 MXU operands

    wp = pack_weights(w_torch, biases, f_pad).astype(jnp.bfloat16)

    kernel = functools.partial(charcnn_kernel, n_pos=N_POS, f_pad=f_pad)
    out = pl.pallas_call(
        kernel,
        out_shape=jax.ShapeDtypeStruct((n_pad, f_pad), jnp.float32),
        grid=(n_pad // token_block,),
        in_specs=[
            pl.BlockSpec((token_block, K_PAD), lambda i: (i, 0)),
            pl.BlockSpec((K_PAD, N_POS * f_pad), lambda i: (0, 0)),  # resident weights
        ],
        out_specs=pl.BlockSpec((token_block, f_pad), lambda i: (i, 0)),
        compiler_params=pltpu.CompilerParams(dimension_semantics=("parallel",)),
    )(x, wp)
    return out[:n_tok, :filters]


def charcnn_ref(char_ids, emb_table, w_torch, biases):
    """Pure-JAX f32 reference using lax.conv with the PyTorch (F, C_in, k) weight layout."""
    embedded = jnp.take(emb_table, char_ids, axis=0).astype(jnp.float32)  # (N, 15, 8)
    outs = []
    for w, b in zip(w_torch, biases):
        c = jax.lax.conv_general_dilated(
            embedded, w, window_strides=(1,), padding="VALID",
            dimension_numbers=("NCH", "OIH", "NCH"))
        outs.append(jax.nn.relu(c + b[:, :, None]))
    conv = jnp.concatenate(outs, axis=2)        # (N, F, 15)
    return jnp.max(conv, axis=2)                # (N, F)


if __name__ == "__main__":
    filters = 32
    n_tokens = 500                              # not a multiple of token_block on purpose
    token_block = 256                           # grid = 2 blocks
    vocab_size = 26 + 2                         # len(vocab) + <PAD> + <UNK>

    key = jax.random.PRNGKey(0)
    keys = jax.random.split(key, 2 + 2 * len(KERNEL_SIZES))

    char_ids = jax.random.randint(keys[0], (n_tokens, PAD_SIZE), 0, vocab_size,
                                  dtype=jnp.int32)
    emb_table = 0.1 * jax.random.normal(keys[1], (vocab_size, CHAR_DIM), jnp.float32)
    emb_table = emb_table.at[0].set(0.0)        # padding_idx = 0

    w_torch, biases = [], []
    for i, n in enumerate(KERNEL_SIZES):
        w_torch.append(0.1 * jax.random.normal(keys[2 + 2 * i],
                                               (filters, PAD_SIZE, n), jnp.float32))
        biases.append(0.1 * jax.random.normal(keys[3 + 2 * i],
                                              (1, filters), jnp.float32))

    out = charcnn_forward(char_ids, emb_table, w_torch, biases,
                          token_block=token_block)
    out = jax.block_until_ready(out)

    ref = charcnn_ref(char_ids, emb_table, w_torch, biases)
    assert out.shape == (n_tokens, filters)
    max_err = jnp.max(jnp.abs(out - ref))
    # bf16 matmul operands (f32 accumulation) -> relaxed tolerance.
    assert jnp.allclose(out, ref, atol=2e-2, rtol=2e-2), f"max abs err {max_err}"
    print("KERNEL_OK")
</pallas_src>

<mosaic_0001>
module attributes {stable_mosaic.version = 11 : i64} {
  func.func @charcnn_kernel(%arg0: i32, %arg1: memref<256x128xbf16, #tpu.memory_space<vmem>>, %arg2: memref<128x1920xbf16, #tpu.memory_space<vmem>>, %arg3: memref<256x128xf32, #tpu.memory_space<vmem>>) attributes {dimension_semantics = [#tpu.dimension_semantics<parallel>], iteration_bounds = array<i64: 2>, scalar_prefetch = 0 : i64, scratch_operands = 0 : i64, tpu.core_type = #tpu.core_type<tc>, window_params = [{transform_indices = @transform_0, window_bounds = array<i64: 256, 128>}, {pipeline_mode = #tpu.pipeline_mode<synchronous>, transform_indices = @transform_1, window_bounds = array<i64: 128, 1920>}, {transform_indices = @transform_2, window_bounds = array<i64: 256, 128>}]} {
    %c0 = arith.constant 0 : index
    %c0_0 = arith.constant 0 : index
    %0 = vector.load %arg1[%c0, %c0_0] : memref<256x128xbf16, #tpu.memory_space<vmem>>, vector<256x128xbf16>
    %c0_1 = arith.constant 0 : index
    %c0_2 = arith.constant 0 : index
    %1 = vector.load %arg2[%c0_1, %c0_2] : memref<128x1920xbf16, #tpu.memory_space<vmem>>, vector<128x1920xbf16>
    %cst = arith.constant dense<0.000000e+00> : vector<256x1920xf32>
    %2 = tpu.matmul %0, %1, %cst {dimension_numbers = #tpu.dot_dimension_numbers<[1], [0], [0], [1], [0, 0, 1, 1], [], []>} : vector<256x128xbf16>, vector<128x1920xbf16>, vector<256x1920xf32> -> vector<256x1920xf32>
    %cst_3 = arith.constant 0.000000e+00 : f32
    %3 = vector.broadcast %cst_3 : f32 to vector<256x1920xf32>
    %4 = arith.maximumf %2, %3 : vector<256x1920xf32>
    %5 = vector.extract_strided_slice %4 {offsets = [0, 0], sizes = [256, 128], strides = [1, 1]} : vector<256x1920xf32> to vector<256x128xf32>
    %6 = vector.extract_strided_slice %4 {offsets = [0, 128], sizes = [256, 128], strides = [1, 1]} : vector<256x1920xf32> to vector<256x128xf32>
    %7 = arith.maximumf %5, %6 : vector<256x128xf32>
    %8 = vector.extract_strided_slice %4 {offsets = [0, 256], sizes = [256, 128], strides = [1, 1]} : vector<256x1920xf32> to vector<256x128xf32>
    %9 = arith.maximumf %7, %8 : vector<256x128xf32>
    %10 = vector.extract_strided_slice %4 {offsets = [0, 384], sizes = [256, 128], strides = [1, 1]} : vector<256x1920xf32> to vector<256x128xf32>
    %11 = arith.maximumf %9, %10 : vector<256x128xf32>
    %12 = vector.extract_strided_slice %4 {offsets = [0, 512], sizes = [256, 128], strides = [1, 1]} : vector<256x1920xf32> to vector<256x128xf32>
    %13 = arith.maximumf %11, %12 : vector<256x128xf32>
    %14 = vector.extract_strided_slice %4 {offsets = [0, 640], sizes = [256, 128], strides = [1, 1]} : vector<256x1920xf32> to vector<256x128xf32>
    %15 = arith.maximumf %13, %14 : vector<256x128xf32>
    %16 = vector.extract_strided_slice %4 {offsets = [0, 768], sizes = [256, 128], strides = [1, 1]} : vector<256x1920xf32> to vector<256x128xf32>
    %17 = arith.maximumf %15, %16 : vector<256x128xf32>
    %18 = vector.extract_strided_slice %4 {offsets = [0, 896], sizes = [256, 128], strides = [1, 1]} : vector<256x1920xf32> to vector<256x128xf32>
    %19 = arith.maximumf %17, %18 : vector<256x128xf32>
    %20 = vector.extract_strided_slice %4 {offsets = [0, 1024], sizes = [256, 128], strides = [1, 1]} : vector<256x1920xf32> to vector<256x128xf32>
    %21 = arith.maximumf %19, %20 : vector<256x128xf32>
    %22 = vector.extract_strided_slice %4 {offsets = [0, 1152], sizes = [256, 128], strides = [1, 1]} : vector<256x1920xf32> to vector<256x128xf32>
    %23 = arith.maximumf %21, %22 : vector<256x128xf32>
    %24 = vector.extract_strided_slice %4 {offsets = [0, 1280], sizes = [256, 128], strides = [1, 1]} : vector<256x1920xf32> to vector<256x128xf32>
    %25 = arith.maximumf %23, %24 : vector<256x128xf32>
    %26 = vector.extract_strided_slice %4 {offsets = [0, 1408], sizes = [256, 128], strides = [1, 1]} : vector<256x1920xf32> to vector<256x128xf32>
    %27 = arith.maximumf %25, %26 : vector<256x128xf32>
    %28 = vector.extract_strided_slice %4 {offsets = [0, 1536], sizes = [256, 128], strides = [1, 1]} : vector<256x1920xf32> to vector<256x128xf32>
    %29 = arith.maximumf %27, %28 : vector<256x128xf32>
    %30 = vector.extract_strided_slice %4 {offsets = [0, 1664], sizes = [256, 128], strides = [1, 1]} : vector<256x1920xf32> to vector<256x128xf32>
    %31 = arith.maximumf %29, %30 : vector<256x128xf32>
    %32 = vector.extract_strided_slice %4 {offsets = [0, 1792], sizes = [256, 128], strides = [1, 1]} : vector<256x1920xf32> to vector<256x128xf32>
    %33 = arith.maximumf %31, %32 : vector<256x128xf32>
    %c0_4 = arith.constant 0 : index
    %c0_5 = arith.constant 0 : index
    %34 = vector.load %arg3[%c0_4, %c0_5] : memref<256x128xf32, #tpu.memory_space<vmem>>, vector<256x128xf32>
    tpu.vector_store %arg3[%c0_4, %c0_5], %33 {strides = array<i32>} : memref<256x128xf32, #tpu.memory_space<vmem>>, vector<256x128xf32>,
    return
  }
  func.func @transform_0(%arg0: i32) -> (i32, i32) {
    %c0_i32 = arith.constant 0 : i32
    %c0_i32_0 = arith.constant 0 : i32
    return %arg0, %c0_i32 : i32, i32
  }
  func.func @transform_1(%arg0: i32) -> (i32, i32) {
    %c0_i32 = arith.constant 0 : i32
    %c0_i32_0 = arith.constant 0 : i32
    %c0_i32_1 = arith.constant 0 : i32
    return %c0_i32, %c0_i32_0 : i32, i32
  }
  func.func @transform_2(%arg0: i32) -> (i32, i32) {
    %c0_i32 = arith.constant 0 : i32
    %c0_i32_0 = arith.constant 0 : i32
    return %arg0, %c0_i32 : i32, i32
  }
}

</mosaic_0001>

<bundles_post_ra>
// kernel: tpu_custom_call.1
= control target key start
LH: loop header
LB: loop body
LE: loop exit
PB: predicated region body
PF: predicated region fallthrough
CT: control target
= control target key end

     0   :  { %7 = vsyncpa [#allocation3], 0  ;;  %s5503_s0 = inlined_call_operand.hbm [shape: bf16[512,128], index: 0, kind: input, shape index: {}]   ;;  %s5504_s1 = inlined_call_operand.hbm [shape: bf16[128,1920], index: 1, kind: input, shape index: {}]   ;;  %s5505_s2 = inlined_call_operand.hbm [shape: f32[512,128], index: 2, kind: output, shape index: {}]  }
   0x1   :  { %9 = vsyncpa [#allocation3 + $0x1], 0 }
   0x2   :  { %10 = vsyncpa [#allocation6], 0 }
   0x3   :  { %11 = vsyncpa [#allocation4], 0 }
   0x4   :  { %13 = vsyncpa [#allocation4 + $0x1], 0  ;;  %s4286_s9 = smov 0   ;;  %s4288_s10 = smov 0  }
   0x5   :  { %s4290_s11 = smov 0   ;;  %s4292_s12 = smov 0  }
   0x6 LB: > { %s4307_s13 = sadd.s32 4294967295, %s4259_s12   ;;  %s3613_s14 = sadd.s32 4294967294, %s4259_s12   ;;  %s4259_s12 = sphi %s4292_s12, %s5542_s12   ;;  %s4255_s11 = sphi %s4290_s11, %s5541_s11   ;;  %s4251_s10 = sphi %s4288_s10, %s5540_s10   ;;  %s4247_s9 = sphi %s4286_s9, %s5539_s9  }
   0x7   : > { %p39_p0 = scmp.ne.s32.totalorder %s4251_s10, %s4247_s9  ;;  %p5506_p1 = scmp.eq.s32.totalorder %s4307_s13, 0 }
   0x8   : > { %p90_p3 = scmp.eq.s32.totalorder %s3613_s14, 1  ;;  %p3614_p5 = scmp.ge.s32.totalorder %s4259_s12, 1 }
   0x9   : > { %p4316_p4 = por %p5506_p1, %p39_p0  ;;  %p97_p7 = scmp.lt.s32.totalorder %s4259_s12, 3 }
   0xa   : > { %p4321_p6 = por %p90_p3, %p39_p0  ;;  %s4261_s18 = smov [#allocation5]  }
   0xb   : > { %s5517_s15 = scalar_select %p4316_p4, 1, 0 }
   0xc   : > { %s5518_s16 = scalar_select %p4321_p6, 1, 0 }
   0xd   : > { %p4326_p8 = pnand %p3614_p5, %p97_p7  ;;  %s109_s19 = sshll.u32 %s4261_s18, 4  ;;  %s4330_s19 = int_to_ptr.vmem [resolvable:$true] %s109_s19 }
   0xe   : > { %s4342_s21 = sadd.s32 1, %s4259_s12   ;;  %s26_s22 = sadd.s32 1, %s4255_s11 }
   0xf   : > { %s5519_s17 = scalar_select %p4326_p8, 1, 0 }
  0x10   : > { %p3863_p9 = pneg %p4326_p8  ;;  %s23_s23 = ssub.s32 %s4259_s12, %s4342_s21 }
  0x11   : > { %s4131_s26 = scalar_lea.hbm %s5504_s1, 15360 }
  0x12   : > { %p4337_p11 = pnand %p3863_p9, %p5506_p1  ;;  %p4132_p12 = scmp.ne.s32.totalorder %s5504_s1, %s4131_s26 }
  0x13   : > { %p4138_p5 = scmp.lt.u32.totalorder %s4131_s26, %s5504_s1 }
  0x14   : > { %p4133_p13 = pneg %p4337_p11 }
  0x16   : > { %p4134_p0 = pnand %p4133_p13, %p4132_p12 }
  0x18   : > { %p4135_p3 = pneg %p4134_p0 }
  0x1a   : > { %p4140_p7 = pnand %p4138_p5, %p4135_p3 }
  0x1c   : > { %4143 = shalt.err (!%p4140_p7)
}
  0x1d   : > { %s4144_s3 = scalar_lea.vmem %s4330_s19, 15360  ;;  %p4152_p2 = scmp.lt.s32.totalorder %s4330_s19, %s4330_s19 }
  0x1e   : > { %p4145_p9 = scmp.ne.s32.totalorder %s4330_s19, %s4144_s3  ;;  %p4153_p6 = scmp.lt.s32.totalorder %s4144_s3, %s4144_s3 }
  0x20   : > { %p4147_p10 = pnand %p4145_p9, %p4133_p13  ;;  %p4154_p4 = por %p4153_p6, %p4152_p2 }
  0x22   : > { %p4148_p1 = pneg %p4147_p10 }
  0x24   : > { %p4155_p8 = pnand %p4154_p4, %p4148_p1 }
  0x26   : > { %4158 = shalt.err (!%p4155_p8)
}
  0x27   : > { %s4262_s4 = smov 960   ;;  %s4263_s5 = smov 60  }
  0x28   : > { %3866 = dma.hbm_to_vmem [thread:$0]  (!%p4337_p11), %s5504_s1, 15360, %s4330_s19, [#allocation6], %s4262_s4, %s4262_s4, %s4263_s5  }
  0x29   : > { %p24_p2 = scmp.eq.s32.totalorder %s23_s23, 0  ;;  %p33_p1 = scmp.ne.s32.totalorder %s4255_s11, %s4251_s10 }
  0x2a   : > { %p34_p4 = scmp.eq.s32.totalorder %s4259_s12, 0  ;;  %p3876_p6 = scmp.lt.s32.totalorder %s4259_s12, 2 }
  0x2b   : > { %s4373_s8 = scalar_select %p24_p2, %s4255_s11, %s26_s22  }
  0x2c   : > { %p35_p8 = por %p34_p4, %p33_p1  ;;  %p5521_p10 = scmp.eq.s32.totalorder %s4307_s13, 1 }
  0x2d   : > { %s123_s18 = sand.u32 1, %s4255_s11   ;;  %s3765_s24 = sshll.u32 %s4259_s12, 11 }
  0x2e   : > { %p4377_p12 = por %p5521_p10, %p33_p1  ;;  %s3617_s25 = sshll.u32 %s123_s18, 7 }
  0x2f   : > { %s4386_s27 = scalar_lea.hbm %s5503_s0, %s3765_s24  ;;  %s127_s19 = scalar_lea.vmem [#allocation2], %s3617_s25 }
  0x30   : > { %s134_s22 = sshll.u32 %s127_s19, 4  ;;  %p4388_p11 = pnand %p3876_p6, %p35_p8  ;;  %s4392_s22 = int_to_ptr.vmem [resolvable:$true] %s134_s22 }
  0x31   : > { %s4394_s28 = scalar_lea.sflag [#allocation3], %s123_s18  ;;  %s4159_s29 = scalar_lea.hbm %s4386_s27, 2048 }
  0x32   : > { %p4160_p13 = scmp.ne.s32.totalorder %s4386_s27, %s4159_s29  ;;  %p4161_p0 = pneg %p4388_p11 }
  0x33   : > { %s4164_s4 = scalar_lea.hbm %s5503_s0, 4096  ;;  %p4165_p7 = scmp.lt.u32.totalorder %s4386_s27, %s5503_s0 }
  0x34   : > { %p4162_p3 = pnand %p4161_p0, %p4160_p13  ;;  %p4166_p9 = scmp.lt.u32.totalorder %s4164_s4, %s4159_s29 }
  0x35   : > { %p4168_p1 = scmp.lt.u32.totalorder %s4159_s29, %s4386_s27 }
  0x36   : > { %p4163_p5 = pneg %p4162_p3  ;;  %p4167_p2 = por %p4166_p9, %p4165_p7 }
  0x38   : > { %p4169_p4 = por %p4168_p1, %p4167_p2 }
  0x3a   : > { %p4170_p6 = pnand %p4169_p4, %p4163_p5 }
  0x3c   : > { %4173 = shalt.err (!%p4170_p6)
}
  0x3d   : > { %s4174_s7 = scalar_lea.vmem %s4392_s22, 2048  ;;  %s4264_s18 = smov [#allocation2]  }
  0x3e   : > { %p4175_p8 = scmp.ne.s32.totalorder %s4392_s22, %s4174_s7  ;;  %s4179_s24 = sshll.u32 %s4264_s18, 4  ;;  %s4180_s24 = int_to_ptr.vmem [resolvable:$false] %s4179_s24 }
  0x3f   : > { %s4181_s25 = scalar_lea.vmem %s4180_s24, 4096  ;;  %p4182_p3 = scmp.lt.s32.totalorder %s4392_s22, %s4180_s24 }
  0x40   : > { %p4177_p10 = pnand %p4175_p8, %p4161_p0  ;;  %p4183_p7 = scmp.lt.s32.totalorder %s4181_s25, %s4174_s7 }
  0x42   : > { %p4178_p13 = pneg %p4177_p10  ;;  %p4184_p9 = por %p4183_p7, %p4182_p3 }
  0x44   : > { %p4185_p2 = pnand %p4184_p9, %p4178_p13 }
  0x46   : > { %4188 = shalt.err (!%p4185_p2)
}
  0x47   : > { %s4265_s20 = smov 64   ;;  %s4266_s26 = smov 4  }
  0x48   : > { %3870 = dma.hbm_to_vmem [thread:$0]  (!%p4388_p11), %s4386_s27, 2048, %s4392_s22, %s4394_s28, %s4265_s20, %s4265_s20, %s4266_s26  }
  0x49   : > { %p5524_p0 = scmp.ne.s32.totalorder %s5519_s17, 0 }
  0x4b   : > { %146 = sbr.rel (%p5524_p0) target bundleno = 832 (0x340), region = 28 }
  0x52   : > { %s4425_s19 = sand.u32 1, %s4251_s10   ;;  %p5525_p5 = scmp.ne.s32.totalorder %s5517_s15, 0 }
  0x53   : > { %s3621_s29 = sshll.u32 %s4425_s19, 7  ;;  %s149_s30 = scalar_lea.sflag [#allocation3], %s4425_s19 }
  0x54   : > { %s4429_s3 = scalar_lea.vmem [#allocation2], %s3621_s29 }
  0x55   : > { %4234 = dma.done.wait (%p5525_p5), %s149_s30, 2048  }
  0x56   : > { %4236 = vsyncadd (%p5525_p5), %s149_s30, 4294965248  ;;  %p5526_p11 = scmp.eq.s32.totalorder %s4307_s13, 0 }
  0x58   : > { %4238 = dma.done.wait (%p5526_p11), [#allocation6], 15360   ;;  %p5527_p1 = pmov %p5526_p11 }
  0x59   : > { %v5509_v0 = vmov 0   ;;  %v3919_v1 = vld [vmem:[#allocation5 + $0x4] ss:$60 sps:$4 sm:$0xff]   ;;  %v3922_v3 = vld [vmem:[#allocation5 + $0x7c] ss:$60 sps:$4 sm:$0xff]   ;;  %v4452_v29 = vld [vmem:[%s4429_s3 + $0x8] sm:$0xff]  }
  0x5a   : > { %4240 = vsyncadd (%p5527_p1), [#allocation6], 4294951936  ;;  %1076 = vmatprep.mubr.bf16.mxu0 %v5509_v0  ;;  %1196 = vmatprep.mubr.bf16.mxu1 %v5509_v0  ;;  %v3921_v2 = vld [vmem:[#allocation5] ss:$60 sps:$4 sm:$0xff]   ;;  %v3924_v4 = vld [vmem:[#allocation5 + $0x78] ss:$60 sps:$4 sm:$0xff]  }
  0x5b   : > { %1044 = vmatprep.subr.bf16.mxu0 %v3919_v1  ;;  %3839 = vmatprep.subr.bf16.mxu1 %v3919_v1  ;;  %v3925_v5 = vld [vmem:[#allocation5 + $0xf4] ss:$60 sps:$4 sm:$0xff]   ;;  %v3928_v7 = vld [vmem:[#allocation5 + $0x16c] ss:$60 sps:$4 sm:$0xff]   ;;  %v3931_v9 = vld [vmem:[#allocation5 + $0x1e4] ss:$60 sps:$4 sm:$0xff]  }
  0x5c   : > { %1045 = vmatpush1.bf16.msra.mxu0 %v3921_v2  ;;  %3847 = vmatpush1.bf16.msra.mxu1 %v3921_v2  ;;  %v3927_v6 = vld [vmem:[#allocation5 + $0xf0] ss:$60 sps:$4 sm:$0xff]   ;;  %v3930_v8 = vld [vmem:[#allocation5 + $0x168] ss:$60 sps:$4 sm:$0xff]   ;;  %v3933_v10 = vld [vmem:[#allocation5 + $0x1e0] ss:$60 sps:$4 sm:$0xff]  }
  0x5d   : > { %1046 = vmatprep.subr.bf16.mxu0 %v3922_v3  ;;  %3840 = vmatprep.subr.bf16.mxu1 %v3922_v3  ;;  %v3934_v11 = vld [vmem:[#allocation5 + $0x25c] ss:$60 sps:$4 sm:$0xff]   ;;  %v3937_v13 = vld [vmem:[#allocation5 + $0x2d4] ss:$60 sps:$4 sm:$0xff]   ;;  %v3940_v15 = vld [vmem:[#allocation5 + $0x34c] ss:$60 sps:$4 sm:$0xff]  }
  0x5e   : > { %v3936_v12 = vld [vmem:[#allocation5 + $0x258] ss:$60 sps:$4 sm:$0xff]   ;;  %v3939_v14 = vld [vmem:[#allocation5 + $0x2d0] ss:$60 sps:$4 sm:$0xff]   ;;  %v3942_v16 = vld [vmem:[#allocation5 + $0x348] ss:$60 sps:$4 sm:$0xff]  }
  0x5f   : > { %v3947_v17 = vld [vmem:[#allocation5 + $0xc] ss:$60 sps:$4 sm:$0xff]   ;;  %v3950_v18 = vld [vmem:[#allocation5 + $0x14] ss:$60 sps:$4 sm:$0xff]   ;;  %v4442_v19 = vld [vmem:[%s4429_s3] sm:$0xff]   ;;  %s3623_s15 = sshll.u32 %s4425_s19, 8 }
  0x60   : > { %1047 = vmatpush1.bf16.msra.mxu0 %v3924_v4  ;;  %3848 = vmatpush1.bf16.msra.mxu1 %v3924_v4  ;;  %v4445_v20 = vld [vmem:[%s4429_s3 + $0x60] sm:$0xff]   ;;  %v3948_v22 = vld [vmem:[#allocation5 + $0x10] ss:$60 sps:$4 sm:$0xff]   ;;  %v3958_v27 = vld [vmem:[#allocation5 + $0xfc] ss:$60 sps:$4 sm:$0xff]   ;;  %s5374_s17 = scalar_lea.vmem [#allocation7], %s3623_s15 }
  0x61   : > { %1048 = vmatprep.subr.bf16.mxu0 %v3925_v5  ;;  %3841 = vmatprep.subr.bf16.mxu1 %v3925_v5  ;;  %v3945_v21 = vld [vmem:[#allocation5 + $0x8] ss:$60 sps:$4 sm:$0xff]   ;;  %v3951_v25 = vld [vmem:[#allocation5 + $0x80] ss:$60 sps:$4 sm:$0xff]   ;;  %v3956_v31 = vld [vmem:[#allocation5 + $0xf8] ss:$60 sps:$4 sm:$0xff]  }
  0x62   : > { %v3953_v23 = vld [vmem:[#allocation5 + $0x84] ss:$60 sps:$4 sm:$0xff]   ;;  %v3964_v24 = vld [vmem:[#allocation5 + $0x8c] ss:$60 sps:$4 sm:$0xff]   ;;  %v3961_v32 = vld [vmem:[#allocation5 + $0x174] ss:$60 sps:$4 sm:$0xff]  }
  0x63   : > { %v3962_v26 = vld [vmem:[#allocation5 + $0x88] ss:$60 sps:$4 sm:$0xff]   ;;  %v3978_v33 = vld [vmem:[#allocation5 + $0x100] ss:$60 sps:$4 sm:$0xff]   ;;  %v3959_v35 = vld [vmem:[#allocation5 + $0x170] ss:$60 sps:$4 sm:$0xff]  }
  0x64   : > { %1049 = vmatpush1.bf16.msra.mxu0 %v3927_v6  ;;  %3849 = vmatpush1.bf16.msra.mxu1 %v3927_v6  ;;  %v3980_v28 = vld [vmem:[#allocation5 + $0x104] ss:$60 sps:$4 sm:$0xff]   ;;  %v4455_v30 = vld [vmem:[%s4429_s3 + $0x68] sm:$0xff]   ;;  %v3990_v34 = vld [vmem:[#allocation5 + $0x17c] ss:$60 sps:$4 sm:$0xff]   ;;  %s3766_s27 = sshll.u32 %s4307_s13, 12 }
  0x65   : > { %1050 = vmatprep.subr.bf16.mxu0 %v3928_v7  ;;  %3842 = vmatprep.subr.bf16.mxu1 %v3928_v7  ;;  %v4462_v36 = vld [vmem:[%s4429_s3 + $0x10] sm:$0xff]   ;;  %v3969_v37 = vld [vmem:[#allocation5 + $0x1ec] ss:$60 sps:$4 sm:$0xff]   ;;  %v3972_v41 = vld [vmem:[#allocation5 + $0x264] ss:$60 sps:$4 sm:$0xff]   ;;  %s3530_s22 = sshll.u32 %s5374_s17, 4  ;;  %s5454_s4 = scalar_lea.hbm %s5505_s2, %s3766_s27  ;;  %s5456_s22 = int_to_ptr.vmem [resolvable:$true] %s3530_s22 }
  0x66   : > { %v3988_v38 = vld [vmem:[#allocation5 + $0x178] ss:$60 sps:$4 sm:$0xff]   ;;  %v3967_v40 = vld [vmem:[#allocation5 + $0x1e8] ss:$60 sps:$4 sm:$0xff]   ;;  %v3970_v43 = vld [vmem:[#allocation5 + $0x260] ss:$60 sps:$4 sm:$0xff]  }
  0x67   : > { %v4465_v39 = vld [vmem:[%s4429_s3 + $0x70] sm:$0xff]   ;;  %v4002_v45 = vld [vmem:[#allocation5 + $0x26c] ss:$60 sps:$4 sm:$0xff]   ;;  %v3977_v46 = vld [vmem:[#allocation5 + $0x2dc] ss:$60 sps:$4 sm:$0xff]   ;;  %s3517_s13 = scalar_lea.sflag [#allocation4], %s4425_s19 }
  0x68   : > { %1051 = vmatpush1.bf16.msra.mxu0 %v3930_v8  ;;  %3850 = vmatpush1.bf16.msra.mxu1 %v3930_v8  ;;  %v3995_v42 = vld [vmem:[#allocation5 + $0x1f4] ss:$60 sps:$4 sm:$0xff]   ;;  %v4472_v47 = vld [vmem:[%s4429_s3 + $0x18] sm:$0xff]   ;;  %v4000_v51 = vld [vmem:[#allocation5 + $0x268] ss:$60 sps:$4 sm:$0xff]   ;;  %s4189_s5 = scalar_lea.vmem %s5456_s22, 4096 }
  0x69   : > { %1052 = vmatprep.subr.bf16.mxu0 %v3931_v9  ;;  %3843 = vmatprep.subr.bf16.mxu1 %v3931_v9  ;;  %v3993_v44 = vld [vmem:[#allocation5 + $0x1f0] ss:$60 sps:$4 sm:$0xff]   ;;  %v4475_v48 = vld [vmem:[%s4429_s3 + $0x78] sm:$0xff]   ;;  %v4010_v52 = vld [vmem:[#allocation5 + $0x2e4] ss:$60 sps:$4 sm:$0xff]   ;;  %p4190_p4 = scmp.ne.s32.totalorder %s5456_s22, %s4189_s5  ;;  %s4268_s6 = smov [#allocation7]  }
  0x6a   : > { %v3975_v49 = vld [vmem:[#allocation5 + $0x2d8] ss:$60 sps:$4 sm:$0xff]   ;;  %v3981_v53 = vld [vmem:[#allocation5 + $0x350] ss:$60 sps:$4 sm:$0xff]   ;;  %v4008_v55 = vld [vmem:[#allocation5 + $0x2e0] ss:$60 sps:$4 sm:$0xff]  }
  0x6b   : > { %v3983_v50 = vld [vmem:[#allocation5 + $0x354] ss:$60 sps:$4 sm:$0xff]   ;;  %v3987_v54 = vld [vmem:[#allocation5 + $0x1c] ss:$60 sps:$4 sm:$0xff]   ;;  %v4482_v56 = vld [vmem:[%s4429_s3 + $0x20] sm:$0xff]   ;;  %p4191_p6 = pnand %p4190_p4, %p4377_p12  ;;  %s4193_s7 = sshll.u32 %s4268_s6, 4  ;;  %s4194_s7 = int_to_ptr.vmem [resolvable:$false] %s4193_s7 }
  0x6c   : > { %1053 = vmatpush1.bf16.msra.mxu0 %v3933_v10  ;;  %3851 = vmatpush1.bf16.msra.mxu1 %v3933_v10  ;;  %v3985_v57 = vld [vmem:[#allocation5 + $0x18] ss:$60 sps:$4 sm:$0xff]   ;;  %v3996_v60 = vld [vmem:[#allocation5 + $0x90] ss:$60 sps:$4 sm:$0xff]   ;;  %v4021_v63 = vld [vmem:[#allocation5 + $0x24] ss:$60 sps:$4 sm:$0xff]   ;;  %p4196_p10 = scmp.lt.s32.totalorder %s5456_s22, %s4194_s7 }
  0x6d   : > { %1054 = vmatprep.subr.bf16.mxu0 %v3934_v11  ;;  %3844 = vmatprep.subr.bf16.mxu1 %v3934_v11  ;;  %v3998_v58 = vld [vmem:[#allocation5 + $0x94] ss:$60 sps:$4 sm:$0xff]   ;;  %v4017_v59 = vld [vmem:[#allocation5 + $0x35c] ss:$60 sps:$4 sm:$0xff]   ;;  %v4006_v61 = vld [vmem:[#allocation5 + $0x10c] ss:$60 sps:$4 sm:$0xff]   ;;  %p4192_p8 = pneg %p4191_p6 }
  0x6e   : > { %v4015_v62 = vld [vmem:[#allocation5 + $0x358] ss:$60 sps:$4 sm:$0xff]   ;;  %v4489_v1 = vld [vmem:[%s4429_s3 + $0x28] sm:$0xff]   ;;  %v4014_v3 = vld [vmem:[#allocation5 + $0x184] ss:$60 sps:$4 sm:$0xff]   ;;  %s4195_s18 = scalar_lea.vmem %s4194_s7, 8192 }
  0x6f   : > { %v4004_v2 = vld [vmem:[#allocation5 + $0x108] ss:$60 sps:$4 sm:$0xff]   ;;  %v4012_v4 = vld [vmem:[#allocation5 + $0x180] ss:$60 sps:$4 sm:$0xff]   ;;  %v4496_v6 = vld [vmem:[%s4429_s3 + $0x30] sm:$0xff]   ;;  %p4197_p13 = scmp.lt.s32.totalorder %s4195_s18, %s4189_s5 }
  0x70   : > { %1055 = vmatpush1.bf16.msra.mxu0 %v3936_v12  ;;  %3852 = vmatpush1.bf16.msra.mxu1 %v3936_v12  ;;  %v4024_v5 = vld [vmem:[#allocation5 + $0x1fc] ss:$60 sps:$4 sm:$0xff]   ;;  %v4030_v8 = vld [vmem:[#allocation5 + $0x274] ss:$60 sps:$4 sm:$0xff]   ;;  %v4036_v10 = vld [vmem:[#allocation5 + $0x2ec] ss:$60 sps:$4 sm:$0xff]  }
  0x71   : > { %1056 = vmatprep.subr.bf16.mxu0 %v3937_v13  ;;  %3845 = vmatprep.subr.bf16.mxu1 %v3937_v13  ;;  %v4022_v7 = vld [vmem:[#allocation5 + $0x1f8] ss:$60 sps:$4 sm:$0xff]   ;;  %v4028_v9 = vld [vmem:[#allocation5 + $0x270] ss:$60 sps:$4 sm:$0xff]   ;;  %v4034_v12 = vld [vmem:[#allocation5 + $0x2e8] ss:$60 sps:$4 sm:$0xff]   ;;  %p4198_p3 = por %p4197_p13, %p4196_p10 }
  0x72   : > { %v4503_v11 = vld [vmem:[%s4429_s3 + $0x38] sm:$0xff]   ;;  %v4042_v13 = vld [vmem:[#allocation5 + $0x364] ss:$60 sps:$4 sm:$0xff]  }
  0x73   : > { %p4199_p7 = pnand %p4198_p3, %p4192_p8 }
  0x74   : > { %1057 = vmatpush1.bf16.msra.mxu0 %v3939_v14  ;;  %3853 = vmatpush1.bf16.msra.mxu1 %v3939_v14  ;;  %v4040_v14 = vld [vmem:[#allocation5 + $0x360] ss:$60 sps:$4 sm:$0xff]  }
  0x75   : > { %1058 = vmatprep.subr.bf16.mxu0 %v3940_v15  ;;  %3846 = vmatprep.subr.bf16.mxu1 %v3940_v15  ;;  %v4048_v15 = vld [vmem:[#allocation5 + $0x2c] ss:$60 sps:$4 sm:$0xff]  }
  0x78   : > { %1059 = vmatpush1.bf16.msra.mxu0 %v3942_v16  ;;  %3854 = vmatpush1.bf16.msra.mxu1 %v3942_v16  ;;  %v4510_v16 = vld [vmem:[%s4429_s3 + $0x40] sm:$0xff]  }
  0x79   : > { %1237 = vmatprep.subr.bf16.mxu1 %v3947_v17  ;;  %1430 = vmatprep.subr.bf16.mxu0 %v3950_v18  ;;  %v4517_v17 = vld [vmem:[%s4429_s3 + $0x48] sm:$0xff]   ;;  %v4524_v18 = vld [vmem:[%s4429_s3 + $0x50] sm:$0xff]  }
  0x7b   : > { %1077 = vmatmul.mubr.bf16.vlgmr.msra.gmra.mrb[0].mxu0 %v4442_v19  ;;  %1197 = vmatmul.mubr.bf16.vlgmr.msra.gmra.mrb[0].mxu1 %v4445_v20 }
  0x7c   : > { %1238 = vmatpush1.bf16.msra.mxu1 %v3945_v21  ;;  %1431 = vmatpush1.bf16.msra.mxu0 %v3948_v22  ;;  %v4531_v21 = vld [vmem:[%s4429_s3 + $0x58] sm:$0xff]  }
  0x7d   : > { %1239 = vmatprep.subr.bf16.mxu1 %v3953_v23  ;;  %1086 = vmatprep.mubr.bf16.mxu0 %v5509_v0  ;;  %v4019_v22 = vld [vmem:[#allocation5 + $0x20] ss:$60 sps:$4 sm:$0xff]  }
  0x7e   : > { %1206 = vmatprep.mubr.bf16.mxu1 %v5509_v0  ;;  %1432 = vmatprep.subr.bf16.mxu0 %v3964_v24  ;;  %v4027_v23 = vld [vmem:[#allocation5 + $0x9c] ss:$60 sps:$4 sm:$0xff]  }
  0x7f   : > { %v4025_v24 = vld [vmem:[#allocation5 + $0x98] ss:$60 sps:$4 sm:$0xff]  }
  0x80   : > { %1240 = vmatpush1.bf16.msra.mxu1 %v3951_v25  ;;  %1433 = vmatpush1.bf16.msra.mxu0 %v3962_v26  ;;  %v4033_v25 = vld [vmem:[#allocation5 + $0x114] ss:$60 sps:$4 sm:$0xff]  }
  0x81   : > { %1241 = vmatprep.subr.bf16.mxu1 %v3958_v27  ;;  %1434 = vmatprep.subr.bf16.mxu0 %v3980_v28  ;;  %v4031_v26 = vld [vmem:[#allocation5 + $0x110] ss:$60 sps:$4 sm:$0xff]   ;;  %v4037_v28 = vld [vmem:[#allocation5 + $0x188] ss:$60 sps:$4 sm:$0xff]  }
  0x82   : > { %v4039_v27 = vld [vmem:[#allocation5 + $0x18c] ss:$60 sps:$4 sm:$0xff]  }
  0x83   : > { %1087 = vmatmul.mubr.bf16.gmra.mrb[4].mxu0 %v4452_v29  ;;  %1207 = vmatmul.mubr.bf16.gmra.mrb[4].mxu1 %v4455_v30 }
  0x84   : > { %1242 = vmatpush1.bf16.msra.mxu1 %v3956_v31  ;;  %1096 = vmatprep.mubr.bf16.mxu0 %v5509_v0  ;;  %v4045_v31 = vld [vmem:[#allocation5 + $0x204] ss:$60 sps:$4 sm:$0xff]  }
  0x85   : > { %1243 = vmatprep.subr.bf16.mxu1 %v3961_v32  ;;  %1216 = vmatprep.mubr.bf16.mxu1 %v5509_v0  ;;  %v4043_v32 = vld [vmem:[#allocation5 + $0x200] ss:$60 sps:$4 sm:$0xff]  }
  0x86   : > { %1435 = vmatpush1.bf16.msra.mxu0 %v3978_v33  ;;  %v4051_v33 = vld [vmem:[#allocation5 + $0x27c] ss:$60 sps:$4 sm:$0xff]  }
  0x87   : > { %1436 = vmatprep.subr.bf16.mxu0 %v3990_v34  ;;  %v4049_v34 = vld [vmem:[#allocation5 + $0x278] ss:$60 sps:$4 sm:$0xff]  }
  0x88   : > { %1244 = vmatpush1.bf16.msra.mxu1 %v3959_v35  ;;  %v4057_v35 = vld [vmem:[#allocation5 + $0x2f4] ss:$60 sps:$4 sm:$0xff]  }
  0x89   : > { %1245 = vmatprep.subr.bf16.mxu1 %v3969_v37  ;;  %v4055_v37 = vld [vmem:[#allocation5 + $0x2f0] ss:$60 sps:$4 sm:$0xff]  }
  0x8a   : > { %1437 = vmatpush1.bf16.msra.mxu0 %v3988_v38  ;;  %v4063_v38 = vld [vmem:[#allocation5 + $0x36c] ss:$60 sps:$4 sm:$0xff]  }
  0x8b   : > { %1097 = vmatmul.mubr.bf16.gmra.mrb[8].mxu0 %v4462_v36  ;;  %1217 = vmatmul.mubr.bf16.gmra.mrb[8].mxu1 %v4465_v39 }
  0x8c   : > { %1246 = vmatpush1.bf16.msra.mxu1 %v3967_v40  ;;  %1106 = vmatprep.mubr.bf16.mxu0 %v5509_v0  ;;  %v4061_v40 = vld [vmem:[#allocation5 + $0x368] ss:$60 sps:$4 sm:$0xff]  }
  0x8d   : > { %1247 = vmatprep.subr.bf16.mxu1 %v3972_v41  ;;  %1226 = vmatprep.mubr.bf16.mxu1 %v5509_v0  ;;  %v4069_v41 = vld [vmem:[#allocation5 + $0x34] ss:$60 sps:$4 sm:$0xff]  }
  0x8e   : > { %1438 = vmatprep.subr.bf16.mxu0 %v3995_v42  ;;  %v4046_v42 = vld [vmem:[#allocation5 + $0x28] ss:$60 sps:$4 sm:$0xff]  }
  0x8f   : > { %1439 = vmatpush1.bf16.msra.mxu0 %v3993_v44  ;;  %v4052_v44 = vld [vmem:[#allocation5 + $0xa0] ss:$60 sps:$4 sm:$0xff]  }
  0x90   : > { %1248 = vmatpush1.bf16.msra.mxu1 %v3970_v43  ;;  %1440 = vmatprep.subr.bf16.mxu0 %v4002_v45  ;;  %v4054_v43 = vld [vmem:[#allocation5 + $0xa4] ss:$60 sps:$4 sm:$0xff]   ;;  %v4060_v45 = vld [vmem:[#allocation5 + $0x11c] ss:$60 sps:$4 sm:$0xff]  }
  0x91   : > { %1249 = vmatprep.subr.bf16.mxu1 %v3977_v46  ;;  %v4058_v46 = vld [vmem:[#allocation5 + $0x118] ss:$60 sps:$4 sm:$0xff]  }
  0x93   : > { %1107 = vmatmul.mubr.bf16.gmra.mrb[12].mxu0 %v4472_v47  ;;  %1227 = vmatmul.mubr.bf16.gmra.mrb[12].mxu1 %v4475_v48 }
  0x94   : > { %1250 = vmatpush1.bf16.msra.mxu1 %v3975_v49  ;;  %1116 = vmatprep.mubr.bf16.mxu0 %v5509_v0  ;;  %v4066_v49 = vld [vmem:[#allocation5 + $0x194] ss:$60 sps:$4 sm:$0xff]  }
  0x95   : > { %1251 = vmatprep.subr.bf16.mxu1 %v3983_v50  ;;  %1269 = vmatprep.mubr.bf16.mxu1 %v5509_v0  ;;  %v4064_v50 = vld [vmem:[#allocation5 + $0x190] ss:$60 sps:$4 sm:$0xff]  }
  0x96   : > { %1441 = vmatpush1.bf16.msra.mxu0 %v4000_v51  ;;  %v4072_v51 = vld [vmem:[#allocation5 + $0x20c] ss:$60 sps:$4 sm:$0xff]  }
  0x97   : > { %1442 = vmatprep.subr.bf16.mxu0 %v4010_v52  ;;  %v4070_v52 = vld [vmem:[#allocation5 + $0x208] ss:$60 sps:$4 sm:$0xff]  }
  0x98   : > { %1252 = vmatpush1.bf16.msra.mxu1 %v3981_v53  ;;  %v4078_v53 = vld [vmem:[#allocation5 + $0x284] ss:$60 sps:$4 sm:$0xff]  }
  0x99   : > { %1623 = vmatprep.subr.bf16.mxu1 %v3987_v54  ;;  %v4076_v54 = vld [vmem:[#allocation5 + $0x280] ss:$60 sps:$4 sm:$0xff]  }
  0x9a   : > { %1443 = vmatpush1.bf16.msra.mxu0 %v4008_v55  ;;  %v4084_v55 = vld [vmem:[#allocation5 + $0x2fc] ss:$60 sps:$4 sm:$0xff]  }
  0x9b   : > { %1117 = vmatmul.mubr.bf16.gmra.mrb[16].mxu0 %v4482_v56  ;;  %1270 = vmatmul.mubr.bf16.vlgmr.msra.gmra.mrb[16].mxu1 %v4442_v19 }
  0x9c   : > { %1624 = vmatpush1.bf16.msra.mxu1 %v3985_v57  ;;  %1126 = vmatprep.mubr.bf16.mxu0 %v5509_v0  ;;  %v4082_v57 = vld [vmem:[#allocation5 + $0x2f8] ss:$60 sps:$4 sm:$0xff]  }
  0x9d   : > { %1279 = vmatprep.mubr.bf16.mxu1 %v5509_v0  ;;  %1625 = vmatprep.subr.bf16.mxu1 %v3998_v58  ;;  %v4090_v58 = vld [vmem:[#allocation5 + $0x374] ss:$60 sps:$4 sm:$0xff]  }
  0x9e   : > { %1444 = vmatprep.subr.bf16.mxu0 %v4017_v59  ;;  %v4088_v59 = vld [vmem:[#allocation5 + $0x370] ss:$60 sps:$4 sm:$0xff]  }
  0x9f   : > { %1445 = vmatpush1.bf16.msra.mxu0 %v4015_v62 }
  0xa0   : > { %1626 = vmatpush1.bf16.msra.mxu1 %v3996_v60  ;;  %1816 = vmatprep.subr.bf16.mxu0 %v4021_v63  ;;  %v4585_v60 = vld [vmem:[#allocation5 + $0x38] ss:$60 sps:$4 sm:$0xff]  }
  0xa1   : > { %1627 = vmatprep.subr.bf16.mxu1 %v4006_v61 }
  0xa3   : > { %1127 = vmatmul.mubr.bf16.gmra.mrb[20].mxu0 %v4489_v1  ;;  %1280 = vmatmul.mubr.bf16.gmra.mrb[20].mxu1 %v4452_v29 }
  0xa4   : > { %1136 = vmatprep.mubr.bf16.mxu0 %v5509_v0  ;;  %1289 = vmatprep.mubr.bf16.mxu1 %v5509_v0 }
  0xa5   : > { %1628 = vmatpush1.bf16.msra.mxu1 %v4004_v2 }
  0xa6   : > { %1629 = vmatprep.subr.bf16.mxu1 %v4014_v3 }
  0xa9   : > { %1630 = vmatpush1.bf16.msra.mxu1 %v4012_v4 }
  0xaa   : > { %1631 = vmatprep.subr.bf16.mxu1 %v4024_v5 }
  0xab   : > { %1137 = vmatmul.mubr.bf16.gmra.mrb[24].mxu0 %v4496_v6  ;;  %1290 = vmatmul.mubr.bf16.gmra.mrb[24].mxu1 %v4462_v36 }
  0xac   : > { %1146 = vmatprep.mubr.bf16.mxu0 %v5509_v0  ;;  %1299 = vmatprep.mubr.bf16.mxu1 %v5509_v0 }
  0xad   : > { %1632 = vmatpush1.bf16.msra.mxu1 %v4022_v7 }
  0xae   : > { %1633 = vmatprep.subr.bf16.mxu1 %v4030_v8 }
  0xb1   : > { %1634 = vmatpush1.bf16.msra.mxu1 %v4028_v9 }
  0xb2   : > { %1635 = vmatprep.subr.bf16.mxu1 %v4036_v10 }
  0xb3   : > { %1147 = vmatmul.mubr.bf16.gmra.mrb[28].mxu0 %v4503_v11  ;;  %1300 = vmatmul.mubr.bf16.gmra.mrb[28].mxu1 %v4472_v47 }
  0xb4   : > { %1156 = vmatprep.mubr.bf16.mxu0 %v5509_v0  ;;  %1309 = vmatprep.mubr.bf16.mxu1 %v5509_v0 }
  0xb5   : > { %1636 = vmatpush1.bf16.msra.mxu1 %v4034_v12 }
  0xb6   : > { %1637 = vmatprep.subr.bf16.mxu1 %v4042_v13 }
  0xb9   : > { %1638 = vmatpush1.bf16.msra.mxu1 %v4040_v14 }
  0xba   : > { %2009 = vmatprep.subr.bf16.mxu1 %v4048_v15 }
  0xbb   : > { %1157 = vmatmul.mubr.bf16.gmra.mrb[32].mxu0 %v4510_v16  ;;  %1310 = vmatmul.mubr.bf16.gmra.mrb[32].mxu1 %v4482_v56 }
  0xbc   : > { %1166 = vmatprep.mubr.bf16.mxu0 %v5509_v0  ;;  %1319 = vmatprep.mubr.bf16.mxu1 %v5509_v0 }
  0xc3   : > { %1167 = vmatmul.mubr.bf16.gmra.mrb[36].mxu0 %v4517_v17  ;;  %1320 = vmatmul.mubr.bf16.gmra.mrb[36].mxu1 %v4489_v1 }
  0xc4   : > { %1176 = vmatprep.mubr.bf16.mxu0 %v5509_v0  ;;  %1329 = vmatprep.mubr.bf16.mxu1 %v5509_v0 }
  0xcb   : > { %1177 = vmatmul.mubr.bf16.gmra.mrb[40].mxu0 %v4524_v18  ;;  %1330 = vmatmul.mubr.bf16.gmra.mrb[40].mxu1 %v4496_v6 }
  0xcc   : > { %1186 = vmatprep.mubr.bf16.mxu0 %v5509_v0  ;;  %1339 = vmatprep.mubr.bf16.mxu1 %v5509_v0 }
  0xd3   : > { %1187 = vmatmul.mubr.bf16.gmra.mrb[44].mxu0 %v4531_v21  ;;  %1340 = vmatmul.mubr.bf16.gmra.mrb[44].mxu1 %v4503_v11 }
  0xd4   : > { %1349 = vmatprep.mubr.bf16.mxu1 %v5509_v0  ;;  %1462 = vmatprep.mubr.bf16.mxu0 %v5509_v0 }
  0xdb   : > { %1350 = vmatmul.mubr.bf16.gmra.mrb[48].mxu1 %v4510_v16  ;;  %1463 = vmatmul.mubr.bf16.vlgmr.msra.gmra.mrb[48].mxu0 %v4442_v19 }
  0xdc   : > { %1817 = vmatpush1.bf16.msra.mxu0 %v4019_v22  ;;  %1359 = vmatprep.mubr.bf16.mxu1 %v5509_v0 }
  0xdd   : > { %1472 = vmatprep.mubr.bf16.mxu0 %v5509_v0  ;;  %1818 = vmatprep.subr.bf16.mxu0 %v4027_v23 }
  0xe0   : > { %1819 = vmatpush1.bf16.msra.mxu0 %v4025_v24 }
  0xe1   : > { %1820 = vmatprep.subr.bf16.mxu0 %v4033_v25 }
  0xe3   : > { %1360 = vmatmul.mubr.bf16.gmra.mrb[52].mxu1 %v4517_v17  ;;  %1473 = vmatmul.mubr.bf16.gmra.mrb[52].mxu0 %v4452_v29 }
  0xe4   : > { %1369 = vmatprep.mubr.bf16.mxu1 %v5509_v0  ;;  %1482 = vmatprep.mubr.bf16.mxu0 %v5509_v0 }
  0xe5   : > { %1821 = vmatpush1.bf16.msra.mxu0 %v4031_v26 }
  0xe6   : > { %1822 = vmatprep.subr.bf16.mxu0 %v4039_v27 }
  0xe9   : > { %1823 = vmatpush1.bf16.msra.mxu0 %v4037_v28 }
  0xea   : > { %1824 = vmatprep.subr.bf16.mxu0 %v4045_v31 }
  0xeb   : > { %1370 = vmatmul.mubr.bf16.gmra.mrb[56].mxu1 %v4524_v18  ;;  %1483 = vmatmul.mubr.bf16.gmra.mrb[56].mxu0 %v4462_v36 }
  0xec   : > { %1379 = vmatprep.mubr.bf16.mxu1 %v5509_v0  ;;  %1492 = vmatprep.mubr.bf16.mxu0 %v5509_v0 }
  0xed   : > { %1825 = vmatpush1.bf16.msra.mxu0 %v4043_v32 }
  0xee   : > { %1826 = vmatprep.subr.bf16.mxu0 %v4051_v33 }
  0xf1   : > { %1827 = vmatpush1.bf16.msra.mxu0 %v4049_v34 }
  0xf2   : > { %1828 = vmatprep.subr.bf16.mxu0 %v4057_v35  ;;  %v4067_v35 = vld [vmem:[#allocation5 + $0x30] ss:$60 sps:$4 sm:$0xff]  }
  0xf3   : > { %1380 = vmatmul.mubr.bf16.gmra.mrb[60].mxu1 %v4531_v21  ;;  %1493 = vmatmul.mubr.bf16.gmra.mrb[60].mxu0 %v4472_v47 }
  0xf4   : > { %1389 = vmatprep.mubr.bf16.mxu1 %v5509_v0  ;;  %1502 = vmatprep.mubr.bf16.mxu0 %v5509_v0 }
  0xf5   : > { %1829 = vmatpush1.bf16.msra.mxu0 %v4055_v37 }
  0xf6   : > { %1830 = vmatprep.subr.bf16.mxu0 %v4063_v38 }
  0xf9   : > { %1831 = vmatpush1.bf16.msra.mxu0 %v4061_v40 }
  0xfa   : > { %2202 = vmatprep.subr.bf16.mxu0 %v4069_v41 }
  0xfb   : > { %1390 = vmatmul.mubr.bf16.gmra.mrb[64].mxu1 %v4445_v20  ;;  %1503 = vmatmul.mubr.bf16.gmra.mrb[64].mxu0 %v4482_v56 }
  0xfc   : > { %1399 = vmatprep.mubr.bf16.mxu1 %v5509_v0  ;;  %1512 = vmatprep.mubr.bf16.mxu0 %v5509_v0 }
 0x103   : > { %1400 = vmatmul.mubr.bf16.gmra.mrb[68].mxu1 %v4455_v30  ;;  %1513 = vmatmul.mubr.bf16.gmra.mrb[68].mxu0 %v4489_v1 }
 0x104   : > { %1409 = vmatprep.mubr.bf16.mxu1 %v5509_v0  ;;  %1522 = vmatprep.mubr.bf16.mxu0 %v5509_v0 }
 0x10b   : > { %1410 = vmatmul.mubr.bf16.gmra.mrb[72].mxu1 %v4465_v39  ;;  %1523 = vmatmul.mubr.bf16.gmra.mrb[72].mxu0 %v4496_v6 }
 0x10c   : > { %1419 = vmatprep.mubr.bf16.mxu1 %v5509_v0  ;;  %1532 = vmatprep.mubr.bf16.mxu0 %v5509_v0 }
 0x113   : > { %1420 = vmatmul.mubr.bf16.gmra.mrb[76].mxu1 %v4475_v48  ;;  %1533 = vmatmul.mubr.bf16.gmra.mrb[76].mxu0 %v4503_v11 }
 0x114   : > { %1542 = vmatprep.mubr.bf16.mxu0 %v5509_v0  ;;  %1655 = vmatprep.mubr.bf16.mxu1 %v5509_v0 }
 0x11b   : > { %1543 = vmatmul.mubr.bf16.gmra.mrb[80].mxu0 %v4510_v16  ;;  %1656 = vmatmul.mubr.bf16.vlgmr.msra.gmra.mrb[80].mxu1 %v4442_v19 }
 0x11c   : > { %2010 = vmatpush1.bf16.msra.mxu1 %v4046_v42  ;;  %1552 = vmatprep.mubr.bf16.mxu0 %v5509_v0  ;;  %v4075_v42 = vld [vmem:[#allocation5 + $0xac] ss:$60 sps:$4 sm:$0xff]  }
 0x11d   : > { %1665 = vmatprep.mubr.bf16.mxu1 %v5509_v0  ;;  %2011 = vmatprep.subr.bf16.mxu1 %v4054_v43 }
 0x120   : > { %2012 = vmatpush1.bf16.msra.mxu1 %v4052_v44 }
 0x121   : > { %2013 = vmatprep.subr.bf16.mxu1 %v4060_v45 }
 0x123   : > { %1553 = vmatmul.mubr.bf16.gmra.mrb[84].mxu0 %v4517_v17  ;;  %1666 = vmatmul.mubr.bf16.gmra.mrb[84].mxu1 %v4452_v29 }
 0x124   : > { %1562 = vmatprep.mubr.bf16.mxu0 %v5509_v0  ;;  %1675 = vmatprep.mubr.bf16.mxu1 %v5509_v0 }
 0x125   : > { %2014 = vmatpush1.bf16.msra.mxu1 %v4058_v46 }
 0x126   : > { %2015 = vmatprep.subr.bf16.mxu1 %v4066_v49 }
 0x129   : > { %2016 = vmatpush1.bf16.msra.mxu1 %v4064_v50 }
 0x12a   : > { %2017 = vmatprep.subr.bf16.mxu1 %v4072_v51  ;;  %v4073_v51 = vld [vmem:[#allocation5 + $0xa8] ss:$60 sps:$4 sm:$0xff]  }
 0x12b   : > { %1563 = vmatmul.mubr.bf16.gmra.mrb[88].mxu0 %v4524_v18  ;;  %1676 = vmatmul.mubr.bf16.gmra.mrb[88].mxu1 %v4462_v36 }
 0x12c   : > { %1572 = vmatprep.mubr.bf16.mxu0 %v5509_v0  ;;  %1685 = vmatprep.mubr.bf16.mxu1 %v5509_v0 }
 0x12d   : > { %2018 = vmatpush1.bf16.msra.mxu1 %v4070_v52  ;;  %v4081_v52 = vld [vmem:[#allocation5 + $0x124] ss:$60 sps:$4 sm:$0xff]  }
 0x12e   : > { %2019 = vmatprep.subr.bf16.mxu1 %v4078_v53 }
 0x131   : > { %2020 = vmatpush1.bf16.msra.mxu1 %v4076_v54 }
 0x132   : > { %2021 = vmatprep.subr.bf16.mxu1 %v4084_v55 }
 0x133   : > { %1573 = vmatmul.mubr.bf16.gmra.mrb[92].mxu0 %v4531_v21  ;;  %1686 = vmatmul.mubr.bf16.gmra.mrb[92].mxu1 %v4472_v47 }
 0x134   : > { %1582 = vmatprep.mubr.bf16.mxu0 %v5509_v0  ;;  %1695 = vmatprep.mubr.bf16.mxu1 %v5509_v0 }
 0x135   : > { %2022 = vmatpush1.bf16.msra.mxu1 %v4082_v57 }
 0x136   : > { %2023 = vmatprep.subr.bf16.mxu1 %v4090_v58 }
 0x139   : > { %2024 = vmatpush1.bf16.msra.mxu1 %v4088_v59 }
 0x13a   : > { %3791 = vmatprep.subr.bf16.mxu1 %v4585_v60 }
 0x13b   : > { %1583 = vmatmul.mubr.bf16.gmra.mrb[96].mxu0 %v4445_v20  ;;  %1696 = vmatmul.mubr.bf16.gmra.mrb[96].mxu1 %v4482_v56 }
 0x13c   : > { %1592 = vmatprep.mubr.bf16.mxu0 %v5509_v0  ;;  %1705 = vmatprep.mubr.bf16.mxu1 %v5509_v0 }
 0x143   : > { %1593 = vmatmul.mubr.bf16.gmra.mrb[100].mxu0 %v4455_v30  ;;  %1706 = vmatmul.mubr.bf16.gmra.mrb[100].mxu1 %v4489_v1 }
 0x144   : > { %1602 = vmatprep.mubr.bf16.mxu0 %v5509_v0  ;;  %1715 = vmatprep.mubr.bf16.mxu1 %v5509_v0 }
 0x14b   : > { %1603 = vmatmul.mubr.bf16.gmra.mrb[104].mxu0 %v4465_v39  ;;  %1716 = vmatmul.mubr.bf16.gmra.mrb[104].mxu1 %v4496_v6 }
 0x14c   : > { %1612 = vmatprep.mubr.bf16.mxu0 %v5509_v0  ;;  %1725 = vmatprep.mubr.bf16.mxu1 %v5509_v0 }
 0x14e   : > { %v1078_v20 = vpop.f32.mrb[0].mxu0  ;;  %v1198_v61 = vpop.f32.mrb[0].mxu1 }
 0x14f   : > { %v2556_v62 = vmax.f32 %v1078_v20, 0.0  ;;  %v1080_v63 = vpop.f32.mrb[1].mxu0  ;;  %v2916_v2 = vmax.f32 %v1198_v61, 0.0  ;;  %v1200_v30 = vpop.f32.mrb[1].mxu1 }
 0x150   : > { %v2557_v3 = vmax.f32 %v1080_v63, 0.0  ;;  %v1082_v4 = vpop.f32.mrb[2].mxu0  ;;  %v2917_v5 = vmax.f32 %v1200_v30, 0.0  ;;  %v1202_v7 = vpop.f32.mrb[2].mxu1 }
 0x151   : > { %v2571_v8 = vmax.f32 %v1082_v4, 0.0  ;;  %v1084_v9 = vpop.f32.mrb[3].mxu0  ;;  %v2931_v10 = vmax.f32 %v1202_v7, 0.0  ;;  %v1204_v39 = vpop.f32.mrb[3].mxu1  ;;  %v4079_v4 = vld [vmem:[#allocation5 + $0x120] ss:$60 sps:$4 sm:$0xff]  }
 0x152   : > { %v4600_v12 = vmax.f32 %v2556_v62, %v2557_v3  ;;  %v4602_v13 = vmax.f32 %v2916_v2, %v2917_v5  ;;  %v2572_v14 = vmax.f32 %v1084_v9, 0.0  ;;  %v2932_v15 = vmax.f32 %v1204_v39, 0.0 }
 0x153   : > { %1613 = vmatmul.mubr.bf16.gmra.mrb[108].mxu0 %v4475_v48  ;;  %1726 = vmatmul.mubr.bf16.gmra.mrb[108].mxu1 %v4503_v11 }
 0x154   : > { %v4606_v22 = vmax.f32 %v2571_v8, %v2572_v14  ;;  %v4608_v23 = vmax.f32 %v2931_v10, %v2932_v15  ;;  %1735 = vmatprep.mubr.bf16.mxu1 %v5509_v0  ;;  %1848 = vmatprep.mubr.bf16.mxu0 %v5509_v0  ;;  %v4087_v10 = vld [vmem:[#allocation5 + $0x19c] ss:$60 sps:$4 sm:$0xff]  }
 0x155   : > { %v4085_v15 = vld [vmem:[#allocation5 + $0x198] ss:$60 sps:$4 sm:$0xff]  }
 0x156   : > { %v1088_v24 = vpop.f32.mrb[4].mxu0  ;;  %v1208_v25 = vpop.f32.mrb[4].mxu1 }
 0x157   : > { %v2586_v26 = vmax.f32 %v1088_v24, 0.0  ;;  %v1090_v27 = vpop.f32.mrb[5].mxu0  ;;  %v2946_v28 = vmax.f32 %v1208_v25, 0.0  ;;  %v1210_v31 = vpop.f32.mrb[5].mxu1 }
 0x158   : > { %v2587_v32 = vmax.f32 %v1090_v27, 0.0  ;;  %v1092_v33 = vpop.f32.mrb[6].mxu0  ;;  %v2947_v34 = vmax.f32 %v1210_v31, 0.0  ;;  %v1212_v48 = vpop.f32.mrb[6].mxu1 }
 0x159   : > { %v2601_v37 = vmax.f32 %v1092_v33, 0.0  ;;  %v1094_v38 = vpop.f32.mrb[7].mxu0  ;;  %v2961_v40 = vmax.f32 %v1212_v48, 0.0  ;;  %v1214_v41 = vpop.f32.mrb[7].mxu1 }
 0x15a   : > { %v4612_v43 = vmax.f32 %v2586_v26, %v2587_v32  ;;  %v4614_v44 = vmax.f32 %v2946_v28, %v2947_v34  ;;  %v2602_v45 = vmax.f32 %v1094_v38, 0.0  ;;  %v2962_v46 = vmax.f32 %v1214_v41, 0.0  ;;  %v4093_v26 = vld [vmem:[#allocation5 + $0x214] ss:$60 sps:$4 sm:$0xff]  }
 0x15b   : > { %1736 = vmatmul.mubr.bf16.gmra.mrb[112].mxu1 %v4510_v16  ;;  %1849 = vmatmul.mubr.bf16.vlgmr.msra.gmra.mrb[112].mxu0 %v4442_v19  ;;  %v4091_v41 = vld [vmem:[#allocation5 + $0x210] ss:$60 sps:$4 sm:$0xff]  }
 0x15c   : > { %v4618_v49 = vmax.f32 %v2601_v37, %v2602_v45  ;;  %v4620_v50 = vmax.f32 %v2961_v40, %v2962_v46  ;;  %2203 = vmatpush1.bf16.msra.mxu0 %v4067_v35  ;;  %1745 = vmatprep.mubr.bf16.mxu1 %v5509_v0 }
 0x15d   : > { %1858 = vmatprep.mubr.bf16.mxu0 %v5509_v0  ;;  %2204 = vmatprep.subr.bf16.mxu0 %v4075_v42 }
 0x15e   : > { %v1098_v53 = vpop.f32.mrb[8].mxu0  ;;  %v1218_v54 = vpop.f32.mrb[8].mxu1 }
 0x15f   : > { %v2616_v55 = vmax.f32 %v1098_v53, 0.0  ;;  %v1100_v57 = vpop.f32.mrb[9].mxu0  ;;  %v2976_v58 = vmax.f32 %v1218_v54, 0.0  ;;  %v1220_v59 = vpop.f32.mrb[9].mxu1 }
 0x160   : > { %v2617_v20 = vmax.f32 %v1100_v57, 0.0  ;;  %v1102_v19 = vpop.f32.mrb[10].mxu0  ;;  %v2977_v61 = vmax.f32 %v1220_v59, 0.0  ;;  %v1222_v62 = vpop.f32.mrb[10].mxu1  ;;  %2205 = vmatpush1.bf16.msra.mxu0 %v4073_v51  ;;  %v4101_v59 = vld [vmem:[#allocation5 + $0x304] ss:$60 sps:$4 sm:$0xff]  }
 0x161   : > { %v2631_v63 = vmax.f32 %v1102_v19, 0.0  ;;  %v1104_v2 = vpop.f32.mrb[11].mxu0  ;;  %v2991_v30 = vmax.f32 %v1222_v62, 0.0  ;;  %v1224_v3 = vpop.f32.mrb[11].mxu1  ;;  %2206 = vmatprep.subr.bf16.mxu0 %v4081_v52  ;;  %v4097_v52 = vld [vmem:[#allocation5 + $0x28c] ss:$60 sps:$4 sm:$0xff]  }
 0x162   : > { %v4624_v5 = vmax.f32 %v2616_v55, %v2617_v20  ;;  %v4626_v7 = vmax.f32 %v2976_v58, %v2977_v61  ;;  %v2632_v8 = vmax.f32 %v1104_v2, 0.0  ;;  %v2992_v9 = vmax.f32 %v1224_v3, 0.0  ;;  %v4095_v55 = vld [vmem:[#allocation5 + $0x288] ss:$60 sps:$4 sm:$0xff]  }
 0x163   : > { %1746 = vmatmul.mubr.bf16.gmra.mrb[116].mxu1 %v4517_v17  ;;  %1859 = vmatmul.mubr.bf16.gmra.mrb[116].mxu0 %v4452_v29 }
 0x164   : > { %v4630_v39 = vmax.f32 %v2631_v63, %v2632_v8  ;;  %v4632_v14 = vmax.f32 %v2991_v30, %v2992_v9  ;;  %1755 = vmatprep.mubr.bf16.mxu1 %v5509_v0  ;;  %1868 = vmatprep.mubr.bf16.mxu0 %v5509_v0 }
 0x165   : > { %2207 = vmatpush1.bf16.msra.mxu0 %v4079_v4 }
 0x166   : > { %v1108_v24 = vpop.f32.mrb[12].mxu0  ;;  %v1228_v25 = vpop.f32.mrb[12].mxu1  ;;  %2208 = vmatprep.subr.bf16.mxu0 %v4087_v10 }
 0x167   : > { %v2646_v27 = vmax.f32 %v1108_v24, 0.0  ;;  %v1110_v28 = vpop.f32.mrb[13].mxu0  ;;  %v3006_v31 = vmax.f32 %v1228_v25, 0.0  ;;  %v1230_v32 = vpop.f32.mrb[13].mxu1 }
 0x168   : > { %v2647_v33 = vmax.f32 %v1110_v28, 0.0  ;;  %v1112_v29 = vpop.f32.mrb[14].mxu0  ;;  %v3007_v34 = vmax.f32 %v1230_v32, 0.0  ;;  %v1232_v48 = vpop.f32.mrb[14].mxu1 }
 0x169   : > { %v2661_v35 = vmax.f32 %v1112_v29, 0.0  ;;  %v1114_v37 = vpop.f32.mrb[15].mxu0  ;;  %v3021_v38 = vmax.f32 %v1232_v48, 0.0  ;;  %v1234_v40 = vpop.f32.mrb[15].mxu1  ;;  %2209 = vmatpush1.bf16.msra.mxu0 %v4085_v15  ;;  %v4099_v15 = vld [vmem:[#allocation5 + $0x300] ss:$60 sps:$4 sm:$0xff]  }
 0x16a   : > { %v4636_v42 = vmax.f32 %v2646_v27, %v2647_v33  ;;  %v4638_v45 = vmax.f32 %v3006_v31, %v3007_v34  ;;  %v2662_v46 = vmax.f32 %v1114_v37, 0.0  ;;  %v3022_v51 = vmax.f32 %v1234_v40, 0.0  ;;  %2210 = vmatprep.subr.bf16.mxu0 %v4093_v26  ;;  %v4105_v27 = vld [vmem:[#allocation5 + $0x37c] ss:$60 sps:$4 sm:$0xff]  }
 0x16b   : > { %1756 = vmatmul.mubr.bf16.gmra.mrb[120].mxu1 %v4524_v18  ;;  %1869 = vmatmul.mubr.bf16.gmra.mrb[120].mxu0 %v4462_v36  ;;  %v4103_v33 = vld [vmem:[#allocation5 + $0x378] ss:$60 sps:$4 sm:$0xff]  }
 0x16c   : > { %v4642_v53 = vmax.f32 %v2661_v35, %v2662_v46  ;;  %v4644_v54 = vmax.f32 %v3021_v38, %v3022_v51  ;;  %1765 = vmatprep.mubr.bf16.mxu1 %v5509_v0  ;;  %1878 = vmatprep.mubr.bf16.mxu0 %v5509_v0 }
 0x16d   : > { %2211 = vmatpush1.bf16.msra.mxu0 %v4091_v41 }
 0x16e   : > { %v1118_v57 = vpop.f32.mrb[16].mxu0  ;;  %v1271_v58 = vpop.f32.mrb[16].mxu1  ;;  %2212 = vmatprep.subr.bf16.mxu0 %v4097_v52 }
 0x16f   : > { %v2676_v20 = vmax.f32 %v1118_v57, 0.0  ;;  %v2558_v19 = vmax.f32 %v1271_v58, 0.0  ;;  %v1120_v61 = vpop.f32.mrb[17].mxu0  ;;  %v1273_v62 = vpop.f32.mrb[17].mxu1 }
 0x170   : > { %v2677_v63 = vmax.f32 %v1120_v61, 0.0  ;;  %v2559_v36 = vmax.f32 %v1273_v62, 0.0  ;;  %v1122_v2 = vpop.f32.mrb[18].mxu0  ;;  %v1275_v30 = vpop.f32.mrb[18].mxu1  ;;  %v4669_v62 = vld [vmem:[%s4429_s3 + $0x60] sm:$0xff]  }
 0x171   : > { %v3068_v3 = vmax.f32 %v4600_v12, %v2558_v19  ;;  %v2691_v4 = vmax.f32 %v1122_v2, 0.0  ;;  %v2573_v8 = vmax.f32 %v1275_v30, 0.0  ;;  %v1124_v9 = vpop.f32.mrb[19].mxu0  ;;  %v1277_v10 = vpop.f32.mrb[19].mxu1  ;;  %2213 = vmatpush1.bf16.msra.mxu0 %v4095_v55 }
 0x172   : > { %v4649_v24 = vmax.f32 %v2676_v20, %v2677_v63  ;;  %v2692_v25 = vmax.f32 %v1124_v9, 0.0  ;;  %v2574_v26 = vmax.f32 %v1277_v10, 0.0  ;;  %2214 = vmatprep.subr.bf16.mxu0 %v4101_v59 }
 0x173   : > { %v4651_v28 = vmax.f32 %v3068_v3, %v2559_v36  ;;  %v3069_v31 = vmax.f32 %v4606_v22, %v2573_v8  ;;  %1766 = vmatmul.mubr.bf16.gmra.mrb[124].mxu1 %v4531_v21  ;;  %1879 = vmatmul.mubr.bf16.gmra.mrb[124].mxu0 %v4472_v47 }
 0x174   : > { %v4656_v12 = vmax.f32 %v2691_v4, %v2692_v25  ;;  %1775 = vmatprep.mubr.bf16.mxu1 %v5509_v0  ;;  %1888 = vmatprep.mubr.bf16.mxu0 %v5509_v0 }
 0x175   : > { %v4660_v32 = vmax.f32 %v3069_v31, %v2574_v26  ;;  %2215 = vmatpush1.bf16.msra.mxu0 %v4099_v15 }
 0x176   : > { %v1128_v29 = vpop.f32.mrb[20].mxu0  ;;  %v1281_v34 = vpop.f32.mrb[20].mxu1  ;;  %2216 = vmatprep.subr.bf16.mxu0 %v4105_v27 }
 0x177   : > { %v2706_v48 = vmax.f32 %v1128_v29, 0.0  ;;  %v2588_v35 = vmax.f32 %v1281_v34, 0.0  ;;  %v1130_v22 = vpop.f32.mrb[21].mxu0  ;;  %v1283_v37 = vpop.f32.mrb[21].mxu1 }
 0x178   : > { %v2707_v38 = vmax.f32 %v1130_v22, 0.0  ;;  %v2589_v47 = vmax.f32 %v1283_v37, 0.0  ;;  %v1132_v40 = vpop.f32.mrb[22].mxu0  ;;  %v1285_v41 = vpop.f32.mrb[22].mxu1  ;;  %v4686_v22 = vld [vmem:[%s4429_s3 + $0x68] sm:$0xff]  }
 0x179   : > { %v3070_v46 = vmax.f32 %v4612_v43, %v2588_v35  ;;  %v2721_v51 = vmax.f32 %v1132_v40, 0.0  ;;  %v2603_v52 = vmax.f32 %v1285_v41, 0.0  ;;  %v1134_v55 = vpop.f32.mrb[23].mxu0  ;;  %v1287_v57 = vpop.f32.mrb[23].mxu1  ;;  %2217 = vmatpush1.bf16.msra.mxu0 %v4103_v33 }
 0x17a   : > { %v4663_v58 = vmax.f32 %v2706_v48, %v2707_v38  ;;  %v2722_v59 = vmax.f32 %v1134_v55, 0.0  ;;  %v2604_v20 = vmax.f32 %v1287_v57, 0.0 }
 0x17b   : > { %v4665_v19 = vmax.f32 %v3070_v46, %v2589_v47  ;;  %v3071_v61 = vmax.f32 %v4618_v49, %v2603_v52  ;;  %1776 = vmatmul.mubr.bf16.gmra.mrb[128].mxu1 %v4669_v62  ;;  %1889 = vmatmul.mubr.bf16.gmra.mrb[128].mxu0 %v4482_v56 }
 0x17c   : > { %v4673_v43 = vmax.f32 %v2721_v51, %v2722_v59  ;;  %1785 = vmatprep.mubr.bf16.mxu1 %v5509_v0  ;;  %1898 = vmatprep.mubr.bf16.mxu0 %v5509_v0 }
 0x17d   : > { %v4677_v63 = vmax.f32 %v3071_v61, %v2604_v20 }
 0x17e   : > { %v1138_v36 = vpop.f32.mrb[24].mxu0  ;;  %v1291_v2 = vpop.f32.mrb[24].mxu1 }
 0x17f   : > { %v2736_v30 = vmax.f32 %v1138_v36, 0.0  ;;  %v2618_v3 = vmax.f32 %v1291_v2, 0.0  ;;  %v1140_v4 = vpop.f32.mrb[25].mxu0  ;;  %v1293_v49 = vpop.f32.mrb[25].mxu1 }
 0x180   : > { %v2737_v8 = vmax.f32 %v1140_v4, 0.0  ;;  %v2619_v9 = vmax.f32 %v1293_v49, 0.0  ;;  %v1142_v10 = vpop.f32.mrb[26].mxu0  ;;  %v1295_v15 = vpop.f32.mrb[26].mxu1 }
 0x181   : > { %v3072_v56 = vmax.f32 %v4624_v5, %v2618_v3  ;;  %v2751_v25 = vmax.f32 %v1142_v10, 0.0  ;;  %v2633_v26 = vmax.f32 %v1295_v15, 0.0  ;;  %v1144_v27 = vpop.f32.mrb[27].mxu0  ;;  %v1297_v31 = vpop.f32.mrb[27].mxu1 }
 0x182   : > { %v4680_v33 = vmax.f32 %v2736_v30, %v2737_v8  ;;  %v2752_v29 = vmax.f32 %v1144_v27, 0.0  ;;  %v2634_v34 = vmax.f32 %v1297_v31, 0.0  ;;  %v4703_v8 = vld [vmem:[%s4429_s3 + $0x70] sm:$0xff]  }
 0x183   : > { %v4682_v48 = vmax.f32 %v3072_v56, %v2619_v9  ;;  %v3073_v35 = vmax.f32 %v4630_v39, %v2633_v26  ;;  %1786 = vmatmul.mubr.bf16.gmra.mrb[132].mxu1 %v4686_v22  ;;  %1899 = vmatmul.mubr.bf16.gmra.mrb[132].mxu0 %v4489_v1 }
 0x184   : > { %v4690_v37 = vmax.f32 %v2751_v25, %v2752_v29  ;;  %1795 = vmatprep.mubr.bf16.mxu1 %v5509_v0  ;;  %1908 = vmatprep.mubr.bf16.mxu0 %v5509_v0 }
 0x185   : > { %v4694_v5 = vmax.f32 %v3073_v35, %v2634_v34 }
 0x186   : > { %v1148_v38 = vpop.f32.mrb[28].mxu0  ;;  %v1301_v47 = vpop.f32.mrb[28].mxu1 }
 0x187   : > { %v2766_v40 = vmax.f32 %v1148_v38, 0.0  ;;  %v2648_v41 = vmax.f32 %v1301_v47, 0.0  ;;  %v1150_v46 = vpop.f32.mrb[29].mxu0  ;;  %v1303_v39 = vpop.f32.mrb[29].mxu1 }
 0x188   : > { %v2767_v51 = vmax.f32 %v1150_v46, 0.0  ;;  %v2649_v52 = vmax.f32 %v1303_v39, 0.0  ;;  %v1152_v55 = vpop.f32.mrb[30].mxu0  ;;  %v1305_v57 = vpop.f32.mrb[30].mxu1 }
 0x189   : > { %v3074_v1 = vmax.f32 %v4636_v42, %v2648_v41  ;;  %v2781_v59 = vmax.f32 %v1152_v55, 0.0  ;;  %v2663_v20 = vmax.f32 %v1305_v57, 0.0  ;;  %v1154_v61 = vpop.f32.mrb[31].mxu0  ;;  %v1307_v36 = vpop.f32.mrb[31].mxu1  ;;  %v4720_v55 = vld [vmem:[%s4429_s3 + $0x78] sm:$0xff]  }
 0x18a   : > { %v4697_v2 = vmax.f32 %v2766_v40, %v2767_v51  ;;  %v2782_v30 = vmax.f32 %v1154_v61, 0.0  ;;  %v2664_v3 = vmax.f32 %v1307_v36, 0.0 }
 0x18b   : > { %v4699_v4 = vmax.f32 %v3074_v1, %v2649_v52  ;;  %v3075_v49 = vmax.f32 %v4642_v53, %v2663_v20  ;;  %1796 = vmatmul.mubr.bf16.gmra.mrb[136].mxu1 %v4703_v8  ;;  %1909 = vmatmul.mubr.bf16.gmra.mrb[136].mxu0 %v4496_v6 }
 0x18c   : > { %v4707_v9 = vmax.f32 %v2781_v59, %v2782_v30  ;;  %1805 = vmatprep.mubr.bf16.mxu1 %v5509_v0  ;;  %1918 = vmatprep.mubr.bf16.mxu0 %v5509_v0 }
 0x18d   : > { %v4711_v42 = vmax.f32 %v3075_v49, %v2664_v3 }
 0x18e   : > { %v1158_v10 = vpop.f32.mrb[32].mxu0  ;;  %v1311_v15 = vpop.f32.mrb[32].mxu1 }
 0x18f   : > { %v2796_v56 = vmax.f32 %v1158_v10, 0.0  ;;  %v2678_v25 = vmax.f32 %v1311_v15, 0.0  ;;  %v1160_v26 = vpop.f32.mrb[33].mxu0  ;;  %v1313_v53 = vpop.f32.mrb[33].mxu1 }
 0x190   : > { %v2797_v27 = vmax.f32 %v1160_v26, 0.0  ;;  %v2679_v31 = vmax.f32 %v1313_v53, 0.0  ;;  %v1162_v29 = vpop.f32.mrb[34].mxu0  ;;  %v1315_v34 = vpop.f32.mrb[34].mxu1  ;;  %v4098_v53 = vld [vmem:[#allocation5 + $0xb0] ss:$60 sps:$4 sm:$0xff]  }
 0x191   : > { %v3076_v6 = vmax.f32 %v4649_v24, %v2678_v25  ;;  %v2811_v35 = vmax.f32 %v1162_v29, 0.0  ;;  %v2693_v38 = vmax.f32 %v1315_v34, 0.0  ;;  %v1164_v47 = vpop.f32.mrb[35].mxu0  ;;  %v1317_v40 = vpop.f32.mrb[35].mxu1 }
 0x192   : > { %v4714_v41 = vmax.f32 %v2796_v56, %v2797_v27  ;;  %v2812_v46 = vmax.f32 %v1164_v47, 0.0  ;;  %v2694_v39 = vmax.f32 %v1317_v40, 0.0  ;;  %v4102_v47 = vld [vmem:[#allocation5 + $0x128] ss:$60 sps:$4 sm:$0xff]  }
 0x193   : > { %v4716_v51 = vmax.f32 %v3076_v6, %v2679_v31  ;;  %v3077_v52 = vmax.f32 %v4656_v12, %v2693_v38  ;;  %1806 = vmatmul.mubr.bf16.gmra.mrb[140].mxu1 %v4720_v55  ;;  %1919 = vmatmul.mubr.bf16.gmra.mrb[140].mxu0 %v4503_v11 }
 0x194   : > { %v4724_v57 = vmax.f32 %v2811_v35, %v2812_v46  ;;  %1928 = vmatprep.mubr.bf16.mxu0 %v5509_v0  ;;  %2041 = vmatprep.mubr.bf16.mxu1 %v5509_v0  ;;  %v4738_v35 = vld [vmem:[%s4429_s3] sm:$0xff]  }
 0x195   : > { %v4728_v24 = vmax.f32 %v3077_v52, %v2694_v39 }
 0x196   : > { %v1168_v1 = vpop.f32.mrb[36].mxu0  ;;  %v1321_v59 = vpop.f32.mrb[36].mxu1 }
 0x197   : > { %v2826_v20 = vmax.f32 %v1168_v1, 0.0  ;;  %v2708_v61 = vmax.f32 %v1321_v59, 0.0  ;;  %v1170_v36 = vpop.f32.mrb[37].mxu0  ;;  %v1323_v12 = vpop.f32.mrb[37].mxu1 }
 0x198   : > { %v2827_v30 = vmax.f32 %v1170_v36, 0.0  ;;  %v2709_v3 = vmax.f32 %v1323_v12, 0.0  ;;  %v1172_v49 = vpop.f32.mrb[38].mxu0  ;;  %v1325_v10 = vpop.f32.mrb[38].mxu1 }
 0x199   : > { %v3078_v11 = vmax.f32 %v4663_v58, %v2708_v61  ;;  %v2841_v15 = vmax.f32 %v1172_v49, 0.0  ;;  %v2723_v56 = vmax.f32 %v1325_v10, 0.0  ;;  %v1174_v25 = vpop.f32.mrb[39].mxu0  ;;  %v1327_v26 = vpop.f32.mrb[39].mxu1 }
 0x19a   : > { %v4731_v27 = vmax.f32 %v2826_v20, %v2827_v30  ;;  %v2842_v31 = vmax.f32 %v1174_v25, 0.0  ;;  %v2724_v29 = vmax.f32 %v1327_v26, 0.0  ;;  %v4756_v26 = vld [vmem:[%s4429_s3 + $0x8] sm:$0xff]  }
 0x19b   : > { %v4733_v34 = vmax.f32 %v3078_v11, %v2709_v3  ;;  %v3079_v6 = vmax.f32 %v4673_v43, %v2723_v56  ;;  %1929 = vmatmul.mubr.bf16.gmra.mrb[144].mxu0 %v4510_v16  ;;  %2042 = vmatmul.mubr.bf16.vlgmr.msra.gmra.mrb[144].mxu1 %v4738_v35 }
 0x19c   : > { %v4741_v58 = vmax.f32 %v2841_v15, %v2842_v31  ;;  %3792 = vmatpush3.bf16.msra.mxu1 %v4585_v60  ;;  %1938 = vmatprep.mubr.bf16.mxu0 %v5509_v0  ;;  %v4106_v15 = vld [vmem:[#allocation5 + $0x1a0] ss:$60 sps:$4 sm:$0xff]  }
 0x19d   : > { %v4745_v38 = vmax.f32 %v3079_v6, %v2724_v29  ;;  %2051 = vmatprep.mubr.bf16.mxu1 %v5509_v0  ;;  %3793 = vmatprep.subr.bf16.mxu1 %v4098_v53  ;;  %v4107_v6 = vld [vmem:[#allocation5 + $0x218] ss:$60 sps:$4 sm:$0xff]  }
 0x19e   : > { %v1178_v40 = vpop.f32.mrb[40].mxu0  ;;  %v1331_v43 = vpop.f32.mrb[40].mxu1 }
 0x19f   : > { %v2856_v46 = vmax.f32 %v1178_v40, 0.0  ;;  %v2738_v16 = vmax.f32 %v1331_v43, 0.0  ;;  %v1180_v39 = vpop.f32.mrb[41].mxu0  ;;  %v1333_v52 = vpop.f32.mrb[41].mxu1 }
 0x1a0   : > { %v2857_v1 = vmax.f32 %v1180_v39, 0.0  ;;  %v2739_v59 = vmax.f32 %v1333_v52, 0.0  ;;  %v1182_v20 = vpop.f32.mrb[42].mxu0  ;;  %v1335_v61 = vpop.f32.mrb[42].mxu1  ;;  %3794 = vmatpush3.bf16.msra.mxu1 %v4098_v53 }
 0x1a1   : > { %v3080_v60 = vmax.f32 %v4680_v33, %v2738_v16  ;;  %v2871_v36 = vmax.f32 %v1182_v20, 0.0  ;;  %v2753_v12 = vmax.f32 %v1335_v61, 0.0  ;;  %v1184_v30 = vpop.f32.mrb[43].mxu0  ;;  %v1337_v3 = vpop.f32.mrb[43].mxu1  ;;  %3795 = vmatprep.subr.bf16.mxu1 %v4102_v47 }
 0x1a2   : > { %v4749_v49 = vmax.f32 %v2856_v46, %v2857_v1  ;;  %v2872_v10 = vmax.f32 %v1184_v30, 0.0  ;;  %v2754_v11 = vmax.f32 %v1337_v3, 0.0  ;;  %v4108_v30 = vld [vmem:[#allocation5 + $0x290] ss:$60 sps:$4 sm:$0xff]  }
 0x1a3   : > { %v4751_v56 = vmax.f32 %v3080_v60, %v2739_v59  ;;  %v3081_v25 = vmax.f32 %v4690_v37, %v2753_v12  ;;  %1939 = vmatmul.mubr.bf16.gmra.mrb[148].mxu0 %v4517_v17  ;;  %2052 = vmatmul.mubr.bf16.gmra.mrb[148].mxu1 %v4756_v26 }
 0x1a4   : > { %v4759_v33 = vmax.f32 %v2871_v36, %v2872_v10  ;;  %1948 = vmatprep.mubr.bf16.mxu0 %v5509_v0  ;;  %2061 = vmatprep.mubr.bf16.mxu1 %v5509_v0 }
 0x1a5   : > { %v4763_v53 = vmax.f32 %v3081_v25, %v2754_v11  ;;  %3796 = vmatpush3.bf16.msra.mxu1 %v4102_v47  ;;  %v4773_v11 = vld [vmem:[%s4429_s3 + $0x10] sm:$0xff]  }
 0x1a6   : > { %v1188_v31 = vpop.f32.mrb[44].mxu0  ;;  %v1341_v29 = vpop.f32.mrb[44].mxu1  ;;  %3797 = vmatprep.subr.bf16.mxu1 %v4106_v15 }
 0x1a7   : > { %v2886_v37 = vmax.f32 %v1188_v31, 0.0  ;;  %v2768_v40 = vmax.f32 %v1341_v29, 0.0  ;;  %v1190_v17 = vpop.f32.mrb[45].mxu0  ;;  %v1343_v43 = vpop.f32.mrb[45].mxu1  ;;  %v4109_v29 = vld [vmem:[#allocation5 + $0x308] ss:$60 sps:$4 sm:$0xff]  }
 0x1a8   : > { %v2887_v46 = vmax.f32 %v1190_v17, 0.0  ;;  %v2769_v16 = vmax.f32 %v1343_v43, 0.0  ;;  %v1192_v39 = vpop.f32.mrb[46].mxu0  ;;  %v1345_v52 = vpop.f32.mrb[46].mxu1 }
 0x1a9   : > { %v3082_v1 = vmax.f32 %v4697_v2, %v2768_v40  ;;  %v2901_v59 = vmax.f32 %v1192_v39, 0.0  ;;  %v2783_v20 = vmax.f32 %v1345_v52, 0.0  ;;  %v1194_v61 = vpop.f32.mrb[47].mxu0  ;;  %v1347_v60 = vpop.f32.mrb[47].mxu1  ;;  %3798 = vmatpush3.bf16.msra.mxu1 %v4106_v15 }
 0x1aa   : > { %v4766_v47 = vmax.f32 %v2886_v37, %v2887_v46  ;;  %v2902_v36 = vmax.f32 %v1194_v61, 0.0  ;;  %v2784_v12 = vmax.f32 %v1347_v60, 0.0  ;;  %3799 = vmatprep.subr.bf16.mxu1 %v4107_v6 }
 0x1ab   : > { %v4768_v3 = vmax.f32 %v3082_v1, %v2769_v16  ;;  %v3083_v10 = vmax.f32 %v4707_v9, %v2783_v20  ;;  %1949 = vmatmul.mubr.bf16.gmra.mrb[152].mxu0 %v4524_v18  ;;  %2062 = vmatmul.mubr.bf16.gmra.mrb[152].mxu1 %v4773_v11 }
 0x1ac   : > { %v4776_v2 = vmax.f32 %v2901_v59, %v2902_v36  ;;  %1958 = vmatprep.mubr.bf16.mxu0 %v5509_v0  ;;  %2071 = vmatprep.mubr.bf16.mxu1 %v5509_v0  ;;  %v4110_v36 = vld [vmem:[#allocation5 + $0x380] ss:$60 sps:$4 sm:$0xff]  }
 0x1ad   : > { %v4780_v15 = vmax.f32 %v3083_v10, %v2784_v12  ;;  %3800 = vmatpush3.bf16.msra.mxu1 %v4107_v6 }
 0x1ae   : > { %v1351_v25 = vpop.f32.mrb[48].mxu1  ;;  %v1464_v31 = vpop.f32.mrb[48].mxu0  ;;  %3801 = vmatprep.subr.bf16.mxu1 %v4108_v30 }
 0x1af   : > { %v2798_v9 = vmax.f32 %v1351_v25, 0.0  ;;  %v2560_v37 = vmax.f32 %v1464_v31, 0.0  ;;  %v1353_v18 = vpop.f32.mrb[49].mxu1  ;;  %v1466_v40 = vpop.f32.mrb[49].mxu0 }
 0x1b0   : > { %v2799_v17 = vmax.f32 %v1353_v18, 0.0  ;;  %v2561_v43 = vmax.f32 %v1466_v40, 0.0  ;;  %v1355_v46 = vpop.f32.mrb[50].mxu1  ;;  %v1468_v16 = vpop.f32.mrb[50].mxu0 }
 0x1b1   : > { %v3084_v39 = vmax.f32 %v4714_v41, %v2798_v9  ;;  %v3132_v52 = vmax.f32 %v4651_v28, %v2560_v37  ;;  %v2813_v1 = vmax.f32 %v1355_v46, 0.0  ;;  %v2575_v59 = vmax.f32 %v1468_v16, 0.0  ;;  %v1470_v6 = vpop.f32.mrb[51].mxu0  ;;  %v1357_v20 = vpop.f32.mrb[51].mxu1  ;;  %3802 = vmatpush3.bf16.msra.mxu1 %v4108_v30  ;;  %v4792_v28 = vld [vmem:[%s4429_s3 + $0x18] sm:$0xff]  }
 0x1b2   : > { %v2576_v61 = vmax.f32 %v1470_v6, 0.0  ;;  %v2814_v60 = vmax.f32 %v1357_v20, 0.0  ;;  %3803 = vmatprep.subr.bf16.mxu1 %v4109_v29 }
 0x1b3   : > { %v4784_v12 = vmax.f32 %v3084_v39, %v2799_v17  ;;  %v4786_v10 = vmax.f32 %v3132_v52, %v2561_v43  ;;  %v3085_v25 = vmax.f32 %v4724_v57, %v2813_v1  ;;  %v3133_v41 = vmax.f32 %v4660_v32, %v2575_v59  ;;  %1959 = vmatmul.mubr.bf16.gmra.mrb[156].mxu0 %v4531_v21 }
 0x1b4   : > { %2072 = vmatmul.mubr.bf16.gmra.mrb[156].mxu1 %v4792_v28  ;;  %1968 = vmatprep.mubr.bf16.mxu0 %v5509_v0 }
 0x1b5   : > { %v4796_v30 = vmax.f32 %v3133_v41, %v2576_v61  ;;  %v4798_v31 = vmax.f32 %v3085_v25, %v2814_v60  ;;  %2081 = vmatprep.mubr.bf16.mxu1 %v5509_v0  ;;  %3804 = vmatpush3.bf16.msra.mxu1 %v4109_v29 }
 0x1b6   : > { %v1361_v9 = vpop.f32.mrb[52].mxu1  ;;  %v1474_v37 = vpop.f32.mrb[52].mxu0  ;;  %3805 = vmatprep.subr.bf16.mxu1 %v4110_v36 }
 0x1b7   : > { %v2828_v57 = vmax.f32 %v1361_v9, 0.0  ;;  %v2590_v32 = vmax.f32 %v1474_v37, 0.0  ;;  %v1363_v18 = vpop.f32.mrb[53].mxu1  ;;  %v1476_v21 = vpop.f32.mrb[53].mxu0 }
 0x1b8   : > { %v2829_v40 = vmax.f32 %v1363_v18, 0.0  ;;  %v2591_v17 = vmax.f32 %v1476_v21, 0.0  ;;  %v1365_v43 = vpop.f32.mrb[54].mxu1  ;;  %v1478_v46 = vpop.f32.mrb[54].mxu0 }
 0x1b9   : > { %v3086_v16 = vmax.f32 %v4731_v27, %v2828_v57  ;;  %v3134_v39 = vmax.f32 %v4665_v19, %v2590_v32  ;;  %v2843_v52 = vmax.f32 %v1365_v43, 0.0  ;;  %v2605_v1 = vmax.f32 %v1478_v46, 0.0  ;;  %v1480_v59 = vpop.f32.mrb[55].mxu0  ;;  %v1367_v29 = vpop.f32.mrb[55].mxu1  ;;  %3806 = vmatpush3.bf16.msra.mxu1 %v4110_v36  ;;  %v4811_v27 = vld [vmem:[%s4429_s3 + $0x20] sm:$0xff]  }
 0x1ba   : > { %v2606_v6 = vmax.f32 %v1480_v59, 0.0  ;;  %v2844_v20 = vmax.f32 %v1367_v29, 0.0 }
 0x1bb   : > { %v4803_v61 = vmax.f32 %v3086_v16, %v2829_v40  ;;  %v4805_v60 = vmax.f32 %v3134_v39, %v2591_v17  ;;  %v3087_v25 = vmax.f32 %v4741_v58, %v2843_v52  ;;  %v3135_v41 = vmax.f32 %v4677_v63, %v2605_v1  ;;  %1969 = vmatmul.mubr.bf16.gmra.mrb[160].mxu0 %v4669_v62 }
 0x1bc   : > { %2082 = vmatmul.mubr.bf16.gmra.mrb[160].mxu1 %v4811_v27  ;;  %1978 = vmatprep.mubr.bf16.mxu0 %v5509_v0 }
 0x1bd   : > { %v4815_v19 = vmax.f32 %v3135_v41, %v2606_v6  ;;  %v4817_v36 = vmax.f32 %v3087_v25, %v2844_v20  ;;  %2091 = vmatprep.mubr.bf16.mxu1 %v5509_v0 }
 0x1be   : > { %v1371_v9 = vpop.f32.mrb[56].mxu1  ;;  %v1484_v37 = vpop.f32.mrb[56].mxu0 }
 0x1bf   : > { %v2858_v57 = vmax.f32 %v1371_v9, 0.0  ;;  %v2620_v58 = vmax.f32 %v1484_v37, 0.0  ;;  %v1373_v32 = vpop.f32.mrb[57].mxu1  ;;  %v1486_v63 = vpop.f32.mrb[57].mxu0  ;;  %v4830_v9 = vld [vmem:[%s4429_s3 + $0x28] sm:$0xff]  }
 0x1c0   : > { %v2859_v18 = vmax.f32 %v1373_v32, 0.0  ;;  %v2621_v21 = vmax.f32 %v1486_v63, 0.0  ;;  %v1375_v40 = vpop.f32.mrb[58].mxu1  ;;  %v1488_v17 = vpop.f32.mrb[58].mxu0 }
 0x1c1   : > { %v3088_v43 = vmax.f32 %v4749_v49, %v2858_v57  ;;  %v3136_v46 = vmax.f32 %v4682_v48, %v2620_v58  ;;  %v2873_v16 = vmax.f32 %v1375_v40, 0.0  ;;  %v2635_v39 = vmax.f32 %v1488_v17, 0.0  ;;  %v1490_v52 = vpop.f32.mrb[59].mxu0  ;;  %v1377_v1 = vpop.f32.mrb[59].mxu1 }
 0x1c2   : > { %v2636_v59 = vmax.f32 %v1490_v52, 0.0  ;;  %v2874_v29 = vmax.f32 %v1377_v1, 0.0 }
 0x1c3   : > { %v4822_v6 = vmax.f32 %v3088_v43, %v2859_v18  ;;  %v4824_v20 = vmax.f32 %v3136_v46, %v2621_v21  ;;  %v3089_v25 = vmax.f32 %v4759_v33, %v2873_v16  ;;  %v3137_v41 = vmax.f32 %v4694_v5, %v2635_v39  ;;  %1979 = vmatmul.mubr.bf16.gmra.mrb[164].mxu0 %v4686_v22 }
 0x1c4   : > { %2092 = vmatmul.mubr.bf16.gmra.mrb[164].mxu1 %v4830_v9  ;;  %1988 = vmatprep.mubr.bf16.mxu0 %v5509_v0 }
 0x1c5   : > { %v4834_v48 = vmax.f32 %v3137_v41, %v2636_v59  ;;  %v4836_v49 = vmax.f32 %v3089_v25, %v2874_v29  ;;  %2101 = vmatprep.mubr.bf16.mxu1 %v5509_v0 }
 0x1c6   : > { %v1381_v37 = vpop.f32.mrb[60].mxu1  ;;  %v1494_v57 = vpop.f32.mrb[60].mxu0 }
 0x1c7   : > { %v2888_v58 = vmax.f32 %v1381_v37, 0.0  ;;  %v2650_v33 = vmax.f32 %v1494_v57, 0.0  ;;  %v1383_v32 = vpop.f32.mrb[61].mxu1  ;;  %v1496_v5 = vpop.f32.mrb[61].mxu0  ;;  %v4849_v57 = vld [vmem:[%s4429_s3 + $0x30] sm:$0xff]  }
 0x1c8   : > { %v2889_v63 = vmax.f32 %v1383_v32, 0.0  ;;  %v2651_v18 = vmax.f32 %v1496_v5, 0.0  ;;  %v1385_v21 = vpop.f32.mrb[62].mxu1  ;;  %v1498_v40 = vpop.f32.mrb[62].mxu0 }
 0x1c9   : > { %v3090_v17 = vmax.f32 %v4766_v47, %v2888_v58  ;;  %v3138_v43 = vmax.f32 %v4699_v4, %v2650_v33  ;;  %v2903_v46 = vmax.f32 %v1385_v21, 0.0  ;;  %v2665_v16 = vmax.f32 %v1498_v40, 0.0  ;;  %v1500_v39 = vpop.f32.mrb[63].mxu0  ;;  %v1387_v52 = vpop.f32.mrb[63].mxu1 }
 0x1ca   : > { %v2666_v1 = vmax.f32 %v1500_v39, 0.0  ;;  %v2904_v59 = vmax.f32 %v1387_v52, 0.0 }
 0x1cb   : > { %v4841_v29 = vmax.f32 %v3090_v17, %v2889_v63  ;;  %v4843_v25 = vmax.f32 %v3138_v43, %v2651_v18  ;;  %v3091_v41 = vmax.f32 %v4776_v2, %v2903_v46  ;;  %v3139_v37 = vmax.f32 %v4711_v42, %v2665_v16  ;;  %1989 = vmatmul.mubr.bf16.gmra.mrb[168].mxu0 %v4703_v8 }
 0x1cc   : > { %2102 = vmatmul.mubr.bf16.gmra.mrb[168].mxu1 %v4849_v57  ;;  %1998 = vmatprep.mubr.bf16.mxu0 %v5509_v0 }
 0x1cd   : > { %v4853_v4 = vmax.f32 %v3139_v37, %v2666_v1  ;;  %v4855_v47 = vmax.f32 %v3091_v41, %v2904_v59  ;;  %2111 = vmatprep.mubr.bf16.mxu1 %v5509_v0 }
 0x1ce   : > { %v1391_v58 = vpop.f32.mrb[64].mxu1  ;;  %v1504_v33 = vpop.f32.mrb[64].mxu0 }
 0x1cf   : > { %v2918_v32 = vmax.f32 %v1391_v58, 0.0  ;;  %v2680_v2 = vmax.f32 %v1504_v33, 0.0  ;;  %v1393_v5 = vpop.f32.mrb[65].mxu1  ;;  %v1506_v42 = vpop.f32.mrb[65].mxu0 }
 0x1d0   : > { %v2919_v63 = vmax.f32 %v1393_v5, 0.0  ;;  %v2681_v18 = vmax.f32 %v1506_v42, 0.0  ;;  %v1395_v21 = vpop.f32.mrb[66].mxu1  ;;  %v1508_v40 = vpop.f32.mrb[66].mxu0  ;;  %v4868_v5 = vld [vmem:[%s4429_s3 + $0x38] sm:$0xff]  }
 0x1d1   : > { %v3092_v17 = vmax.f32 %v4602_v13, %v2918_v32  ;;  %v3140_v43 = vmax.f32 %v4716_v51, %v2680_v2  ;;  %v2933_v46 = vmax.f32 %v1395_v21, 0.0  ;;  %v2695_v16 = vmax.f32 %v1508_v40, 0.0  ;;  %v1510_v39 = vpop.f32.mrb[67].mxu0  ;;  %v1397_v52 = vpop.f32.mrb[67].mxu1 }
 0x1d2   : > { %v2696_v1 = vmax.f32 %v1510_v39, 0.0  ;;  %v2934_v59 = vmax.f32 %v1397_v52, 0.0 }
 0x1d3   : > { %v4860_v41 = vmax.f32 %v3092_v17, %v2919_v63  ;;  %v4862_v37 = vmax.f32 %v3140_v43, %v2681_v18  ;;  %v3093_v58 = vmax.f32 %v4608_v23, %v2933_v46  ;;  %v3141_v33 = vmax.f32 %v4728_v24, %v2695_v16  ;;  %1999 = vmatmul.mubr.bf16.gmra.mrb[172].mxu0 %v4720_v55 }
 0x1d4   : > { %2112 = vmatmul.mubr.bf16.gmra.mrb[172].mxu1 %v4868_v5  ;;  %2234 = vmatprep.mubr.bf16.mxu0 %v5509_v0 }
 0x1d5   : > { %v4872_v13 = vmax.f32 %v3141_v33, %v2696_v1  ;;  %v4874_v51 = vmax.f32 %v3093_v58, %v2934_v59  ;;  %2121 = vmatprep.mubr.bf16.mxu1 %v5509_v0 }
 0x1d6   : > { %v1401_v32 = vpop.f32.mrb[68].mxu1  ;;  %v1514_v2 = vpop.f32.mrb[68].mxu0 }
 0x1d7   : > { %v2948_v42 = vmax.f32 %v1401_v32, 0.0  ;;  %v2710_v23 = vmax.f32 %v1514_v2, 0.0  ;;  %v1403_v63 = vpop.f32.mrb[69].mxu1  ;;  %v1516_v24 = vpop.f32.mrb[69].mxu0 }
 0x1d8   : > { %v2949_v18 = vmax.f32 %v1403_v63, 0.0  ;;  %v2711_v21 = vmax.f32 %v1516_v24, 0.0  ;;  %v1405_v40 = vpop.f32.mrb[70].mxu1  ;;  %v1518_v17 = vpop.f32.mrb[70].mxu0  ;;  %v4887_v24 = vld [vmem:[%s4429_s3 + $0x40] sm:$0xff]  }
 0x1d9   : > { %v3094_v43 = vmax.f32 %v4614_v44, %v2948_v42  ;;  %v3142_v46 = vmax.f32 %v4733_v34, %v2710_v23  ;;  %v2963_v16 = vmax.f32 %v1405_v40, 0.0  ;;  %v2725_v39 = vmax.f32 %v1518_v17, 0.0  ;;  %v1520_v52 = vpop.f32.mrb[71].mxu0  ;;  %v1407_v1 = vpop.f32.mrb[71].mxu1 }
 0x1da   : > { %v2726_v59 = vmax.f32 %v1520_v52, 0.0  ;;  %v2964_v58 = vmax.f32 %v1407_v1, 0.0 }
 0x1db   : > { %v4879_v33 = vmax.f32 %v3094_v43, %v2949_v18  ;;  %v4881_v32 = vmax.f32 %v3142_v46, %v2711_v21  ;;  %v3095_v2 = vmax.f32 %v4620_v50, %v2963_v16  ;;  %v3143_v63 = vmax.f32 %v4745_v38, %v2725_v39  ;;  %2235 = vmatmul.mubr.bf16.vlgmr.msra.gmra.mrb[176].mxu0 %v4738_v35 }
 0x1dc   : > { %2122 = vmatmul.mubr.bf16.gmra.mrb[176].mxu1 %v4887_v24  ;;  %2244 = vmatprep.mubr.bf16.mxu0 %v5509_v0 }
 0x1dd   : > { %v4891_v44 = vmax.f32 %v3143_v63, %v2726_v59  ;;  %v4893_v34 = vmax.f32 %v3095_v2, %v2964_v58  ;;  %2131 = vmatprep.mubr.bf16.mxu1 %v5509_v0 }
 0x1de   : > { %v1411_v42 = vpop.f32.mrb[72].mxu1  ;;  %v1524_v23 = vpop.f32.mrb[72].mxu0 }
 0x1df   : > { %v2978_v18 = vmax.f32 %v1411_v42, 0.0  ;;  %v2740_v50 = vmax.f32 %v1524_v23, 0.0  ;;  %v1413_v21 = vpop.f32.mrb[73].mxu1  ;;  %v1526_v38 = vpop.f32.mrb[73].mxu0 }
 0x1e0   : > { %v2979_v40 = vmax.f32 %v1413_v21, 0.0  ;;  %v2741_v17 = vmax.f32 %v1526_v38, 0.0  ;;  %v1415_v43 = vpop.f32.mrb[74].mxu1  ;;  %v1528_v46 = vpop.f32.mrb[74].mxu0  ;;  %v4906_v38 = vld [vmem:[%s4429_s3 + $0x48] sm:$0xff]  }
 0x1e1   : > { %v3096_v16 = vmax.f32 %v4626_v7, %v2978_v18  ;;  %v3144_v39 = vmax.f32 %v4751_v56, %v2740_v50  ;;  %v2993_v52 = vmax.f32 %v1415_v43, 0.0  ;;  %v2755_v1 = vmax.f32 %v1528_v46, 0.0  ;;  %v1530_v59 = vpop.f32.mrb[75].mxu0  ;;  %v1417_v58 = vpop.f32.mrb[75].mxu1  ;;  %5528 = vst [vmem:[#allocation11_spill] sm:$0xff] %v4906_v38 }
 0x1e2   : > { %v2756_v2 = vmax.f32 %v1530_v59, 0.0  ;;  %v2994_v63 = vmax.f32 %v1417_v58, 0.0  ;;  %v5529_v7 = vmov 0  }
 0x1e3   : > { %v4898_v0 = vmax.f32 %v3096_v16, %v2979_v40  ;;  %v4900_v42 = vmax.f32 %v3144_v39, %v2741_v17  ;;  %v3097_v23 = vmax.f32 %v4632_v14, %v2993_v52  ;;  %v3145_v21 = vmax.f32 %v4763_v53, %v2755_v1  ;;  %2245 = vmatmul.mubr.bf16.gmra.mrb[180].mxu0 %v4756_v26 }
 0x1e4   : > { %2132 = vmatmul.mubr.bf16.gmra.mrb[180].mxu1 %v4906_v38  ;;  %2254 = vmatprep.mubr.bf16.mxu0 %v5529_v7 }
 0x1e5   : > { %v4910_v56 = vmax.f32 %v3145_v21, %v2756_v2  ;;  %v4912_v18 = vmax.f32 %v3097_v23, %v2994_v63  ;;  %2141 = vmatprep.mubr.bf16.mxu1 %v5529_v7 }
 0x1e6   : > { %v1421_v50 = vpop.f32.mrb[76].mxu1  ;;  %v1534_v40 = vpop.f32.mrb[76].mxu0 }
 0x1e7   : > { %5530 = vst [vmem:[#allocation12_spill] sm:$0xff] %v4910_v56  ;;  %v3008_v17 = vmax.f32 %v1421_v50, 0.0  ;;  %v2770_v14 = vmax.f32 %v1534_v40, 0.0  ;;  %v1423_v43 = vpop.f32.mrb[77].mxu1  ;;  %v1536_v53 = vpop.f32.mrb[77].mxu0 }
 0x1e8   : > { %v3009_v46 = vmax.f32 %v1423_v43, 0.0  ;;  %v2771_v16 = vmax.f32 %v1536_v53, 0.0  ;;  %v1425_v39 = vpop.f32.mrb[78].mxu1  ;;  %v1538_v52 = vpop.f32.mrb[78].mxu0  ;;  %v4925_v53 = vld [vmem:[%s4429_s3 + $0x50] sm:$0xff]  }
 0x1e9   : > { %v3098_v1 = vmax.f32 %v4638_v45, %v3008_v17  ;;  %v3146_v59 = vmax.f32 %v4768_v3, %v2770_v14  ;;  %v3023_v58 = vmax.f32 %v1425_v39, 0.0  ;;  %v2785_v2 = vmax.f32 %v1538_v52, 0.0  ;;  %v1540_v63 = vpop.f32.mrb[79].mxu0  ;;  %v1427_v23 = vpop.f32.mrb[79].mxu1  ;;  %5531 = vst [vmem:[#allocation13_spill] sm:$0xff] %v4925_v53 }
 0x1ea   : > { %v2786_v21 = vmax.f32 %v1540_v63, 0.0  ;;  %v3024_v38 = vmax.f32 %v1427_v23, 0.0 }
 0x1eb   : > { %v4917_v56 = vmax.f32 %v3098_v1, %v3009_v46  ;;  %v4919_v50 = vmax.f32 %v3146_v59, %v2771_v16  ;;  %v3099_v40 = vmax.f32 %v4644_v54, %v3023_v58  ;;  %v3147_v43 = vmax.f32 %v4780_v15, %v2785_v2  ;;  %2255 = vmatmul.mubr.bf16.gmra.mrb[184].mxu0 %v4773_v11 }
 0x1ec   : > { %2142 = vmatmul.mubr.bf16.gmra.mrb[184].mxu1 %v4925_v53  ;;  %2264 = vmatprep.mubr.bf16.mxu0 %v5529_v7 }
 0x1ed   : > { %v4929_v45 = vmax.f32 %v3147_v43, %v2786_v21  ;;  %v4931_v3 = vmax.f32 %v3099_v40, %v3024_v38  ;;  %2151 = vmatprep.mubr.bf16.mxu1 %v5529_v7 }
 0x1ee   : > { %v1544_v17 = vpop.f32.mrb[80].mxu0  ;;  %v1657_v14 = vpop.f32.mrb[80].mxu1 }
 0x1ef   : > { %v2800_v46 = vmax.f32 %v1544_v17, 0.0  ;;  %v2562_v54 = vmax.f32 %v1657_v14, 0.0  ;;  %v1546_v16 = vpop.f32.mrb[81].mxu0  ;;  %v1659_v15 = vpop.f32.mrb[81].mxu1 }
 0x1f0   : > { %v2801_v39 = vmax.f32 %v1546_v16, 0.0  ;;  %v2563_v52 = vmax.f32 %v1659_v15, 0.0  ;;  %v1548_v1 = vpop.f32.mrb[82].mxu0  ;;  %v1661_v59 = vpop.f32.mrb[82].mxu1  ;;  %v4944_v15 = vld [vmem:[%s4429_s3 + $0x58] sm:$0xff]  }
 0x1f1   : > { %v3148_v58 = vmax.f32 %v4784_v12, %v2800_v46  ;;  %v3196_v2 = vmax.f32 %v4786_v10, %v2562_v54  ;;  %v2815_v63 = vmax.f32 %v1548_v1, 0.0  ;;  %v2577_v38 = vmax.f32 %v1661_v59, 0.0  ;;  %v1550_v23 = vpop.f32.mrb[83].mxu0  ;;  %v1663_v21 = vpop.f32.mrb[83].mxu1  ;;  %5532 = vst [vmem:[#allocation14_spill] sm:$0xff] %v4944_v15 }
 0x1f2   : > { %v2816_v40 = vmax.f32 %v1550_v23, 0.0  ;;  %v2578_v43 = vmax.f32 %v1663_v21, 0.0 }
 0x1f3   : > { %v4936_v53 = vmax.f32 %v3148_v58, %v2801_v39  ;;  %v4938_v17 = vmax.f32 %v3196_v2, %v2563_v52  ;;  %v3149_v14 = vmax.f32 %v4798_v31, %v2815_v63  ;;  %v3197_v16 = vmax.f32 %v4796_v30, %v2577_v38  ;;  %2265 = vmatmul.mubr.bf16.gmra.mrb[188].mxu0 %v4792_v28 }
 0x1f4   : > { %2152 = vmatmul.mubr.bf16.gmra.mrb[188].mxu1 %v4944_v15  ;;  %2274 = vmatprep.mubr.bf16.mxu0 %v5529_v7 }
 0x1f5   : > { %v4948_v12 = vmax.f32 %v3149_v14, %v2816_v40  ;;  %v4950_v10 = vmax.f32 %v3197_v16, %v2578_v43  ;;  %2161 = vmatprep.mubr.bf16.mxu1 %v5529_v7 }
 0x1f6   : > { %v1554_v46 = vpop.f32.mrb[84].mxu0  ;;  %v1667_v54 = vpop.f32.mrb[84].mxu1 }
 0x1f7   : > { %v2830_v39 = vmax.f32 %v1554_v46, 0.0  ;;  %v2592_v31 = vmax.f32 %v1667_v54, 0.0  ;;  %v1556_v52 = vpop.f32.mrb[85].mxu0  ;;  %v1669_v30 = vpop.f32.mrb[85].mxu1 }
 0x1f8   : > { %v2831_v1 = vmax.f32 %v1556_v52, 0.0  ;;  %v2593_v59 = vmax.f32 %v1669_v30, 0.0  ;;  %v1558_v58 = vpop.f32.mrb[86].mxu0  ;;  %v1671_v2 = vpop.f32.mrb[86].mxu1 }
 0x1f9   : > { %v3150_v63 = vmax.f32 %v4803_v61, %v2830_v39  ;;  %v3198_v38 = vmax.f32 %v4805_v60, %v2592_v31  ;;  %v2845_v23 = vmax.f32 %v1558_v58, 0.0  ;;  %v2607_v21 = vmax.f32 %v1671_v2, 0.0  ;;  %v1560_v40 = vpop.f32.mrb[87].mxu0  ;;  %v1673_v43 = vpop.f32.mrb[87].mxu1 }
 0x1fa   : > { %v2846_v14 = vmax.f32 %v1560_v40, 0.0  ;;  %v2608_v16 = vmax.f32 %v1673_v43, 0.0 }
 0x1fb   : > { %v4955_v15 = vmax.f32 %v3150_v63, %v2831_v1  ;;  %v4957_v46 = vmax.f32 %v3198_v38, %v2593_v59  ;;  %v3151_v54 = vmax.f32 %v4817_v36, %v2845_v23  ;;  %v3199_v52 = vmax.f32 %v4815_v19, %v2607_v21  ;;  %2275 = vmatmul.mubr.bf16.gmra.mrb[192].mxu0 %v4811_v27 }
 0x1fc   : > { %2162 = vmatmul.mubr.bf16.gmra.mrb[192].mxu1 %v4669_v62  ;;  %2284 = vmatprep.mubr.bf16.mxu0 %v5529_v7 }
 0x1fd   : > { %v4964_v61 = vmax.f32 %v3151_v54, %v2846_v14  ;;  %v4966_v60 = vmax.f32 %v3199_v52, %v2608_v16  ;;  %2171 = vmatprep.mubr.bf16.mxu1 %v5529_v7 }
 0x1fe   : > { %v1564_v39 = vpop.f32.mrb[88].mxu0  ;;  %v1677_v31 = vpop.f32.mrb[88].mxu1 }
 0x1ff   : > { %v2860_v30 = vmax.f32 %v1564_v39, 0.0  ;;  %v2622_v1 = vmax.f32 %v1677_v31, 0.0  ;;  %v1566_v59 = vpop.f32.mrb[89].mxu0  ;;  %v1679_v36 = vpop.f32.mrb[89].mxu1 }
 0x200   : > { %v2861_v58 = vmax.f32 %v1566_v59, 0.0  ;;  %v2623_v19 = vmax.f32 %v1679_v36, 0.0  ;;  %v1568_v2 = vpop.f32.mrb[90].mxu0  ;;  %v1681_v63 = vpop.f32.mrb[90].mxu1 }
 0x201   : > { %v3152_v62 = vmax.f32 %v4822_v6, %v2860_v30  ;;  %v3200_v38 = vmax.f32 %v4824_v20, %v2622_v1  ;;  %v2875_v23 = vmax.f32 %v1568_v2, 0.0  ;;  %v2637_v21 = vmax.f32 %v1681_v63, 0.0  ;;  %v1570_v40 = vpop.f32.mrb[91].mxu0  ;;  %v1683_v43 = vpop.f32.mrb[91].mxu1 }
 0x202   : > { %v2876_v14 = vmax.f32 %v1570_v40, 0.0  ;;  %v2638_v16 = vmax.f32 %v1683_v43, 0.0 }
 0x203   : > { %v4971_v54 = vmax.f32 %v3152_v62, %v2861_v58  ;;  %v4973_v52 = vmax.f32 %v3200_v38, %v2623_v19  ;;  %v3153_v39 = vmax.f32 %v4836_v49, %v2875_v23  ;;  %v3201_v31 = vmax.f32 %v4834_v48, %v2637_v21  ;;  %2285 = vmatmul.mubr.bf16.gmra.mrb[196].mxu0 %v4830_v9 }
 0x204   : > { %2172 = vmatmul.mubr.bf16.gmra.mrb[196].mxu1 %v4686_v22  ;;  %2294 = vmatprep.mubr.bf16.mxu0 %v5529_v7 }
 0x205   : > { %v4980_v6 = vmax.f32 %v3153_v39, %v2876_v14  ;;  %v4982_v20 = vmax.f32 %v3201_v31, %v2638_v16  ;;  %2181 = vmatprep.mubr.bf16.mxu1 %v5529_v7 }
 0x206   : > { %v1574_v30 = vpop.f32.mrb[92].mxu0  ;;  %v1687_v1 = vpop.f32.mrb[92].mxu1 }
 0x207   : > { %v2890_v59 = vmax.f32 %v1574_v30, 0.0  ;;  %v2652_v36 = vmax.f32 %v1687_v1, 0.0  ;;  %v1576_v58 = vpop.f32.mrb[93].mxu0  ;;  %v1689_v49 = vpop.f32.mrb[93].mxu1 }
 0x208   : > { %v2891_v19 = vmax.f32 %v1576_v58, 0.0  ;;  %v2653_v48 = vmax.f32 %v1689_v49, 0.0  ;;  %v1578_v2 = vpop.f32.mrb[94].mxu0  ;;  %v1691_v63 = vpop.f32.mrb[94].mxu1 }
 0x209   : > { %v3154_v22 = vmax.f32 %v4841_v29, %v2890_v59  ;;  %v3202_v62 = vmax.f32 %v4843_v25, %v2652_v36  ;;  %v2905_v38 = vmax.f32 %v1578_v2, 0.0  ;;  %v2667_v23 = vmax.f32 %v1691_v63, 0.0  ;;  %v1580_v21 = vpop.f32.mrb[95].mxu0  ;;  %v1693_v40 = vpop.f32.mrb[95].mxu1 }
 0x20a   : > { %v2906_v43 = vmax.f32 %v1580_v21, 0.0  ;;  %v2668_v14 = vmax.f32 %v1693_v40, 0.0 }
 0x20b   : > { %v4987_v16 = vmax.f32 %v3154_v22, %v2891_v19  ;;  %v4989_v39 = vmax.f32 %v3202_v62, %v2653_v48  ;;  %v3155_v31 = vmax.f32 %v4855_v47, %v2905_v38  ;;  %v3203_v30 = vmax.f32 %v4853_v4, %v2667_v23  ;;  %2295 = vmatmul.mubr.bf16.gmra.mrb[200].mxu0 %v4849_v57 }
 0x20c   : > { %2182 = vmatmul.mubr.bf16.gmra.mrb[200].mxu1 %v4703_v8  ;;  %2304 = vmatprep.mubr.bf16.mxu0 %v5529_v7 }
 0x20d   : > { %v4996_v29 = vmax.f32 %v3155_v31, %v2906_v43  ;;  %v4998_v25 = vmax.f32 %v3203_v30, %v2668_v14  ;;  %2191 = vmatprep.mubr.bf16.mxu1 %v5529_v7 }
 0x20e   : > { %v1584_v1 = vpop.f32.mrb[96].mxu0  ;;  %v1697_v59 = vpop.f32.mrb[96].mxu1 }
 0x20f   : > { %v2920_v36 = vmax.f32 %v1584_v1, 0.0  ;;  %v2682_v58 = vmax.f32 %v1697_v59, 0.0  ;;  %v1586_v49 = vpop.f32.mrb[97].mxu0  ;;  %v1699_v47 = vpop.f32.mrb[97].mxu1 }
 0x210   : > { %v2921_v19 = vmax.f32 %v1586_v49, 0.0  ;;  %v2683_v4 = vmax.f32 %v1699_v47, 0.0  ;;  %v1588_v48 = vpop.f32.mrb[98].mxu0  ;;  %v1701_v2 = vpop.f32.mrb[98].mxu1 }
 0x211   : > { %v3156_v8 = vmax.f32 %v4860_v41, %v2920_v36  ;;  %v3204_v63 = vmax.f32 %v4862_v37, %v2682_v58  ;;  %v2935_v22 = vmax.f32 %v1588_v48, 0.0  ;;  %v2697_v62 = vmax.f32 %v1701_v2, 0.0  ;;  %v1590_v38 = vpop.f32.mrb[99].mxu0  ;;  %v1703_v23 = vpop.f32.mrb[99].mxu1 }
 0x212   : > { %v2936_v21 = vmax.f32 %v1590_v38, 0.0  ;;  %v2698_v40 = vmax.f32 %v1703_v23, 0.0 }
 0x213   : > { %v5003_v43 = vmax.f32 %v3156_v8, %v2921_v19  ;;  %v5005_v14 = vmax.f32 %v3204_v63, %v2683_v4  ;;  %v3157_v31 = vmax.f32 %v4874_v51, %v2935_v22  ;;  %v3205_v30 = vmax.f32 %v4872_v13, %v2697_v62  ;;  %2305 = vmatmul.mubr.bf16.gmra.mrb[204].mxu0 %v4868_v5 }
 0x214   : > { %2192 = vmatmul.mubr.bf16.gmra.mrb[204].mxu1 %v4720_v55  ;;  %2314 = vmatprep.mubr.bf16.mxu0 %v5529_v7 }
 0x215   : > { %v5012_v41 = vmax.f32 %v3157_v31, %v2936_v21  ;;  %v5014_v37 = vmax.f32 %v3205_v30, %v2698_v40  ;;  %3807 = vmatprep.mubr.bf16.mxu1 %v4738_v35 }
 0x216   : > { %v1594_v1 = vpop.f32.mrb[100].mxu0  ;;  %v1707_v59 = vpop.f32.mrb[100].mxu1 }
 0x217   : > { %v2950_v36 = vmax.f32 %v1594_v1, 0.0  ;;  %v2712_v58 = vmax.f32 %v1707_v59, 0.0  ;;  %v1596_v49 = vpop.f32.mrb[101].mxu0  ;;  %v1709_v51 = vpop.f32.mrb[101].mxu1 }
 0x218   : > { %v2951_v47 = vmax.f32 %v1596_v49, 0.0  ;;  %v2713_v13 = vmax.f32 %v1709_v51, 0.0  ;;  %v1598_v19 = vpop.f32.mrb[102].mxu0  ;;  %v1711_v4 = vpop.f32.mrb[102].mxu1 }
 0x219   : > { %v3158_v55 = vmax.f32 %v4879_v33, %v2950_v36  ;;  %v3206_v48 = vmax.f32 %v4881_v32, %v2712_v58  ;;  %v2965_v2 = vmax.f32 %v1598_v19, 0.0  ;;  %v2727_v8 = vmax.f32 %v1711_v4, 0.0  ;;  %v1600_v63 = vpop.f32.mrb[103].mxu0  ;;  %v1713_v22 = vpop.f32.mrb[103].mxu1 }
 0x21a   : > { %v2966_v62 = vmax.f32 %v1600_v63, 0.0  ;;  %v2728_v35 = vmax.f32 %v1713_v22, 0.0  ;;  %v5533_v22 = vld [vmem:[#allocation12_spill] sm:$0xff] }
 0x21b   : > { %v5019_v38 = vmax.f32 %v3158_v55, %v2951_v47  ;;  %v5021_v23 = vmax.f32 %v3206_v48, %v2713_v13  ;;  %v3159_v21 = vmax.f32 %v4893_v34, %v2965_v2  ;;  %v3207_v40 = vmax.f32 %v4891_v44, %v2727_v8  ;;  %2315 = vmatmul.mubr.bf16.gmra.mrb[208].mxu0 %v4887_v24 }
 0x21c   : > { %3808 = vmatmul.mubr.bf16.vlgmr.msra.gmra.mrb[208].mxu1 %v4756_v26  ;;  %2324 = vmatprep.mubr.bf16.mxu0 %v5529_v7 }
 0x21d   : > { %v5028_v33 = vmax.f32 %v3159_v21, %v2966_v62  ;;  %v5030_v32 = vmax.f32 %v3207_v40, %v2728_v35  ;;  %3811 = vmatprep.mubr.bf16.mxu1 %v4773_v11  ;;  %v5534_v35 = vld [vmem:[#allocation11_spill] sm:$0xff] }
 0x21e   : > { %v1604_v31 = vpop.f32.mrb[104].mxu0  ;;  %v1717_v30 = vpop.f32.mrb[104].mxu1 }
 0x21f   : > { %v2980_v1 = vmax.f32 %v1604_v31, 0.0  ;;  %v2742_v59 = vmax.f32 %v1717_v30, 0.0  ;;  %v1606_v36 = vpop.f32.mrb[105].mxu0  ;;  %v1719_v34 = vpop.f32.mrb[105].mxu1 }
 0x220   : > { %v2981_v58 = vmax.f32 %v1606_v36, 0.0  ;;  %v2743_v44 = vmax.f32 %v1719_v34, 0.0  ;;  %v1608_v49 = vpop.f32.mrb[106].mxu0  ;;  %v1721_v51 = vpop.f32.mrb[106].mxu1 }
 0x221   : > { %v3160_v26 = vmax.f32 %v4898_v0, %v2980_v1  ;;  %v3208_v47 = vmax.f32 %v4900_v42, %v2742_v59  ;;  %v2995_v13 = vmax.f32 %v1608_v49, 0.0  ;;  %v2757_v19 = vmax.f32 %v1721_v51, 0.0  ;;  %v1610_v4 = vpop.f32.mrb[107].mxu0  ;;  %v1723_v55 = vpop.f32.mrb[107].mxu1 }
 0x222   : > { %v2996_v48 = vmax.f32 %v1610_v4, 0.0  ;;  %v2758_v11 = vmax.f32 %v1723_v55, 0.0 }
 0x223   : > { %v5035_v2 = vmax.f32 %v3160_v26, %v2981_v58  ;;  %v5037_v8 = vmax.f32 %v3208_v47, %v2743_v44  ;;  %v3161_v63 = vmax.f32 %v4912_v18, %v2995_v13  ;;  %v3209_v62 = vmax.f32 %v5533_v22, %v2757_v19  ;;  %2325 = vmatmul.mubr.bf16.gmra.mrb[212].mxu0 %v5534_v35 }
 0x224   : > { %3812 = vmatmul.mubr.bf16.gmra.mrb[212].mxu1 %v4792_v28  ;;  %2334 = vmatprep.mubr.bf16.mxu0 %v5529_v7 }
 0x225   : > { %v5044_v0 = vmax.f32 %v3161_v63, %v2996_v48  ;;  %v5046_v42 = vmax.f32 %v3209_v62, %v2758_v11  ;;  %3815 = vmatprep.mubr.bf16.mxu1 %v4811_v27  ;;  %v5535_v11 = vld [vmem:[#allocation13_spill] sm:$0xff] }
 0x226   : > { %v1614_v21 = vpop.f32.mrb[108].mxu0  ;;  %v1727_v40 = vpop.f32.mrb[108].mxu1 }
 0x227   : > { %v3010_v31 = vmax.f32 %v1614_v21, 0.0  ;;  %v2772_v30 = vmax.f32 %v1727_v40, 0.0  ;;  %v1616_v1 = vpop.f32.mrb[109].mxu0  ;;  %v1729_v18 = vpop.f32.mrb[109].mxu1 }
 0x228   : > { %v3011_v59 = vmax.f32 %v1616_v1, 0.0  ;;  %v2773_v36 = vmax.f32 %v1729_v18, 0.0  ;;  %v1618_v34 = vpop.f32.mrb[110].mxu0  ;;  %v1731_v58 = vpop.f32.mrb[110].mxu1 }
 0x229   : > { %v3162_v28 = vmax.f32 %v4917_v56, %v3010_v31  ;;  %v3210_v44 = vmax.f32 %v4919_v50, %v2772_v30  ;;  %v3025_v49 = vmax.f32 %v1618_v34, 0.0  ;;  %v2787_v51 = vmax.f32 %v1731_v58, 0.0  ;;  %v1620_v26 = vpop.f32.mrb[111].mxu0  ;;  %v1733_v47 = vpop.f32.mrb[111].mxu1 }
 0x22a   : > { %v3026_v13 = vmax.f32 %v1620_v26, 0.0  ;;  %v2788_v27 = vmax.f32 %v1733_v47, 0.0  ;;  %v5536_v47 = vld [vmem:[#allocation14_spill] sm:$0xff] }
 0x22b   : > { %v5051_v19 = vmax.f32 %v3162_v28, %v3011_v59  ;;  %v5053_v4 = vmax.f32 %v3210_v44, %v2773_v36  ;;  %v3163_v55 = vmax.f32 %v4931_v3, %v3025_v49  ;;  %v3211_v48 = vmax.f32 %v4929_v45, %v2787_v51  ;;  %2335 = vmatmul.mubr.bf16.gmra.mrb[216].mxu0 %v5535_v11 }
 0x22c   : > { %3816 = vmatmul.mubr.bf16.gmra.mrb[216].mxu1 %v4830_v9  ;;  %2344 = vmatprep.mubr.bf16.mxu0 %v5529_v7 }
 0x22d   : > { %v5060_v56 = vmax.f32 %v3163_v55, %v3026_v13  ;;  %v5062_v50 = vmax.f32 %v3211_v48, %v2788_v27  ;;  %3819 = vmatprep.mubr.bf16.mxu1 %v4849_v57 }
 0x22e   : > { %v1737_v63 = vpop.f32.mrb[112].mxu1  ;;  %v1850_v22 = vpop.f32.mrb[112].mxu0 }
 0x22f   : > { %v2802_v62 = vmax.f32 %v1737_v63, 0.0  ;;  %v2564_v21 = vmax.f32 %v1850_v22, 0.0  ;;  %v1739_v40 = vpop.f32.mrb[113].mxu1  ;;  %v1852_v3 = vpop.f32.mrb[113].mxu0 }
 0x230   : > { %v2803_v31 = vmax.f32 %v1739_v40, 0.0  ;;  %v2565_v45 = vmax.f32 %v1852_v3, 0.0  ;;  %v1741_v30 = vpop.f32.mrb[114].mxu1  ;;  %v1854_v1 = vpop.f32.mrb[114].mxu0 }
 0x231   : > { %v3212_v9 = vmax.f32 %v4936_v53, %v2802_v62  ;;  %v3260_v18 = vmax.f32 %v4938_v17, %v2564_v21  ;;  %v2817_v59 = vmax.f32 %v1741_v30, 0.0  ;;  %v2579_v36 = vmax.f32 %v1854_v1, 0.0  ;;  %v1856_v34 = vpop.f32.mrb[115].mxu0  ;;  %v1743_v58 = vpop.f32.mrb[115].mxu1 }
 0x232   : > { %v2580_v28 = vmax.f32 %v1856_v34, 0.0  ;;  %v2818_v57 = vmax.f32 %v1743_v58, 0.0  ;;  %v4127_v34 = vld [vmem:[%s4429_s3 + $0x60] sm:$0xff]  }
 0x233   : > { %v5067_v44 = vmax.f32 %v3212_v9, %v2803_v31  ;;  %v5069_v49 = vmax.f32 %v3260_v18, %v2565_v45  ;;  %v3213_v51 = vmax.f32 %v4948_v12, %v2817_v59  ;;  %v3261_v26 = vmax.f32 %v4950_v10, %v2579_v36  ;;  %2345 = vmatmul.mubr.bf16.gmra.mrb[220].mxu0 %v5536_v47 }
 0x234   : > { %3820 = vmatmul.mubr.bf16.gmra.mrb[220].mxu1 %v4868_v5  ;;  %2354 = vmatprep.mubr.bf16.mxu0 %v5529_v7 }
 0x235   : > { %v5076_v53 = vmax.f32 %v3261_v26, %v2580_v28  ;;  %v5078_v17 = vmax.f32 %v3213_v51, %v2818_v57  ;;  %3823 = vmatprep.mubr.bf16.mxu1 %v4887_v24 }
 0x236   : > { %v1747_v13 = vpop.f32.mrb[116].mxu1  ;;  %v1860_v27 = vpop.f32.mrb[116].mxu0 }
 0x237   : > { %v2832_v55 = vmax.f32 %v1747_v13, 0.0  ;;  %v2594_v48 = vmax.f32 %v1860_v27, 0.0  ;;  %v1749_v63 = vpop.f32.mrb[117].mxu1  ;;  %v1862_v12 = vpop.f32.mrb[117].mxu0 }
 0x238   : > { %v2833_v22 = vmax.f32 %v1749_v63, 0.0  ;;  %v2595_v10 = vmax.f32 %v1862_v12, 0.0  ;;  %v1751_v62 = vpop.f32.mrb[118].mxu1  ;;  %v1864_v21 = vpop.f32.mrb[118].mxu0 }
 0x239   : > { %v3214_v5 = vmax.f32 %v4955_v15, %v2832_v55  ;;  %v3262_v40 = vmax.f32 %v4957_v46, %v2594_v48  ;;  %v2847_v3 = vmax.f32 %v1751_v62, 0.0  ;;  %v2609_v31 = vmax.f32 %v1864_v21, 0.0  ;;  %v1866_v45 = vpop.f32.mrb[119].mxu0  ;;  %v1753_v30 = vpop.f32.mrb[119].mxu1 }
 0x23a   : > { %v2610_v24 = vmax.f32 %v1866_v45, 0.0  ;;  %v2848_v1 = vmax.f32 %v1753_v30, 0.0 }
 0x23b   : > { %v5083_v9 = vmax.f32 %v3214_v5, %v2833_v22  ;;  %v5085_v18 = vmax.f32 %v3262_v40, %v2595_v10  ;;  %v3215_v59 = vmax.f32 %v4964_v61, %v2847_v3  ;;  %v3263_v36 = vmax.f32 %v4966_v60, %v2609_v31  ;;  %2355 = vmatmul.mubr.bf16.gmra.mrb[224].mxu0 %v4127_v34  ;;  %v4128_v31 = vld [vmem:[%s4429_s3 + $0x68] sm:$0xff]  }
 0x23c   : > { %3824 = vmatmul.mubr.bf16.gmra.mrb[224].mxu1 %v5534_v35  ;;  %2364 = vmatprep.mubr.bf16.mxu0 %v5529_v7 }
 0x23d   : > { %v5092_v15 = vmax.f32 %v3263_v36, %v2610_v24  ;;  %v5094_v46 = vmax.f32 %v3215_v59, %v2848_v1  ;;  %3827 = vmatprep.mubr.bf16.mxu1 %v5535_v11 }
 0x23e   : > { %v1757_v58 = vpop.f32.mrb[120].mxu1  ;;  %v1870_v28 = vpop.f32.mrb[120].mxu0 }
 0x23f   : > { %v2862_v57 = vmax.f32 %v1757_v58, 0.0  ;;  %v2624_v51 = vmax.f32 %v1870_v28, 0.0  ;;  %v1759_v26 = vpop.f32.mrb[121].mxu1  ;;  %v1872_v61 = vpop.f32.mrb[121].mxu0 }
 0x240   : > { %v2863_v13 = vmax.f32 %v1759_v26, 0.0  ;;  %v2625_v60 = vmax.f32 %v1872_v61, 0.0  ;;  %v1761_v27 = vpop.f32.mrb[122].mxu1  ;;  %v1874_v55 = vpop.f32.mrb[122].mxu0 }
 0x241   : > { %v3216_v35 = vmax.f32 %v4971_v54, %v2862_v57  ;;  %v3264_v48 = vmax.f32 %v4973_v52, %v2624_v51  ;;  %v2877_v63 = vmax.f32 %v1761_v27, 0.0  ;;  %v2639_v12 = vmax.f32 %v1874_v55, 0.0  ;;  %v1876_v22 = vpop.f32.mrb[123].mxu0  ;;  %v1763_v10 = vpop.f32.mrb[123].mxu1 }
 0x242   : > { %v2640_v11 = vmax.f32 %v1876_v22, 0.0  ;;  %v2878_v62 = vmax.f32 %v1763_v10, 0.0 }
 0x243   : > { %v5099_v21 = vmax.f32 %v3216_v35, %v2863_v13  ;;  %v5101_v5 = vmax.f32 %v3264_v48, %v2625_v60  ;;  %v3217_v40 = vmax.f32 %v4980_v6, %v2877_v63  ;;  %v3265_v3 = vmax.f32 %v4982_v20, %v2639_v12  ;;  %2365 = vmatmul.mubr.bf16.gmra.mrb[228].mxu0 %v4128_v31  ;;  %v4129_v63 = vld [vmem:[%s4429_s3 + $0x70] sm:$0xff]  }
 0x244   : > { %3828 = vmatmul.mubr.bf16.gmra.mrb[228].mxu1 %v5536_v47  ;;  %2374 = vmatprep.mubr.bf16.mxu0 %v5529_v7 }
 0x245   : > { %v5108_v54 = vmax.f32 %v3265_v3, %v2640_v11  ;;  %v5110_v52 = vmax.f32 %v3217_v40, %v2878_v62  ;;  %3831 = vmatprep.mubr.bf16.mxu1 %v4127_v34 }
 0x246   : > { %v1767_v45 = vpop.f32.mrb[124].mxu1  ;;  %v1880_v30 = vpop.f32.mrb[124].mxu0 }
 0x247   : > { %v2892_v24 = vmax.f32 %v1767_v45, 0.0  ;;  %v2654_v1 = vmax.f32 %v1880_v30, 0.0  ;;  %v1769_v59 = vpop.f32.mrb[125].mxu1  ;;  %v1882_v36 = vpop.f32.mrb[125].mxu0 }
 0x248   : > { %v2893_v6 = vmax.f32 %v1769_v59, 0.0  ;;  %v2655_v20 = vmax.f32 %v1882_v36, 0.0  ;;  %v1771_v58 = vpop.f32.mrb[126].mxu1  ;;  %v1884_v28 = vpop.f32.mrb[126].mxu0 }
 0x249   : > { %v3218_v47 = vmax.f32 %v4987_v16, %v2892_v24  ;;  %v3266_v57 = vmax.f32 %v4989_v39, %v2654_v1  ;;  %v2907_v51 = vmax.f32 %v1771_v58, 0.0  ;;  %v2669_v26 = vmax.f32 %v1884_v28, 0.0  ;;  %v1886_v61 = vpop.f32.mrb[127].mxu0  ;;  %v1773_v13 = vpop.f32.mrb[127].mxu1 }
 0x24a   : > { %v2670_v34 = vmax.f32 %v1886_v61, 0.0  ;;  %v2908_v60 = vmax.f32 %v1773_v13, 0.0 }
 0x24b   : > { %v5114_v27 = vmax.f32 %v3218_v47, %v2893_v6  ;;  %v5116_v55 = vmax.f32 %v3266_v57, %v2655_v20  ;;  %v3219_v35 = vmax.f32 %v4996_v29, %v2907_v51  ;;  %v3267_v48 = vmax.f32 %v4998_v25, %v2669_v26  ;;  %2375 = vmatmul.mubr.bf16.gmra.mrb[232].mxu0 %v4129_v63  ;;  %v4130_v57 = vld [vmem:[%s4429_s3 + $0x78] sm:$0xff]  }
 0x24c   : > { %3832 = vmatmul.mubr.bf16.gmra.mrb[232].mxu1 %v4128_v31  ;;  %2384 = vmatprep.mubr.bf16.mxu0 %v5529_v7 }
 0x24d   : > { %v5122_v16 = vmax.f32 %v3267_v48, %v2670_v34  ;;  %v5124_v39 = vmax.f32 %v3219_v35, %v2908_v60  ;;  %3835 = vmatprep.mubr.bf16.mxu1 %v4129_v63 }
 0x24e   : > { %v1777_v12 = vpop.f32.mrb[128].mxu1  ;;  %v1890_v22 = vpop.f32.mrb[128].mxu0 }
 0x24f   : > { %v2922_v10 = vmax.f32 %v1777_v12, 0.0  ;;  %v2684_v11 = vmax.f32 %v1890_v22, 0.0  ;;  %v1779_v62 = vpop.f32.mrb[129].mxu1  ;;  %v1892_v40 = vpop.f32.mrb[129].mxu0 }
 0x250   : > { %v2923_v3 = vmax.f32 %v1779_v62, 0.0  ;;  %v2685_v29 = vmax.f32 %v1892_v40, 0.0  ;;  %v1781_v25 = vpop.f32.mrb[130].mxu1  ;;  %v1894_v45 = vpop.f32.mrb[130].mxu0 }
 0x251   : > { %v3220_v31 = vmax.f32 %v5003_v43, %v2922_v10  ;;  %v3268_v7 = vmax.f32 %v5005_v14, %v2684_v11  ;;  %v2937_v30 = vmax.f32 %v1781_v25, 0.0  ;;  %v2699_v24 = vmax.f32 %v1894_v45, 0.0  ;;  %v1896_v1 = vpop.f32.mrb[131].mxu0  ;;  %v1783_v59 = vpop.f32.mrb[131].mxu1 }
 0x252   : > { %v2700_v36 = vmax.f32 %v1896_v1, 0.0  ;;  %v2938_v6 = vmax.f32 %v1783_v59, 0.0 }
 0x253   : > { %v5128_v20 = vmax.f32 %v3220_v31, %v2923_v3  ;;  %v5130_v58 = vmax.f32 %v3268_v7, %v2685_v29  ;;  %v3221_v28 = vmax.f32 %v5012_v41, %v2937_v30  ;;  %v3269_v47 = vmax.f32 %v5014_v37, %v2699_v24  ;;  %2385 = vmatmul.mubr.bf16.gmra.mrb[236].mxu0 %v4130_v57 }
 0x254   : > { %3836 = vmatmul.mubr.bf16.gmra.mrb[236].mxu1 %v4130_v57 }
 0x255   : > { %v5135_v43 = vmax.f32 %v3269_v47, %v2700_v36  ;;  %v5137_v14 = vmax.f32 %v3221_v28, %v2938_v6 }
 0x256   : > { %v1787_v51 = vpop.f32.mrb[132].mxu1  ;;  %v1900_v26 = vpop.f32.mrb[132].mxu0 }
 0x257   : > { %v2952_v61 = vmax.f32 %v1787_v51, 0.0  ;;  %v2714_v13 = vmax.f32 %v1900_v26, 0.0  ;;  %v1789_v34 = vpop.f32.mrb[133].mxu1  ;;  %v1902_v60 = vpop.f32.mrb[133].mxu0 }
 0x258   : > { %v2953_v35 = vmax.f32 %v1789_v34, 0.0  ;;  %v2715_v48 = vmax.f32 %v1902_v60, 0.0  ;;  %v1791_v63 = vpop.f32.mrb[134].mxu1  ;;  %v1904_v12 = vpop.f32.mrb[134].mxu0 }
 0x259   : > { %v3222_v41 = vmax.f32 %v5019_v38, %v2952_v61  ;;  %v3270_v37 = vmax.f32 %v5021_v23, %v2714_v13  ;;  %v2967_v22 = vmax.f32 %v1791_v63, 0.0  ;;  %v2729_v10 = vmax.f32 %v1904_v12, 0.0  ;;  %v1906_v11 = vpop.f32.mrb[135].mxu0  ;;  %v1793_v62 = vpop.f32.mrb[135].mxu1 }
 0x25a   : > { %v2730_v40 = vmax.f32 %v1906_v11, 0.0  ;;  %v2968_v3 = vmax.f32 %v1793_v62, 0.0 }
 0x25b   : > { %v5141_v29 = vmax.f32 %v3222_v41, %v2953_v35  ;;  %v5143_v25 = vmax.f32 %v3270_v37, %v2715_v48  ;;  %v3223_v45 = vmax.f32 %v5028_v33, %v2967_v22  ;;  %v3271_v31 = vmax.f32 %v5030_v32, %v2729_v10 }
 0x25d   : > { %v5147_v7 = vmax.f32 %v3271_v31, %v2730_v40  ;;  %v5149_v30 = vmax.f32 %v3223_v45, %v2968_v3 }
 0x25e   : > { %v1797_v38 = vpop.f32.mrb[136].mxu1  ;;  %v1910_v23 = vpop.f32.mrb[136].mxu0 }
 0x25f   : > { %v2982_v24 = vmax.f32 %v1797_v38, 0.0  ;;  %v2744_v1 = vmax.f32 %v1910_v23, 0.0  ;;  %v1799_v59 = vpop.f32.mrb[137].mxu1  ;;  %v1912_v36 = vpop.f32.mrb[137].mxu0 }
 0x260   : > { %v2983_v6 = vmax.f32 %v1799_v59, 0.0  ;;  %v2745_v28 = vmax.f32 %v1912_v36, 0.0  ;;  %v1801_v47 = vpop.f32.mrb[138].mxu1  ;;  %v1914_v57 = vpop.f32.mrb[138].mxu0 }
 0x261   : > { %v3224_v51 = vmax.f32 %v5035_v2, %v2982_v24  ;;  %v3272_v33 = vmax.f32 %v5037_v8, %v2744_v1  ;;  %v2997_v26 = vmax.f32 %v1801_v47, 0.0  ;;  %v2759_v32 = vmax.f32 %v1914_v57, 0.0  ;;  %v1916_v61 = vpop.f32.mrb[139].mxu0  ;;  %v1803_v13 = vpop.f32.mrb[139].mxu1 }
 0x262   : > { %v2760_v34 = vmax.f32 %v1916_v61, 0.0  ;;  %v2998_v60 = vmax.f32 %v1803_v13, 0.0 }
 0x263   : > { %v5153_v35 = vmax.f32 %v3224_v51, %v2983_v6  ;;  %v5155_v48 = vmax.f32 %v3272_v33, %v2745_v28  ;;  %v3225_v63 = vmax.f32 %v5044_v0, %v2997_v26  ;;  %v3273_v12 = vmax.f32 %v5046_v42, %v2759_v32 }
 0x265   : > { %v5159_v41 = vmax.f32 %v3273_v12, %v2760_v34  ;;  %v5161_v37 = vmax.f32 %v3225_v63, %v2998_v60 }
 0x266   : > { %v1807_v2 = vpop.f32.mrb[140].mxu1  ;;  %v1920_v8 = vpop.f32.mrb[140].mxu0 }
 0x267   : > { %v3012_v22 = vmax.f32 %v1807_v2, 0.0  ;;  %v2774_v10 = vmax.f32 %v1920_v8, 0.0  ;;  %v1809_v11 = vpop.f32.mrb[141].mxu1  ;;  %v1922_v62 = vpop.f32.mrb[141].mxu0 }
 0x268   : > { %v3013_v40 = vmax.f32 %v1809_v11, 0.0  ;;  %v2775_v3 = vmax.f32 %v1922_v62, 0.0  ;;  %v1811_v45 = vpop.f32.mrb[142].mxu1  ;;  %v1924_v31 = vpop.f32.mrb[142].mxu0 }
 0x269   : > { %v3226_v38 = vmax.f32 %v5051_v19, %v3012_v22  ;;  %v3274_v0 = vmax.f32 %v5053_v4, %v2774_v10  ;;  %v3027_v23 = vmax.f32 %v1811_v45, 0.0  ;;  %v2789_v42 = vmax.f32 %v1924_v31, 0.0  ;;  %v1926_v24 = vpop.f32.mrb[143].mxu0  ;;  %v1813_v1 = vpop.f32.mrb[143].mxu1 }
 0x26a   : > { %v2790_v59 = vmax.f32 %v1926_v24, 0.0  ;;  %v3028_v36 = vmax.f32 %v1813_v1, 0.0 }
 0x26b   : > { %v5165_v6 = vmax.f32 %v3226_v38, %v3013_v40  ;;  %v5167_v28 = vmax.f32 %v3274_v0, %v2775_v3  ;;  %v3227_v47 = vmax.f32 %v5060_v56, %v3027_v23  ;;  %v3275_v57 = vmax.f32 %v5062_v50, %v2789_v42 }
 0x26d   : > { %v5171_v51 = vmax.f32 %v3275_v57, %v2790_v59  ;;  %v5173_v33 = vmax.f32 %v3227_v47, %v3028_v36 }
 0x26e   : > { %v1930_v19 = vpop.f32.mrb[144].mxu0  ;;  %v2043_v4 = vpop.f32.mrb[144].mxu1 }
 0x26f   : > { %v2804_v26 = vmax.f32 %v1930_v19, 0.0  ;;  %v2566_v32 = vmax.f32 %v2043_v4, 0.0  ;;  %v1932_v61 = vpop.f32.mrb[145].mxu0  ;;  %v2045_v13 = vpop.f32.mrb[145].mxu1 }
 0x270   : > { %v2805_v34 = vmax.f32 %v1932_v61, 0.0  ;;  %v2567_v60 = vmax.f32 %v2045_v13, 0.0  ;;  %v1934_v63 = vpop.f32.mrb[146].mxu0  ;;  %v2047_v12 = vpop.f32.mrb[146].mxu1 }
 0x271   : > { %v3276_v2 = vmax.f32 %v5067_v44, %v2804_v26  ;;  %v3324_v56 = vmax.f32 %v5069_v49, %v2566_v32  ;;  %v2819_v8 = vmax.f32 %v1934_v63, 0.0  ;;  %v2581_v50 = vmax.f32 %v2047_v12, 0.0  ;;  %v1936_v22 = vpop.f32.mrb[147].mxu0  ;;  %v2049_v10 = vpop.f32.mrb[147].mxu1 }
 0x272   : > { %v2820_v11 = vmax.f32 %v1936_v22, 0.0  ;;  %v2582_v62 = vmax.f32 %v2049_v10, 0.0 }
 0x273   : > { %v5177_v40 = vmax.f32 %v3276_v2, %v2805_v34  ;;  %v5179_v3 = vmax.f32 %v3324_v56, %v2567_v60  ;;  %v3277_v45 = vmax.f32 %v5078_v17, %v2819_v8  ;;  %v3325_v31 = vmax.f32 %v5076_v53, %v2581_v50 }
 0x275   : > { %v5183_v38 = vmax.f32 %v3277_v45, %v2820_v11  ;;  %v5185_v0 = vmax.f32 %v3325_v31, %v2582_v62 }
 0x276   : > { %v1940_v44 = vpop.f32.mrb[148].mxu0  ;;  %v2053_v49 = vpop.f32.mrb[148].mxu1 }
 0x277   : > { %v2834_v23 = vmax.f32 %v1940_v44, 0.0  ;;  %v2596_v42 = vmax.f32 %v2053_v49, 0.0  ;;  %v1942_v24 = vpop.f32.mrb[149].mxu0  ;;  %v2055_v1 = vpop.f32.mrb[149].mxu1 }
 0x278   : > { %v2835_v59 = vmax.f32 %v1942_v24, 0.0  ;;  %v2597_v36 = vmax.f32 %v2055_v1, 0.0  ;;  %v1944_v47 = vpop.f32.mrb[150].mxu0  ;;  %v2057_v57 = vpop.f32.mrb[150].mxu1 }
 0x279   : > { %v3278_v19 = vmax.f32 %v5083_v9, %v2834_v23  ;;  %v3326_v17 = vmax.f32 %v5085_v18, %v2596_v42  ;;  %v2849_v4 = vmax.f32 %v1944_v47, 0.0  ;;  %v2611_v53 = vmax.f32 %v2057_v57, 0.0  ;;  %v1946_v26 = vpop.f32.mrb[151].mxu0  ;;  %v2059_v32 = vpop.f32.mrb[151].mxu1 }
 0x27a   : > { %v2850_v61 = vmax.f32 %v1946_v26, 0.0  ;;  %v2612_v13 = vmax.f32 %v2059_v32, 0.0 }
 0x27b   : > { %v5189_v34 = vmax.f32 %v3278_v19, %v2835_v59  ;;  %v5191_v60 = vmax.f32 %v3326_v17, %v2597_v36  ;;  %v3279_v63 = vmax.f32 %v5094_v46, %v2849_v4  ;;  %v3327_v12 = vmax.f32 %v5092_v15, %v2611_v53 }
 0x27d   : > { %v5195_v2 = vmax.f32 %v3279_v63, %v2850_v61  ;;  %v5197_v56 = vmax.f32 %v3327_v12, %v2612_v13 }
 0x27e   : > { %v1950_v9 = vpop.f32.mrb[152].mxu0  ;;  %v2063_v18 = vpop.f32.mrb[152].mxu1 }
 0x27f   : > { %v2864_v8 = vmax.f32 %v1950_v9, 0.0  ;;  %v2626_v50 = vmax.f32 %v2063_v18, 0.0  ;;  %v1952_v22 = vpop.f32.mrb[153].mxu0  ;;  %v2065_v10 = vpop.f32.mrb[153].mxu1 }
 0x280   : > { %v2865_v11 = vmax.f32 %v1952_v22, 0.0  ;;  %v2627_v62 = vmax.f32 %v2065_v10, 0.0  ;;  %v1954_v45 = vpop.f32.mrb[154].mxu0  ;;  %v2067_v31 = vpop.f32.mrb[154].mxu1 }
 0x281   : > { %v3280_v44 = vmax.f32 %v5099_v21, %v2864_v8  ;;  %v3328_v46 = vmax.f32 %v5101_v5, %v2626_v50  ;;  %v2879_v49 = vmax.f32 %v1954_v45, 0.0  ;;  %v2641_v15 = vmax.f32 %v2067_v31, 0.0  ;;  %v1956_v23 = vpop.f32.mrb[155].mxu0  ;;  %v2069_v42 = vpop.f32.mrb[155].mxu1 }
 0x282   : > { %v2880_v24 = vmax.f32 %v1956_v23, 0.0  ;;  %v2642_v1 = vmax.f32 %v2069_v42, 0.0 }
 0x283   : > { %v5201_v59 = vmax.f32 %v3280_v44, %v2865_v11  ;;  %v5203_v36 = vmax.f32 %v3328_v46, %v2627_v62  ;;  %v3281_v47 = vmax.f32 %v5110_v52, %v2879_v49  ;;  %v3329_v57 = vmax.f32 %v5108_v54, %v2641_v15 }
 0x285   : > { %v5207_v19 = vmax.f32 %v3281_v47, %v2880_v24  ;;  %v5209_v17 = vmax.f32 %v3329_v57, %v2642_v1 }
 0x286   : > { %v1960_v21 = vpop.f32.mrb[156].mxu0 }
 0x287   : > { %v2894_v5 = vmax.f32 %v1960_v21, 0.0  ;;  %v2073_v4 = vpop.f32.mrb[156].mxu1  ;;  %v1962_v53 = vpop.f32.mrb[157].mxu0 }
 0x288   : > { %v2656_v26 = vmax.f32 %v2073_v4, 0.0  ;;  %v2895_v32 = vmax.f32 %v1962_v53, 0.0  ;;  %v2075_v61 = vpop.f32.mrb[157].mxu1  ;;  %v1964_v13 = vpop.f32.mrb[158].mxu0 }
 0x289   : > { %v3282_v63 = vmax.f32 %v5114_v27, %v2894_v5  ;;  %v2657_v12 = vmax.f32 %v2075_v61, 0.0  ;;  %v2909_v9 = vmax.f32 %v1964_v13, 0.0  ;;  %v2077_v18 = vpop.f32.mrb[158].mxu1  ;;  %v1966_v52 = vpop.f32.mrb[159].mxu0 }
 0x28a   : > { %v3330_v54 = vmax.f32 %v5116_v55, %v2656_v26  ;;  %v2671_v8 = vmax.f32 %v2077_v18, 0.0  ;;  %v2910_v50 = vmax.f32 %v1966_v52, 0.0  ;;  %v2079_v22 = vpop.f32.mrb[159].mxu1 }
 0x28b   : > { %v5213_v10 = vmax.f32 %v3282_v63, %v2895_v32  ;;  %v3283_v11 = vmax.f32 %v5124_v39, %v2909_v9  ;;  %v2672_v62 = vmax.f32 %v2079_v22, 0.0 }
 0x28c   : > { %v5216_v45 = vmax.f32 %v3330_v54, %v2657_v12  ;;  %v3331_v31 = vmax.f32 %v5122_v16, %v2671_v8 }
 0x28d   : > { %v5219_v44 = vmax.f32 %v3283_v11, %v2910_v50 }
 0x28e   : > { %v5221_v27 = vmax.f32 %v3331_v31, %v2672_v62  ;;  %v1970_v46 = vpop.f32.mrb[160].mxu0 }
 0x28f   : > { %v2924_v49 = vmax.f32 %v1970_v46, 0.0  ;;  %v2083_v15 = vpop.f32.mrb[160].mxu1  ;;  %v1972_v55 = vpop.f32.mrb[161].mxu0 }
 0x290   : > { %v2686_v23 = vmax.f32 %v2083_v15, 0.0  ;;  %v2925_v42 = vmax.f32 %v1972_v55, 0.0  ;;  %v2085_v24 = vpop.f32.mrb[161].mxu1  ;;  %v1974_v1 = vpop.f32.mrb[162].mxu0 }
 0x291   : > { %v3284_v47 = vmax.f32 %v5128_v20, %v2924_v49  ;;  %v2687_v39 = vmax.f32 %v2085_v24, 0.0  ;;  %v2939_v57 = vmax.f32 %v1974_v1, 0.0  ;;  %v2087_v21 = vpop.f32.mrb[162].mxu1  ;;  %v1976_v5 = vpop.f32.mrb[163].mxu0 }
 0x292   : > { %v3332_v16 = vmax.f32 %v5130_v58, %v2686_v23  ;;  %v2701_v4 = vmax.f32 %v2087_v21, 0.0  ;;  %v2940_v53 = vmax.f32 %v1976_v5, 0.0  ;;  %v2089_v26 = vpop.f32.mrb[163].mxu1 }
 0x293   : > { %v5225_v32 = vmax.f32 %v3284_v47, %v2925_v42  ;;  %v3285_v61 = vmax.f32 %v5137_v14, %v2939_v57  ;;  %v2702_v13 = vmax.f32 %v2089_v26, 0.0 }
 0x294   : > { %v5228_v63 = vmax.f32 %v3332_v16, %v2687_v39  ;;  %v3333_v12 = vmax.f32 %v5135_v43, %v2701_v4 }
 0x295   : > { %v5231_v9 = vmax.f32 %v3285_v61, %v2940_v53 }
 0x296   : > { %v5233_v20 = vmax.f32 %v3333_v12, %v2702_v13  ;;  %v1980_v18 = vpop.f32.mrb[164].mxu0 }
 0x297   : > { %v2954_v52 = vmax.f32 %v1980_v18, 0.0  ;;  %v2093_v54 = vpop.f32.mrb[164].mxu1  ;;  %v1982_v58 = vpop.f32.mrb[165].mxu0 }
 0x298   : > { %v2716_v8 = vmax.f32 %v2093_v54, 0.0  ;;  %v2955_v50 = vmax.f32 %v1982_v58, 0.0  ;;  %v2095_v22 = vpop.f32.mrb[165].mxu1  ;;  %v1984_v11 = vpop.f32.mrb[166].mxu0 }
 0x299   : > { %v3286_v62 = vmax.f32 %v5141_v29, %v2954_v52  ;;  %v2717_v14 = vmax.f32 %v2095_v22, 0.0  ;;  %v2969_v31 = vmax.f32 %v1984_v11, 0.0  ;;  %v2097_v46 = vpop.f32.mrb[166].mxu1  ;;  %v1986_v49 = vpop.f32.mrb[167].mxu0 }
 0x29a   : > { %v3334_v43 = vmax.f32 %v5143_v25, %v2716_v8  ;;  %v2731_v15 = vmax.f32 %v2097_v46, 0.0  ;;  %v2970_v55 = vmax.f32 %v1986_v49, 0.0  ;;  %v2099_v23 = vpop.f32.mrb[167].mxu1 }
 0x29b   : > { %v5237_v42 = vmax.f32 %v3286_v62, %v2955_v50  ;;  %v3287_v24 = vmax.f32 %v5149_v30, %v2969_v31  ;;  %v2732_v1 = vmax.f32 %v2099_v23, 0.0 }
 0x29c   : > { %v5240_v47 = vmax.f32 %v3334_v43, %v2717_v14  ;;  %v3335_v39 = vmax.f32 %v5147_v7, %v2731_v15 }
 0x29d   : > { %v5243_v57 = vmax.f32 %v3287_v24, %v2970_v55 }
 0x29e   : > { %v5245_v29 = vmax.f32 %v3335_v39, %v2732_v1  ;;  %v1990_v21 = vpop.f32.mrb[168].mxu0 }
 0x29f   : > { %v2984_v5 = vmax.f32 %v1990_v21, 0.0  ;;  %v2103_v16 = vpop.f32.mrb[168].mxu1  ;;  %v1992_v25 = vpop.f32.mrb[169].mxu0 }
 0x2a0   : > { %v2746_v4 = vmax.f32 %v2103_v16, 0.0  ;;  %v2985_v53 = vmax.f32 %v1992_v25, 0.0  ;;  %v2105_v26 = vpop.f32.mrb[169].mxu1  ;;  %v1994_v61 = vpop.f32.mrb[170].mxu0 }
 0x2a1   : > { %v3288_v13 = vmax.f32 %v5153_v35, %v2984_v5  ;;  %v2747_v30 = vmax.f32 %v2105_v26, 0.0  ;;  %v2999_v12 = vmax.f32 %v1994_v61, 0.0  ;;  %v2107_v18 = vpop.f32.mrb[170].mxu1  ;;  %v1996_v52 = vpop.f32.mrb[171].mxu0 }
 0x2a2   : > { %v3336_v7 = vmax.f32 %v5155_v48, %v2746_v4  ;;  %v2761_v54 = vmax.f32 %v2107_v18, 0.0  ;;  %v3000_v58 = vmax.f32 %v1996_v52, 0.0  ;;  %v2109_v8 = vpop.f32.mrb[171].mxu1 }
 0x2a3   : > { %v5249_v50 = vmax.f32 %v3288_v13, %v2985_v53  ;;  %v3289_v22 = vmax.f32 %v5161_v37, %v2999_v12  ;;  %v2762_v11 = vmax.f32 %v2109_v8, 0.0 }
 0x2a4   : > { %v5252_v62 = vmax.f32 %v3336_v7, %v2747_v30  ;;  %v3337_v14 = vmax.f32 %v5159_v41, %v2761_v54 }
 0x2a5   : > { %v5255_v31 = vmax.f32 %v3289_v22, %v3000_v58 }
 0x2a6   : > { %v5257_v35 = vmax.f32 %v3337_v14, %v2762_v11  ;;  %v2000_v46 = vpop.f32.mrb[172].mxu0 }
 0x2a7   : > { %v3014_v49 = vmax.f32 %v2000_v46, 0.0  ;;  %v2113_v43 = vpop.f32.mrb[172].mxu1  ;;  %v2002_v48 = vpop.f32.mrb[173].mxu0 }
 0x2a8   : > { %v2776_v15 = vmax.f32 %v2113_v43, 0.0  ;;  %v3015_v55 = vmax.f32 %v2002_v48, 0.0  ;;  %v2115_v23 = vpop.f32.mrb[173].mxu1  ;;  %v2004_v24 = vpop.f32.mrb[174].mxu0 }
 0x2a9   : > { %v3290_v1 = vmax.f32 %v5165_v6, %v3014_v49  ;;  %v2777_v37 = vmax.f32 %v2115_v23, 0.0  ;;  %v3029_v39 = vmax.f32 %v2004_v24, 0.0  ;;  %v2117_v21 = vpop.f32.mrb[174].mxu1  ;;  %v2006_v5 = vpop.f32.mrb[175].mxu0 }
 0x2aa   : > { %v3338_v41 = vmax.f32 %v5167_v28, %v2776_v15  ;;  %v2791_v16 = vmax.f32 %v2117_v21, 0.0  ;;  %v3030_v25 = vmax.f32 %v2006_v5, 0.0  ;;  %v2119_v4 = vpop.f32.mrb[175].mxu1 }
 0x2ab   : > { %v5261_v53 = vmax.f32 %v3290_v1, %v3015_v55  ;;  %v3291_v26 = vmax.f32 %v5173_v33, %v3029_v39  ;;  %v2792_v61 = vmax.f32 %v2119_v4, 0.0 }
 0x2ac   : > { %v5264_v13 = vmax.f32 %v3338_v41, %v2777_v37  ;;  %v3339_v30 = vmax.f32 %v5171_v51, %v2791_v16 }
 0x2ad   : > { %v5267_v12 = vmax.f32 %v3291_v26, %v3030_v25 }
 0x2ae   : > { %v5269_v6 = vmax.f32 %v3339_v30, %v2792_v61  ;;  %v2236_v18 = vpop.f32.mrb[176].mxu0 }
 0x2af   : > { %v2123_v52 = vpop.f32.mrb[176].mxu1  ;;  %v2568_v7 = vmax.f32 %v2236_v18, 0.0  ;;  %v2238_v28 = vpop.f32.mrb[177].mxu0 }
 0x2b0   : > { %v2806_v54 = vmax.f32 %v2123_v52, 0.0  ;;  %v2125_v58 = vpop.f32.mrb[177].mxu1  ;;  %v2569_v8 = vmax.f32 %v2238_v28, 0.0  ;;  %v2240_v22 = vpop.f32.mrb[178].mxu0 }
 0x2b1   : > { %v3388_v11 = vmax.f32 %v5179_v3, %v2568_v7  ;;  %v2807_v33 = vmax.f32 %v2125_v58, 0.0  ;;  %v2127_v14 = vpop.f32.mrb[178].mxu1  ;;  %v2583_v46 = vmax.f32 %v2240_v22, 0.0  ;;  %v2242_v49 = vpop.f32.mrb[179].mxu0 }
 0x2b2   : > { %v3340_v51 = vmax.f32 %v5177_v40, %v2806_v54  ;;  %v2821_v43 = vmax.f32 %v2127_v14, 0.0  ;;  %v2584_v48 = vmax.f32 %v2242_v49, 0.0  ;;  %v2129_v15 = vpop.f32.mrb[179].mxu1 }
 0x2b3   : > { %v5273_v55 = vmax.f32 %v3388_v11, %v2569_v8  ;;  %v3389_v23 = vmax.f32 %v5185_v0, %v2583_v46  ;;  %v2822_v24 = vmax.f32 %v2129_v15, 0.0 }
 0x2b4   : > { %v5276_v1 = vmax.f32 %v3340_v51, %v2807_v33  ;;  %v3341_v37 = vmax.f32 %v5183_v38, %v2821_v43 }
 0x2b5   : > { %v5279_v39 = vmax.f32 %v3389_v23, %v2584_v48 }
 0x2b6   : > { %v5281_v3 = vmax.f32 %v3341_v37, %v2822_v24  ;;  %v2246_v21 = vpop.f32.mrb[180].mxu0 }
 0x2b7   : > { %v2133_v5 = vpop.f32.mrb[180].mxu1  ;;  %v2598_v41 = vmax.f32 %v2246_v21, 0.0  ;;  %v2248_v40 = vpop.f32.mrb[181].mxu0 }
 0x2b8   : > { %v2836_v16 = vmax.f32 %v2133_v5, 0.0  ;;  %v2135_v25 = vpop.f32.mrb[181].mxu1  ;;  %v2599_v4 = vmax.f32 %v2248_v40, 0.0  ;;  %v2250_v26 = vpop.f32.mrb[182].mxu0 }
 0x2b9   : > { %v3390_v61 = vmax.f32 %v5191_v60, %v2598_v41  ;;  %v2837_v0 = vmax.f32 %v2135_v25, 0.0  ;;  %v2137_v30 = vpop.f32.mrb[182].mxu1  ;;  %v2613_v18 = vmax.f32 %v2250_v26, 0.0  ;;  %v2252_v52 = vpop.f32.mrb[183].mxu0 }
 0x2ba   : > { %v3342_v38 = vmax.f32 %v5189_v34, %v2836_v16  ;;  %v2851_v7 = vmax.f32 %v2137_v30, 0.0  ;;  %v2614_v28 = vmax.f32 %v2252_v52, 0.0  ;;  %v2139_v54 = vpop.f32.mrb[183].mxu1 }
 0x2bb   : > { %v5285_v58 = vmax.f32 %v3390_v61, %v2599_v4  ;;  %v3391_v8 = vmax.f32 %v5197_v56, %v2613_v18  ;;  %v2852_v22 = vmax.f32 %v2139_v54, 0.0 }
 0x2bc   : > { %v5288_v11 = vmax.f32 %v3342_v38, %v2837_v0  ;;  %v3343_v33 = vmax.f32 %v5195_v2, %v2851_v7 }
 0x2bd   : > { %v5291_v14 = vmax.f32 %v3391_v8, %v2614_v28 }
 0x2be   : > { %v5293_v60 = vmax.f32 %v3343_v33, %v2852_v22  ;;  %v2256_v46 = vpop.f32.mrb[184].mxu0 }
 0x2bf   : > { %v2143_v49 = vpop.f32.mrb[184].mxu1  ;;  %v2628_v51 = vmax.f32 %v2256_v46, 0.0  ;;  %v2258_v34 = vpop.f32.mrb[185].mxu0 }
 0x2c0   : > { %v2866_v43 = vmax.f32 %v2143_v49, 0.0  ;;  %v2145_v48 = vpop.f32.mrb[185].mxu1  ;;  %v2629_v15 = vmax.f32 %v2258_v34, 0.0  ;;  %v2260_v23 = vpop.f32.mrb[186].mxu0 }
 0x2c1   : > { %v3392_v24 = vmax.f32 %v5203_v36, %v2628_v51  ;;  %v2867_v56 = vmax.f32 %v2145_v48, 0.0  ;;  %v2147_v37 = vpop.f32.mrb[186].mxu1  ;;  %v2643_v21 = vmax.f32 %v2260_v23, 0.0  ;;  %v2262_v5 = vpop.f32.mrb[187].mxu0 }
 0x2c2   : > { %v3344_v2 = vmax.f32 %v5201_v59, %v2866_v43  ;;  %v2881_v41 = vmax.f32 %v2147_v37, 0.0  ;;  %v2644_v40 = vmax.f32 %v2262_v5, 0.0  ;;  %v2149_v16 = vpop.f32.mrb[187].mxu1 }
 0x2c3   : > { %v5297_v25 = vmax.f32 %v3392_v24, %v2629_v15  ;;  %v3393_v4 = vmax.f32 %v5209_v17, %v2643_v21  ;;  %v2882_v26 = vmax.f32 %v2149_v16, 0.0 }
 0x2c4   : > { %v5300_v61 = vmax.f32 %v3344_v2, %v2867_v56  ;;  %v3345_v0 = vmax.f32 %v5207_v19, %v2881_v41 }
 0x2c5   : > { %v5303_v30 = vmax.f32 %v3393_v4, %v2644_v40 }
 0x2c6   : > { %v5305_v36 = vmax.f32 %v3345_v0, %v2882_v26  ;;  %v2266_v18 = vpop.f32.mrb[188].mxu0 }
 0x2c7   : > { %v2153_v52 = vpop.f32.mrb[188].mxu1  ;;  %v2658_v38 = vmax.f32 %v2266_v18, 0.0  ;;  %v2268_v59 = vpop.f32.mrb[189].mxu0 }
 0x2c8   : > { %v2896_v7 = vmax.f32 %v2153_v52, 0.0  ;;  %v2155_v28 = vpop.f32.mrb[189].mxu1  ;;  %v2659_v54 = vmax.f32 %v2268_v59, 0.0  ;;  %v2270_v8 = vpop.f32.mrb[190].mxu0 }
 0x2c9   : > { %v3394_v22 = vmax.f32 %v5216_v45, %v2658_v38  ;;  %v2897_v17 = vmax.f32 %v2155_v28, 0.0  ;;  %v2157_v33 = vpop.f32.mrb[190].mxu1  ;;  %v2673_v46 = vmax.f32 %v2270_v8, 0.0  ;;  %v2272_v49 = vpop.f32.mrb[191].mxu0 }
 0x2ca   : > { %v3346_v19 = vmax.f32 %v5213_v10, %v2896_v7  ;;  %v2911_v51 = vmax.f32 %v2157_v33, 0.0  ;;  %v2674_v34 = vmax.f32 %v2272_v49, 0.0  ;;  %v2159_v43 = vpop.f32.mrb[191].mxu1 }
 0x2cb   : > { %v5309_v48 = vmax.f32 %v3394_v22, %v2659_v54  ;;  %v3395_v15 = vmax.f32 %v5221_v27, %v2673_v46  ;;  %v2912_v23 = vmax.f32 %v2159_v43, 0.0 }
 0x2cc   : > { %v5312_v24 = vmax.f32 %v3346_v19, %v2897_v17  ;;  %v3347_v56 = vmax.f32 %v5219_v44, %v2911_v51 }
 0x2cd   : > { %v5315_v37 = vmax.f32 %v3395_v15, %v2674_v34 }
 0x2ce   : > { %v5317_v45 = vmax.f32 %v3347_v56, %v2912_v23  ;;  %v2276_v21 = vpop.f32.mrb[192].mxu0 }
 0x2cf   : > { %v2163_v5 = vpop.f32.mrb[192].mxu1  ;;  %v2688_v2 = vmax.f32 %v2276_v21, 0.0  ;;  %v2278_v10 = vpop.f32.mrb[193].mxu0 }
 0x2d0   : > { %v2926_v41 = vmax.f32 %v2163_v5, 0.0  ;;  %v2165_v40 = vpop.f32.mrb[193].mxu1  ;;  %v2689_v16 = vmax.f32 %v2278_v10, 0.0  ;;  %v2280_v4 = vpop.f32.mrb[194].mxu0 }
 0x2d1   : > { %v3396_v26 = vmax.f32 %v5228_v63, %v2688_v2  ;;  %v2927_v27 = vmax.f32 %v2165_v40, 0.0  ;;  %v2167_v0 = vpop.f32.mrb[194].mxu1  ;;  %v2703_v18 = vmax.f32 %v2280_v4, 0.0  ;;  %v2282_v52 = vpop.f32.mrb[195].mxu0 }
 0x2d2   : > { %v3348_v44 = vmax.f32 %v5225_v32, %v2926_v41  ;;  %v2941_v38 = vmax.f32 %v2167_v0, 0.0  ;;  %v2704_v59 = vmax.f32 %v2282_v52, 0.0  ;;  %v2169_v7 = vpop.f32.mrb[195].mxu1 }
 0x2d3   : > { %v5321_v28 = vmax.f32 %v3396_v26, %v2689_v16  ;;  %v3397_v54 = vmax.f32 %v5233_v20, %v2703_v18  ;;  %v2942_v8 = vmax.f32 %v2169_v7, 0.0 }
 0x2d4   : > { %v5324_v22 = vmax.f32 %v3348_v44, %v2927_v27  ;;  %v3349_v17 = vmax.f32 %v5231_v9, %v2941_v38 }
 0x2d5   : > { %v5327_v33 = vmax.f32 %v3397_v54, %v2704_v59 }
 0x2d6   : > { %v5329_v63 = vmax.f32 %v3349_v17, %v2942_v8  ;;  %v2286_v46 = vpop.f32.mrb[196].mxu0 }
 0x2d7   : > { %v2173_v49 = vpop.f32.mrb[196].mxu1  ;;  %v2718_v19 = vmax.f32 %v2286_v46, 0.0  ;;  %v2288_v32 = vpop.f32.mrb[197].mxu0 }
 0x2d8   : > { %v2956_v51 = vmax.f32 %v2173_v49, 0.0  ;;  %v2175_v34 = vpop.f32.mrb[197].mxu1  ;;  %v2719_v43 = vmax.f32 %v2288_v32, 0.0  ;;  %v2290_v15 = vpop.f32.mrb[198].mxu0 }
 0x2d9   : > { %v3398_v23 = vmax.f32 %v5240_v47, %v2718_v19  ;;  %v2957_v20 = vmax.f32 %v2175_v34, 0.0  ;;  %v2177_v56 = vpop.f32.mrb[198].mxu1  ;;  %v2733_v21 = vmax.f32 %v2290_v15, 0.0  ;;  %v2292_v5 = vpop.f32.mrb[199].mxu0 }
 0x2da   : > { %v3350_v9 = vmax.f32 %v5237_v42, %v2956_v51  ;;  %v2971_v2 = vmax.f32 %v2177_v56, 0.0  ;;  %v2734_v10 = vmax.f32 %v2292_v5, 0.0  ;;  %v2179_v41 = vpop.f32.mrb[199].mxu1 }
 0x2db   : > { %v5333_v40 = vmax.f32 %v3398_v23, %v2719_v43  ;;  %v3399_v16 = vmax.f32 %v5245_v29, %v2733_v21  ;;  %v2972_v4 = vmax.f32 %v2179_v41, 0.0 }
 0x2dc   : > { %v5336_v26 = vmax.f32 %v3350_v9, %v2957_v20  ;;  %v3351_v27 = vmax.f32 %v5243_v57, %v2971_v2 }
 0x2dd   : > { %v5339_v0 = vmax.f32 %v3399_v16, %v2734_v10 }
 0x2de   : > { %v5341_v47 = vmax.f32 %v3351_v27, %v2972_v4  ;;  %v2296_v18 = vpop.f32.mrb[200].mxu0 }
 0x2df   : > { %v2183_v52 = vpop.f32.mrb[200].mxu1  ;;  %v2748_v44 = vmax.f32 %v2296_v18, 0.0  ;;  %v2298_v42 = vpop.f32.mrb[201].mxu0 }
 0x2e0   : > { %v2986_v38 = vmax.f32 %v2183_v52, 0.0  ;;  %v2185_v59 = vpop.f32.mrb[201].mxu1  ;;  %v2749_v7 = vmax.f32 %v2298_v42, 0.0  ;;  %v2300_v54 = vpop.f32.mrb[202].mxu0 }
 0x2e1   : > { %v3400_v8 = vmax.f32 %v5252_v62, %v2748_v44  ;;  %v2987_v29 = vmax.f32 %v2185_v59, 0.0  ;;  %v2187_v17 = vpop.f32.mrb[202].mxu1  ;;  %v2763_v46 = vmax.f32 %v2300_v54, 0.0  ;;  %v2302_v49 = vpop.f32.mrb[203].mxu0 }
 0x2e2   : > { %v3352_v57 = vmax.f32 %v5249_v50, %v2986_v38  ;;  %v3001_v19 = vmax.f32 %v2187_v17, 0.0  ;;  %v2764_v32 = vmax.f32 %v2302_v49, 0.0  ;;  %v2189_v51 = vpop.f32.mrb[203].mxu1 }
 0x2e3   : > { %v5345_v34 = vmax.f32 %v3400_v8, %v2749_v7  ;;  %v3401_v43 = vmax.f32 %v5257_v35, %v2763_v46  ;;  %v3002_v15 = vmax.f32 %v2189_v51, 0.0 }
 0x2e4   : > { %v5348_v23 = vmax.f32 %v3352_v57, %v2987_v29  ;;  %v3353_v20 = vmax.f32 %v5255_v31, %v3001_v19 }
 0x2e5   : > { %v5351_v56 = vmax.f32 %v3401_v43, %v2764_v32 }
 0x2e6   : > { %v5353_v62 = vmax.f32 %v3353_v20, %v3002_v15  ;;  %v2306_v21 = vpop.f32.mrb[204].mxu0 }
 0x2e7   : > { %v2193_v5 = vpop.f32.mrb[204].mxu1  ;;  %v2778_v9 = vmax.f32 %v2306_v21, 0.0  ;;  %v2308_v50 = vpop.f32.mrb[205].mxu0 }
 0x2e8   : > { %v3016_v2 = vmax.f32 %v2193_v5, 0.0  ;;  %v2195_v10 = vpop.f32.mrb[205].mxu1  ;;  %v2779_v41 = vmax.f32 %v2308_v50, 0.0  ;;  %v2310_v16 = vpop.f32.mrb[206].mxu0 }
 0x2e9   : > { %v3402_v4 = vmax.f32 %v5264_v13, %v2778_v9  ;;  %v3017_v35 = vmax.f32 %v2195_v10, 0.0  ;;  %v2197_v27 = vpop.f32.mrb[206].mxu1  ;;  %v2793_v18 = vmax.f32 %v2310_v16, 0.0  ;;  %v2312_v52 = vpop.f32.mrb[207].mxu0 }
 0x2ea   : > { %v3354_v31 = vmax.f32 %v5261_v53, %v3016_v2  ;;  %v3031_v44 = vmax.f32 %v2197_v27, 0.0  ;;  %v2794_v42 = vmax.f32 %v2312_v52, 0.0  ;;  %v2199_v38 = vpop.f32.mrb[207].mxu1 }
 0x2eb   : > { %v5357_v59 = vmax.f32 %v3402_v4, %v2779_v41  ;;  %v3403_v7 = vmax.f32 %v5269_v6, %v2793_v18  ;;  %v3032_v54 = vmax.f32 %v2199_v38, 0.0 }
 0x2ec   : > { %v5360_v8 = vmax.f32 %v3354_v31, %v3017_v35  ;;  %v3355_v29 = vmax.f32 %v5267_v12, %v3031_v44 }
 0x2ed   : > { %v5363_v13 = vmax.f32 %v3403_v7, %v2794_v42 }
 0x2ee   : > { %v5365_v17 = vmax.f32 %v3355_v29, %v3032_v54  ;;  %v2316_v46 = vpop.f32.mrb[208].mxu0 }
 0x2ef   : > { %v2808_v49 = vmax.f32 %v2316_v46, 0.0  ;;  %v3809_v53 = vpop.f32.mrb[208].mxu1  ;;  %v2318_v57 = vpop.f32.mrb[209].mxu0 }
 0x2f0   : > { %v2600_v19 = vmax.f32 %v3809_v53, 0.0  ;;  %v2809_v32 = vmax.f32 %v2318_v57, 0.0  ;;  %v2429_v51 = vpop.f32.mrb[209].mxu1  ;;  %v2320_v43 = vpop.f32.mrb[210].mxu0 }
 0x2f1   : > { %v3404_v6 = vmax.f32 %v5276_v1, %v2808_v49  ;;  %v2570_v15 = vmax.f32 %v2429_v51, 0.0  ;;  %v2823_v20 = vmax.f32 %v2320_v43, 0.0  ;;  %v3810_v21 = vpop.f32.mrb[210].mxu1  ;;  %v2322_v5 = vpop.f32.mrb[211].mxu0 }
 0x2f2   : > { %v3454_v12 = vmax.f32 %v5285_v58, %v2600_v19  ;;  %v2615_v9 = vmax.f32 %v3810_v21, 0.0  ;;  %v2824_v50 = vmax.f32 %v2322_v5, 0.0  ;;  %v2432_v2 = vpop.f32.mrb[211].mxu1 }
 0x2f3   : > { %v5370_v10 = vmax.f32 %v3404_v6, %v2809_v32  ;;  %v3452_v41 = vmax.f32 %v5273_v55, %v2570_v15  ;;  %v3405_v16 = vmax.f32 %v5281_v3, %v2823_v20  ;;  %v2585_v4 = vmax.f32 %v2432_v2, 0.0 }
 0x2f4   : > { %3486 = vst [vmem:[%s5374_s17 + $0x10] sm:$0xff] %v3454_v12  ;;  %v3455_v1 = vmax.f32 %v5291_v14, %v2615_v9 }
 0x2f5   : > { %3484 = vst [vmem:[%s5374_s17] sm:$0xff] %v3452_v41  ;;  %v5379_v58 = vmax.f32 %v3405_v16, %v2824_v50  ;;  %v3453_v35 = vmax.f32 %v5279_v39, %v2585_v4 }
 0x2f6   : > { %3487 = vst [vmem:[%s5374_s17 + $0x18] sm:$0xff] %v3455_v1  ;;  %v2326_v27 = vpop.f32.mrb[212].mxu0 }
 0x2f7   : > { %3485 = vst [vmem:[%s5374_s17 + $0x8] sm:$0xff] %v3453_v35  ;;  %v2838_v55 = vmax.f32 %v2326_v27, 0.0  ;;  %v3813_v3 = vpop.f32.mrb[212].mxu1  ;;  %v2328_v18 = vpop.f32.mrb[213].mxu0 }
 0x2f8   : > { %v2660_v52 = vmax.f32 %v3813_v3, 0.0  ;;  %v2839_v31 = vmax.f32 %v2328_v18, 0.0  ;;  %v2445_v44 = vpop.f32.mrb[213].mxu1  ;;  %v2330_v42 = vpop.f32.mrb[214].mxu0 }
 0x2f9   : > { %v3406_v38 = vmax.f32 %v5288_v11, %v2838_v55  ;;  %v2630_v14 = vmax.f32 %v2445_v44, 0.0  ;;  %v2853_v7 = vmax.f32 %v2330_v42, 0.0  ;;  %v3814_v54 = vpop.f32.mrb[214].mxu1  ;;  %v2332_v29 = vpop.f32.mrb[215].mxu0 }
 0x2fa   : > { %v3458_v39 = vmax.f32 %v5309_v48, %v2660_v52  ;;  %v2675_v46 = vmax.f32 %v3814_v54, 0.0  ;;  %v2854_v49 = vmax.f32 %v2332_v29, 0.0  ;;  %v2448_v53 = vpop.f32.mrb[215].mxu1 }
 0x2fb   : > { %v5386_v57 = vmax.f32 %v3406_v38, %v2839_v31  ;;  %v3456_v19 = vmax.f32 %v5297_v25, %v2630_v14  ;;  %v3407_v32 = vmax.f32 %v5293_v60, %v2853_v7  ;;  %v2645_v51 = vmax.f32 %v2448_v53, 0.0 }
 0x2fc   : > { %3490 = vst [vmem:[%s5374_s17 + $0x30] sm:$0xff] %v3458_v39  ;;  %v3459_v11 = vmax.f32 %v5315_v37, %v2675_v46 }
 0x2fd   : > { %3488 = vst [vmem:[%s5374_s17 + $0x20] sm:$0xff] %v3456_v19  ;;  %v5393_v43 = vmax.f32 %v3407_v32, %v2854_v49  ;;  %v3457_v6 = vmax.f32 %v5303_v30, %v2645_v51 }
 0x2fe   : > { %3491 = vst [vmem:[%s5374_s17 + $0x38] sm:$0xff] %v3459_v11  ;;  %v2336_v48 = vpop.f32.mrb[216].mxu0 }
 0x2ff   : > { %3489 = vst [vmem:[%s5374_s17 + $0x28] sm:$0xff] %v3457_v6  ;;  %v2868_v15 = vmax.f32 %v2336_v48, 0.0  ;;  %v3817_v20 = vpop.f32.mrb[216].mxu1  ;;  %v2338_v21 = vpop.f32.mrb[217].mxu0 }
 0x300   : > { %v2720_v5 = vmax.f32 %v3817_v20, 0.0  ;;  %v2869_v12 = vmax.f32 %v2338_v21, 0.0  ;;  %v2461_v25 = vpop.f32.mrb[217].mxu1  ;;  %v2340_v60 = vpop.f32.mrb[218].mxu0 }
 0x301   : > { %v3408_v9 = vmax.f32 %v5300_v61, %v2868_v15  ;;  %v2690_v37 = vmax.f32 %v2461_v25, 0.0  ;;  %v2883_v50 = vmax.f32 %v2340_v60, 0.0  ;;  %v3818_v2 = vpop.f32.mrb[218].mxu1  ;;  %v2342_v41 = vpop.f32.mrb[219].mxu0 }
 0x302   : > { %v3462_v30 = vmax.f32 %v5333_v40, %v2720_v5  ;;  %v2735_v16 = vmax.f32 %v3818_v2, 0.0  ;;  %v2884_v4 = vmax.f32 %v2342_v41, 0.0  ;;  %v2464_v1 = vpop.f32.mrb[219].mxu1 }
 0x303   : > { %v5400_v35 = vmax.f32 %v3408_v9, %v2869_v12  ;;  %v3460_v27 = vmax.f32 %v5321_v28, %v2690_v37  ;;  %v3409_v55 = vmax.f32 %v5305_v36, %v2883_v50  ;;  %v2705_v3 = vmax.f32 %v2464_v1, 0.0 }
 0x304   : > { %3494 = vst [vmem:[%s5374_s17 + $0x50] sm:$0xff] %v3462_v30  ;;  %v3463_v61 = vmax.f32 %v5339_v0, %v2735_v16 }
 0x305   : > { %3492 = vst [vmem:[%s5374_s17 + $0x40] sm:$0xff] %v3460_v27  ;;  %v5407_v18 = vmax.f32 %v3409_v55, %v2884_v4  ;;  %v3461_v52 = vmax.f32 %v5327_v33, %v2705_v3 }
 0x306   : > { %3495 = vst [vmem:[%s5374_s17 + $0x58] sm:$0xff] %v3463_v61  ;;  %v2346_v40 = vpop.f32.mrb[220].mxu0 }
 0x307   : > { %3493 = vst [vmem:[%s5374_s17 + $0x48] sm:$0xff] %v3461_v52  ;;  %v2898_v31 = vmax.f32 %v2346_v40, 0.0  ;;  %v3821_v44 = vpop.f32.mrb[220].mxu1  ;;  %v2348_v42 = vpop.f32.mrb[221].mxu0 }
 0x308   : > { %v2780_v38 = vmax.f32 %v3821_v44, 0.0  ;;  %v2899_v14 = vmax.f32 %v2348_v42, 0.0  ;;  %v2477_v28 = vpop.f32.mrb[221].mxu1  ;;  %v2350_v36 = vpop.f32.mrb[222].mxu0 }
 0x309   : > { %v3410_v7 = vmax.f32 %v5312_v24, %v2898_v31  ;;  %v2750_v0 = vmax.f32 %v2477_v28, 0.0  ;;  %v2913_v54 = vmax.f32 %v2350_v36, 0.0  ;;  %v3822_v29 = vpop.f32.mrb[222].mxu1  ;;  %v2352_v39 = vpop.f32.mrb[223].mxu0 }
 0x30a   : > { %v3466_v33 = vmax.f32 %v5357_v59, %v2780_v38  ;;  %v2795_v46 = vmax.f32 %v3822_v29, 0.0  ;;  %v2914_v49 = vmax.f32 %v2352_v39, 0.0  ;;  %v2480_v53 = vpop.f32.mrb[223].mxu1 }
 0x30b   : > { %v3442_v19 = vmax.f32 %v3410_v7, %v2899_v14  ;;  %v3464_v32 = vmax.f32 %v5345_v34, %v2750_v0  ;;  %v3411_v51 = vmax.f32 %v5317_v45, %v2913_v54  ;;  %v2765_v11 = vmax.f32 %v2480_v53, 0.0 }
 0x30c   : > { %3498 = vst [vmem:[%s5374_s17 + $0x70] sm:$0xff] %v3466_v33  ;;  %v3467_v24 = vmax.f32 %v5363_v13, %v2795_v46 }
 0x30d   : > { %3496 = vst [vmem:[%s5374_s17 + $0x60] sm:$0xff] %v3464_v32  ;;  %v3443_v6 = vmax.f32 %v3411_v51, %v2914_v49  ;;  %v3465_v48 = vmax.f32 %v5351_v56, %v2765_v11 }
 0x30e   : > { %3499 = vst [vmem:[%s5374_s17 + $0x78] sm:$0xff] %v3467_v24  ;;  %v2356_v15 = vpop.f32.mrb[224].mxu0 }
 0x30f   : > { %3497 = vst [vmem:[%s5374_s17 + $0x68] sm:$0xff] %v3465_v48  ;;  %v2928_v59 = vmax.f32 %v2356_v15, 0.0  ;;  %v3825_v20 = vpop.f32.mrb[224].mxu1  ;;  %v2358_v21 = vpop.f32.mrb[225].mxu0 }
 0x310   : > { %v2840_v5 = vmax.f32 %v3825_v20, 0.0  ;;  %v2929_v12 = vmax.f32 %v2358_v21, 0.0  ;;  %v2493_v34 = vpop.f32.mrb[225].mxu1  ;;  %v2360_v25 = vpop.f32.mrb[226].mxu0 }
 0x311   : > { %v3412_v45 = vmax.f32 %v5324_v22, %v2928_v59  ;;  %v2810_v60 = vmax.f32 %v2493_v34, 0.0  ;;  %v2943_v13 = vmax.f32 %v2360_v25, 0.0  ;;  %v3826_v9 = vpop.f32.mrb[226].mxu1  ;;  %v2362_v37 = vpop.f32.mrb[227].mxu0 }
 0x312   : > { %v3470_v56 = vmax.f32 %v5386_v57, %v2840_v5  ;;  %v2855_v50 = vmax.f32 %v3826_v9, 0.0  ;;  %v2944_v2 = vmax.f32 %v2362_v37, 0.0  ;;  %v2496_v41 = vpop.f32.mrb[227].mxu1 }
 0x313   : > { %v3444_v30 = vmax.f32 %v3412_v45, %v2929_v12  ;;  %v3468_v16 = vmax.f32 %v5370_v10, %v2810_v60  ;;  %v3413_v4 = vmax.f32 %v5329_v63, %v2943_v13  ;;  %v2825_v1 = vmax.f32 %v2496_v41, 0.0 }
 0x314   : > { %3502 = vst [vmem:[%s5374_s17 + $0x90] sm:$0xff] %v3470_v56  ;;  %v3471_v22 = vmax.f32 %v5393_v43, %v2855_v50 }
 0x315   : > { %3500 = vst [vmem:[%s5374_s17 + $0x80] sm:$0xff] %v3468_v16  ;;  %v3445_v27 = vmax.f32 %v3413_v4, %v2944_v2  ;;  %v3469_v55 = vmax.f32 %v5379_v58, %v2825_v1 }
 0x316   : > { %3503 = vst [vmem:[%s5374_s17 + $0x98] sm:$0xff] %v3471_v22  ;;  %v2366_v3 = vpop.f32.mrb[228].mxu0 }
 0x317   : > { %3501 = vst [vmem:[%s5374_s17 + $0x88] sm:$0xff] %v3469_v55  ;;  %v2958_v57 = vmax.f32 %v2366_v3, 0.0  ;;  %v3829_v61 = vpop.f32.mrb[228].mxu1  ;;  %v2368_v52 = vpop.f32.mrb[229].mxu0 }
 0x318   : > { %v2900_v40 = vmax.f32 %v3829_v61, 0.0  ;;  %v2959_v31 = vmax.f32 %v2368_v52, 0.0  ;;  %v2509_v10 = vpop.f32.mrb[229].mxu1  ;;  %v2370_v44 = vpop.f32.mrb[230].mxu0 }
 0x319   : > { %v3414_v63 = vmax.f32 %v5336_v26, %v2958_v57  ;;  %v2870_v42 = vmax.f32 %v2509_v10, 0.0  ;;  %v2973_v43 = vmax.f32 %v2370_v44, 0.0  ;;  %v3830_v38 = vpop.f32.mrb[230].mxu1  ;;  %v2372_v14 = vpop.f32.mrb[231].mxu0 }
 0x31a   : > { %v3474_v58 = vmax.f32 %v3442_v19, %v2900_v40  ;;  %v2915_v28 = vmax.f32 %v3830_v38, 0.0  ;;  %v2974_v36 = vmax.f32 %v2372_v14, 0.0  ;;  %v2512_v7 = vpop.f32.mrb[231].mxu1 }
 0x31b   : > { %v3446_v0 = vmax.f32 %v3414_v63, %v2959_v31  ;;  %v3472_v54 = vmax.f32 %v5400_v35, %v2870_v42  ;;  %v3415_v29 = vmax.f32 %v5341_v47, %v2973_v43  ;;  %v2885_v39 = vmax.f32 %v2512_v7, 0.0 }
 0x31c   : > { %3506 = vst [vmem:[%s5374_s17 + $0xb0] sm:$0xff] %v3474_v58  ;;  %v3475_v33 = vmax.f32 %v3443_v6, %v2915_v28 }
 0x31d   : > { %3504 = vst [vmem:[%s5374_s17 + $0xa0] sm:$0xff] %v3472_v54  ;;  %v3447_v26 = vmax.f32 %v3415_v29, %v2974_v36  ;;  %v3473_v46 = vmax.f32 %v5407_v18, %v2885_v39 }
 0x31e   : > { %3507 = vst [vmem:[%s5374_s17 + $0xb8] sm:$0xff] %v3475_v33  ;;  %v2376_v49 = vpop.f32.mrb[232].mxu0 }
 0x31f   : > { %3505 = vst [vmem:[%s5374_s17 + $0xa8] sm:$0xff] %v3473_v46  ;;  %v2988_v53 = vmax.f32 %v2376_v49, 0.0  ;;  %v3833_v19 = vpop.f32.mrb[232].mxu1  ;;  %v2378_v32 = vpop.f32.mrb[233].mxu0 }
 0x320   : > { %v2960_v51 = vmax.f32 %v3833_v19, 0.0  ;;  %v2989_v11 = vmax.f32 %v2378_v32, 0.0  ;;  %v2525_v24 = vpop.f32.mrb[233].mxu1  ;;  %v2380_v35 = vpop.f32.mrb[234].mxu0 }
 0x321   : > { %v3416_v47 = vmax.f32 %v5348_v23, %v2988_v53  ;;  %v2930_v48 = vmax.f32 %v2525_v24, 0.0  ;;  %v3003_v6 = vmax.f32 %v2380_v35, 0.0  ;;  %v3834_v15 = vpop.f32.mrb[234].mxu1  ;;  %v2382_v59 = vpop.f32.mrb[235].mxu0 }
 0x322   : > { %v3478_v18 = vmax.f32 %v3446_v0, %v2960_v51  ;;  %v2975_v20 = vmax.f32 %v3834_v15, 0.0  ;;  %v3004_v21 = vmax.f32 %v2382_v59, 0.0  ;;  %v2528_v5 = vpop.f32.mrb[235].mxu1 }
 0x323   : > { %v3448_v12 = vmax.f32 %v3416_v47, %v2989_v11  ;;  %v3476_v34 = vmax.f32 %v3444_v30, %v2930_v48  ;;  %v3417_v25 = vmax.f32 %v5353_v62, %v3003_v6  ;;  %v2945_v45 = vmax.f32 %v2528_v5, 0.0 }
 0x324   : > { %3510 = vst [vmem:[%s5374_s17 + $0xd0] sm:$0xff] %v3478_v18  ;;  %v3479_v60 = vmax.f32 %v3447_v26, %v2975_v20 }
 0x325   : > { %3508 = vst [vmem:[%s5374_s17 + $0xc0] sm:$0xff] %v3476_v34  ;;  %v3449_v13 = vmax.f32 %v3417_v25, %v3004_v21  ;;  %v3477_v23 = vmax.f32 %v3445_v27, %v2945_v45 }
 0x326   : > { %3511 = vst [vmem:[%s5374_s17 + $0xd8] sm:$0xff] %v3479_v60  ;;  %v2386_v9 = vpop.f32.mrb[236].mxu0 }
 0x327   : > { %3509 = vst [vmem:[%s5374_s17 + $0xc8] sm:$0xff] %v3477_v23  ;;  %v3018_v37 = vmax.f32 %v2386_v9, 0.0  ;;  %v3837_v56 = vpop.f32.mrb[236].mxu1  ;;  %v2388_v50 = vpop.f32.mrb[237].mxu0 }
 0x328   : > { %v3019_v2 = vmax.f32 %v2388_v50, 0.0  ;;  %v2541_v41 = vpop.f32.mrb[237].mxu1  ;;  %v2390_v16 = vpop.f32.mrb[238].mxu0  ;;  %v3020_v30 = vmax.f32 %v3837_v56, 0.0 }
 0x329   : > { %v3418_v62 = vmax.f32 %v5360_v8, %v3018_v37  ;;  %v2990_v4 = vmax.f32 %v2541_v41, 0.0  ;;  %v3033_v1 = vmax.f32 %v2390_v16, 0.0  ;;  %v3838_v22 = vpop.f32.mrb[238].mxu1  ;;  %v2392_v55 = vpop.f32.mrb[239].mxu0 }
 0x32a   : > { %v3034_v27 = vmax.f32 %v2392_v55, 0.0  ;;  %v2544_v3 = vpop.f32.mrb[239].mxu1  ;;  %v3035_v31 = vmax.f32 %v3838_v22, 0.0 }
 0x32b   : > { %v3450_v57 = vmax.f32 %v3418_v62, %v3019_v2  ;;  %v3480_v61 = vmax.f32 %v3448_v12, %v2990_v4  ;;  %v3419_v52 = vmax.f32 %v5365_v17, %v3033_v1  ;;  %v3005_v40 = vmax.f32 %v2544_v3, 0.0 }
 0x32d   : > { %v3482_v8 = vmax.f32 %v3450_v57, %v3020_v30  ;;  %3512 = vst [vmem:[%s5374_s17 + $0xe0] sm:$0xff] %v3480_v61  ;;  %v3451_v10 = vmax.f32 %v3419_v52, %v3034_v27  ;;  %v3481_v44 = vmax.f32 %v3449_v13, %v3005_v40 }
 0x32f   : > { %3514 = vst [vmem:[%s5374_s17 + $0xf0] sm:$0xff] %v3482_v8  ;;  %v3483_v17 = vmax.f32 %v3451_v10, %v3035_v31  ;;  %3513 = vst [vmem:[%s5374_s17 + $0xe8] sm:$0xff] %v3481_v44 }
 0x331   : > { %3515 = vst [vmem:[%s5374_s17 + $0xf8] sm:$0xff] %v3483_v17 }
 0x332   : > { %4202 = shalt.err (!%p4199_p7)
}
 0x333   : > { %s4203_s24 = scalar_lea.hbm %s5454_s4, 4096  ;;  %s4207_s26 = scalar_lea.hbm %s5505_s2, 8192 }
 0x334   : > { %p4204_p9 = scmp.ne.s32.totalorder %s5454_s4, %s4203_s24  ;;  %p4208_p5 = scmp.lt.u32.totalorder %s5454_s4, %s5505_s2 }
 0x335   : > { %p4209_p11 = scmp.lt.u32.totalorder %s4207_s26, %s4203_s24  ;;  %p4211_p4 = scmp.lt.u32.totalorder %s4203_s24, %s5454_s4 }
 0x336   : > { %p4205_p2 = pnand %p4204_p9, %p4377_p12 }
 0x337   : > { %p4210_p1 = por %p4209_p11, %p4208_p5 }
 0x338   : > { %p4206_p0 = pneg %p4205_p2 }
 0x339   : > { %p4212_p6 = por %p4211_p4, %p4210_p1 }
 0x33b   : > { %p4213_p8 = pnand %p4212_p6, %p4206_p0 }
 0x33d   : > { %4216 = shalt.err (!%p4213_p8)
}
 0x33e   : > { %s4269_s3 = smov 128   ;;  %s4270_s15 = smov 8  }
 0x33f   : > { %3861 = dma.vmem_to_hbm [thread:$0]  (%p4377_p12), %s5456_s22, 4096, %s5454_s4, %s3517_s13, %s4269_s3, %s4269_s3, %s4270_s15  }
 0x340 PF: > { %s3545_s17 = sand.u32 1, %s4247_s9   ;;  %p5537_p10 = scmp.ne.s32.totalorder %s5518_s16, 0 }
 0x341   : > { %p5538_p13 = scmp.ge.s32.totalorder %s4259_s12, 2  ;;  %s3546_s27 = scalar_lea.sflag [#allocation4], %s3545_s17 }
 0x343   : > { %p3872_p3 = pnand %p5538_p13, %p5537_p10 }
 0x345   : > { %4242 = dma.done.wait (!%p3872_p3), %s3546_s27, 4096  }
 0x346   : > { %4244 = vsyncadd (!%p3872_p3), %s3546_s27, 4294963200  ;;  %p16_p7 = scmp.ge.s32.totalorder %s4342_s21, 4   ;;  %s5539_s9 = smov %s4251_s10 }
 0x347   : > { %s5540_s10 = smov %s4255_s11  ;;  %s5541_s11 = smov %s4373_s8 }
 0x348   : > { %s5542_s12 = smov %s4342_s21  ;;  %18 = sbr.rel (!%p16_p7) target bundleno = 6 (0x6), region = 77 }
 0x34f   :  { %3551 = vsyncpa [#allocation3], 1 }
 0x350   :  { %3553 = vsyncpa [#allocation3 + $0x1], 1 }
 0x351   :  { %3554 = vsyncpa [#allocation6], 1 }
 0x352   :  { %3555 = vsyncpa [#allocation4], 1 }
 0x353   :  { %3557 = vsyncpa [#allocation4 + $0x1], 1 }

</bundles_post_ra>
